<compile_context>
chip_gen: v7x
topology: tpu7x:2x2x1
jax: 0.10.0
libtpu: 0.0.40
codegen_flags: <defaults>
</compile_context>

<pallas_src>
import jax
import jax.numpy as jnp
import numpy as np
from jax.experimental import pallas as pl
from jax.experimental.pallas import tpu as pltpu

# ----------------------------------------------------------------------------
# Layout constants.
#   conv rows  (per block of 8 images): r = (h % 2) * 112 + b * 14 + h // 2
#   conv lanes:                         l = (w % 2) * 512 + (w // 2) * 32 + c
# so the 2x2 max pool is two aligned slice+max ops and the pooled tensor is
# (112, 512) indexed [b * 14 + i, j * 32 + c]  (i = h // 2, j = w // 2).
# ----------------------------------------------------------------------------
B_BLK = 8                    # images per grid step
IMG = 28                     # spatial size
C_OUT = 32                   # conv output channels
POOL = 14                    # pooled spatial size
K_IM2COL = 3 * 30            # contraction dim of the conv matmul (kh, padded row)
ROWS = 2 * B_BLK * POOL      # 224 conv rows per block
LANES = 2 * 16 * C_OUT       # 1024 conv lanes (w-parity major, 14 -> 16 padded)
HALF_L = LANES // 2          # 512
HALF_R = ROWS // 2           # 112
PC = POOL * 10               # 140 columns of the fused-FC intermediate


def simple_cnn_kernel(a_ref, m_ref, cb_ref, wfc_ref, fcb_ref,
                      mask_ref, g_ref, e_ref, o_ref):
    # conv1 (3x3, pad 1) for 8 images as a single MXU matmul.
    conv = jnp.dot(a_ref[...], m_ref[...],
                   preferred_element_type=jnp.float32)           # (224, 1024)
    act = jnp.maximum(conv + cb_ref[...], 0.0)                   # bias + ReLU

    # 2x2 max pool in registers: even/odd w live in aligned 512-lane halves,
    # even/odd h in aligned 112-row halves.
    m1 = jnp.maximum(act[:, :HALF_L], act[:, HALF_L:])           # (224, 512)
    pooled = jnp.maximum(m1[:HALF_R, :], m1[HALF_R:, :])         # (112, 512)

    # fc1, fused.  p[r, i*10+o] contracts (j, c); the 0/1 mask keeps the
    # i == r % 14 block, g folds the 14 column groups onto 10 outputs, e sums
    # each image's 14 rows.  All heavy lifting stays on the MXU; rows/lanes of
    # pooled that hold pool "padding" hit zero rows of wfc.
    p = jnp.dot(pooled, wfc_ref[...],
                preferred_element_type=jnp.float32)              # (112, 140)
    p = p * mask_ref[...]
    pg = jnp.dot(p, g_ref[...], preferred_element_type=jnp.float32)   # (112, 10)
    o_ref[...] = (jnp.dot(e_ref[...], pg, preferred_element_type=jnp.float32)
                  + fcb_ref[...])                                # (8, 10)


def prepare_simple_cnn_params(conv_w, conv_b, fc_w, fc_b):
    """One-time (host-side) repack of the PyTorch-layout weights."""
    conv_w = np.asarray(conv_w, np.float32)
    conv_b = np.asarray(conv_b, np.float32)
    fc_w = np.asarray(fc_w, np.float32)
    fc_b = np.asarray(fc_b, np.float32)

    wt = conv_w[:, 0, :, :]                         # (32, 3, 3) = (c, kh, kw)

    # Conv-as-matmul weight: row = kh*30 + t, lane = (w%2)*512 + (w//2)*32 + c.
    m_mat = np.zeros((3, 30, 2, 16, C_OUT), np.float32)
    for kh in range(3):
        for kw in range(3):
            for w in range(IMG):
                m_mat[kh, w + kw, w % 2, w // 2, :] = wt[:, kh, kw]
    m_mat = m_mat.reshape(K_IM2COL, LANES)

    cbias = np.tile(conv_b, LANES // C_OUT).reshape(1, LANES)

    # fc1 weight: row = j*32 + c, col = i*10 + o  (torch flatten order is c,i,j).
    fc4 = fc_w.reshape(10, C_OUT, POOL, POOL)       # (o, c, i, j)
    wfc = np.zeros((16, C_OUT, POOL, 10), np.float32)
    wfc[:POOL] = np.transpose(fc4, (3, 1, 2, 0))    # (j, c, i, o)
    wfc = wfc.reshape(HALF_L, PC)
    fcb = fc_b.reshape(1, 10)

    # Constant 0/1 selection / reduction matrices for the fused FC.
    r2 = np.arange(HALF_R)
    q = np.arange(PC)
    mask = (q[None, :] // 10 == (r2 % POOL)[:, None]).astype(np.float32)   # (112, 140)
    gmat = (q[:, None] % 10 == np.arange(10)[None, :]).astype(np.float32)  # (140, 10)
    emat = (r2[None, :] // POOL ==
            np.arange(B_BLK)[:, None]).astype(np.float32)                  # (8, 112)

    return tuple(jnp.asarray(a)
                 for a in (m_mat, cbias, wfc, fcb, mask, gmat, emat))


@jax.jit
def simple_cnn_forward(x, params):
    """x: (N, 1, 28, 28) float32 NCHW, params from prepare_simple_cnn_params."""
    m_mat, cbias, wfc, fcb, mask, gmat, emat = params
    n = x.shape[0]
    nblk = -(-n // B_BLK)
    n_pad = nblk * B_BLK

    img = x[:, 0, :, :].astype(jnp.float32)
    if n_pad != n:
        img = jnp.pad(img, ((0, n_pad - n), (0, 0), (0, 0)))
    xp = jnp.pad(img, ((0, 0), (1, 1), (1, 1)))                  # (n_pad, 30, 30)

    # im2col over kh only (zero padding folded in); rows reordered to
    # (h%2, b, h//2) within each block of 8 images -> layout plumbing only.
    cols = jnp.stack([xp[:, kh:kh + IMG, :] for kh in range(3)], axis=2)
    cols = cols.reshape(nblk, B_BLK, POOL, 2, 3, 30)             # (i,b,ih,hp,kh,t)
    cols = jnp.transpose(cols, (0, 3, 1, 2, 4, 5))               # (i,hp,b,ih,kh,t)
    a_mat = cols.reshape(nblk * ROWS, K_IM2COL)

    out = pl.pallas_call(
        simple_cnn_kernel,
        out_shape=jax.ShapeDtypeStruct((n_pad, 10), jnp.float32),
        grid_spec=pltpu.PrefetchScalarGridSpec(
            num_scalar_prefetch=0,
            grid=(nblk,),
            in_specs=[
                pl.BlockSpec((ROWS, K_IM2COL), lambda i: (i, 0)),
                pl.BlockSpec((K_IM2COL, LANES), lambda i: (0, 0)),
                pl.BlockSpec((1, LANES), lambda i: (0, 0)),
                pl.BlockSpec((HALF_L, PC), lambda i: (0, 0)),
                pl.BlockSpec((1, 10), lambda i: (0, 0)),
                pl.BlockSpec((HALF_R, PC), lambda i: (0, 0)),
                pl.BlockSpec((PC, 10), lambda i: (0, 0)),
                pl.BlockSpec((B_BLK, HALF_R), lambda i: (0, 0)),
            ],
            out_specs=pl.BlockSpec((B_BLK, 10), lambda i: (i, 0)),
        ),
        compiler_params=pltpu.CompilerParams(
            dimension_semantics=("parallel",)),
    )(a_mat, m_mat, cbias, wfc, fcb, mask, gmat, emat)
    return out[:n]


def reference_forward(x, conv_w, conv_b, fc_w, fc_b):
    """Pure-JAX reference matching the PyTorch forward exactly."""
    y = jax.lax.conv_general_dilated(
        x, conv_w, window_strides=(1, 1), padding=((1, 1), (1, 1)),
        dimension_numbers=("NCHW", "OIHW", "NCHW"))
    y = jnp.maximum(y + conv_b[None, :, None, None], 0.0)
    y = jax.lax.reduce_window(y, -jnp.inf, jax.lax.max,
                              (1, 1, 2, 2), (1, 1, 2, 2), "VALID")
    y = y.reshape(y.shape[0], -1)                                # (C,H,W) flatten
    return y @ fc_w.T + fc_b


if __name__ == "__main__":
    key = jax.random.PRNGKey(0)
    k1, k2, k3, k4, k5 = jax.random.split(key, 5)

    # Deterministic synthetic parameters (shapes from SimpleCNN.__init__).
    conv_w = jax.random.normal(k1, (32, 1, 3, 3), jnp.float32) * 0.1
    conv_b = jax.random.normal(k2, (32,), jnp.float32) * 0.1
    fc_w = jax.random.normal(k3, (10, 32 * 14 * 14), jnp.float32) * 0.01
    fc_b = jax.random.normal(k4, (10,), jnp.float32) * 0.01

    # MNIST mini-batch: 32 images -> 4 parallel grid steps (>= 2 for v7x).
    x = jax.random.normal(k5, (32, 1, 28, 28), jnp.float32)

    params = prepare_simple_cnn_params(conv_w, conv_b, fc_w, fc_b)
    out = jax.block_until_ready(simple_cnn_forward(x, params))

    ref = reference_forward(x, conv_w, conv_b, fc_w, fc_b)
    assert out.shape == (32, 10)
    assert jnp.allclose(out, ref, atol=2e-2, rtol=2e-2), (out, ref)

    print("KERNEL_OK")
</pallas_src>

<mosaic_0001>
module attributes {stable_mosaic.version = 11 : i64} {
  func.func @simple_cnn_kernel(%arg0: i32, %arg1: memref<224x90xf32, #tpu.memory_space<vmem>>, %arg2: memref<90x1024xf32, #tpu.memory_space<vmem>>, %arg3: memref<1x1024xf32, #tpu.memory_space<vmem>>, %arg4: memref<512x140xf32, #tpu.memory_space<vmem>>, %arg5: memref<1x10xf32, #tpu.memory_space<vmem>>, %arg6: memref<112x140xf32, #tpu.memory_space<vmem>>, %arg7: memref<140x10xf32, #tpu.memory_space<vmem>>, %arg8: memref<8x112xf32, #tpu.memory_space<vmem>>, %arg9: memref<8x10xf32, #tpu.memory_space<vmem>>) attributes {dimension_semantics = [#tpu.dimension_semantics<parallel>], iteration_bounds = array<i64: 4>, scalar_prefetch = 0 : i64, scratch_operands = 0 : i64, tpu.core_type = #tpu.core_type<tc>, window_params = [{transform_indices = @transform_0, window_bounds = array<i64: 224, 90>}, {pipeline_mode = #tpu.pipeline_mode<synchronous>, transform_indices = @transform_1, window_bounds = array<i64: 90, 1024>}, {pipeline_mode = #tpu.pipeline_mode<synchronous>, transform_indices = @transform_2, window_bounds = array<i64: 1, 1024>}, {pipeline_mode = #tpu.pipeline_mode<synchronous>, transform_indices = @transform_3, window_bounds = array<i64: 512, 140>}, {pipeline_mode = #tpu.pipeline_mode<synchronous>, transform_indices = @transform_4, window_bounds = array<i64: 1, 10>}, {pipeline_mode = #tpu.pipeline_mode<synchronous>, transform_indices = @transform_5, window_bounds = array<i64: 112, 140>}, {pipeline_mode = #tpu.pipeline_mode<synchronous>, transform_indices = @transform_6, window_bounds = array<i64: 140, 10>}, {pipeline_mode = #tpu.pipeline_mode<synchronous>, transform_indices = @transform_7, window_bounds = array<i64: 8, 112>}, {transform_indices = @transform_8, window_bounds = array<i64: 8, 10>}]} {
    %c0 = arith.constant 0 : index
    %c0_0 = arith.constant 0 : index
    %0 = vector.load %arg1[%c0, %c0_0] : memref<224x90xf32, #tpu.memory_space<vmem>>, vector<224x90xf32>
    %c0_1 = arith.constant 0 : index
    %c0_2 = arith.constant 0 : index
    %1 = vector.load %arg2[%c0_1, %c0_2] : memref<90x1024xf32, #tpu.memory_space<vmem>>, vector<90x1024xf32>
    %cst = arith.constant dense<0.000000e+00> : vector<224x1024xf32>
    %2 = tpu.matmul %0, %1, %cst {dimension_numbers = #tpu.dot_dimension_numbers<[1], [0], [0], [1], [0, 0, 1, 1], [], []>} : vector<224x90xf32>, vector<90x1024xf32>, vector<224x1024xf32> -> vector<224x1024xf32>
    %c0_3 = arith.constant 0 : index
    %c0_4 = arith.constant 0 : index
    %3 = vector.load %arg3[%c0_3, %c0_4] : memref<1x1024xf32, #tpu.memory_space<vmem>>, vector<1x1024xf32>
    %4 = vector.broadcast %3 : vector<1x1024xf32> to vector<224x1024xf32>
    %5 = arith.addf %2, %4 : vector<224x1024xf32>
    %cst_5 = arith.constant 0.000000e+00 : f32
    %6 = vector.broadcast %cst_5 : f32 to vector<224x1024xf32>
    %7 = arith.maximumf %5, %6 : vector<224x1024xf32>
    %8 = vector.extract_strided_slice %7 {offsets = [0, 0], sizes = [224, 512], strides = [1, 1]} : vector<224x1024xf32> to vector<224x512xf32>
    %9 = vector.extract_strided_slice %7 {offsets = [0, 512], sizes = [224, 512], strides = [1, 1]} : vector<224x1024xf32> to vector<224x512xf32>
    %10 = arith.maximumf %8, %9 : vector<224x512xf32>
    %11 = vector.extract_strided_slice %10 {offsets = [0, 0], sizes = [112, 512], strides = [1, 1]} : vector<224x512xf32> to vector<112x512xf32>
    %12 = vector.extract_strided_slice %10 {offsets = [112, 0], sizes = [112, 512], strides = [1, 1]} : vector<224x512xf32> to vector<112x512xf32>
    %13 = arith.maximumf %11, %12 : vector<112x512xf32>
    %c0_6 = arith.constant 0 : index
    %c0_7 = arith.constant 0 : index
    %14 = vector.load %arg4[%c0_6, %c0_7] : memref<512x140xf32, #tpu.memory_space<vmem>>, vector<512x140xf32>
    %cst_8 = arith.constant dense<0.000000e+00> : vector<112x140xf32>
    %15 = tpu.matmul %13, %14, %cst_8 {dimension_numbers = #tpu.dot_dimension_numbers<[1], [0], [0], [1], [0, 0, 1, 1], [], []>} : vector<112x512xf32>, vector<512x140xf32>, vector<112x140xf32> -> vector<112x140xf32>
    %c0_9 = arith.constant 0 : index
    %c0_10 = arith.constant 0 : index
    %16 = vector.load %arg6[%c0_9, %c0_10] : memref<112x140xf32, #tpu.memory_space<vmem>>, vector<112x140xf32>
    %17 = arith.mulf %15, %16 : vector<112x140xf32>
    %c0_11 = arith.constant 0 : index
    %c0_12 = arith.constant 0 : index
    %18 = vector.load %arg7[%c0_11, %c0_12] : memref<140x10xf32, #tpu.memory_space<vmem>>, vector<140x10xf32>
    %cst_13 = arith.constant dense<0.000000e+00> : vector<112x10xf32>
    %19 = tpu.matmul %17, %18, %cst_13 {dimension_numbers = #tpu.dot_dimension_numbers<[1], [0], [0], [1], [0, 0, 1, 1], [], []>} : vector<112x140xf32>, vector<140x10xf32>, vector<112x10xf32> -> vector<112x10xf32>
    %c0_14 = arith.constant 0 : index
    %c0_15 = arith.constant 0 : index
    %20 = vector.load %arg8[%c0_14, %c0_15] : memref<8x112xf32, #tpu.memory_space<vmem>>, vector<8x112xf32>
    %cst_16 = arith.constant dense<0.000000e+00> : vector<8x10xf32>
    %21 = tpu.matmul %20, %19, %cst_16 {dimension_numbers = #tpu.dot_dimension_numbers<[1], [0], [0], [1], [0, 0, 1, 1], [], []>} : vector<8x112xf32>, vector<112x10xf32>, vector<8x10xf32> -> vector<8x10xf32>
    %c0_17 = arith.constant 0 : index
    %c0_18 = arith.constant 0 : index
    %22 = vector.load %arg5[%c0_17, %c0_18] : memref<1x10xf32, #tpu.memory_space<vmem>>, vector<1x10xf32>
    %23 = vector.broadcast %22 : vector<1x10xf32> to vector<8x10xf32>
    %24 = arith.addf %21, %23 : vector<8x10xf32>
    %c0_19 = arith.constant 0 : index
    %c0_20 = arith.constant 0 : index
    %25 = vector.load %arg9[%c0_19, %c0_20] : memref<8x10xf32, #tpu.memory_space<vmem>>, vector<8x10xf32>
    tpu.vector_store %arg9[%c0_19, %c0_20], %24 {strides = array<i32>} : memref<8x10xf32, #tpu.memory_space<vmem>>, vector<8x10xf32>,
    return
  }
  func.func @transform_0(%arg0: i32) -> (i32, i32) {
    %c0_i32 = arith.constant 0 : i32
    %c0_i32_0 = arith.constant 0 : i32
    return %arg0, %c0_i32 : i32, i32
  }
  func.func @transform_1(%arg0: i32) -> (i32, i32) {
    %c0_i32 = arith.constant 0 : i32
    %c0_i32_0 = arith.constant 0 : i32
    %c0_i32_1 = arith.constant 0 : i32
    return %c0_i32, %c0_i32_0 : i32, i32
  }
  func.func @transform_2(%arg0: i32) -> (i32, i32) {
    %c0_i32 = arith.constant 0 : i32
    %c0_i32_0 = arith.constant 0 : i32
    %c0_i32_1 = arith.constant 0 : i32
    return %c0_i32, %c0_i32_0 : i32, i32
  }
  func.func @transform_3(%arg0: i32) -> (i32, i32) {
    %c0_i32 = arith.constant 0 : i32
    %c0_i32_0 = arith.constant 0 : i32
    %c0_i32_1 = arith.constant 0 : i32
    return %c0_i32, %c0_i32_0 : i32, i32
  }
  func.func @transform_4(%arg0: i32) -> (i32, i32) {
    %c0_i32 = arith.constant 0 : i32
    %c0_i32_0 = arith.constant 0 : i32
    %c0_i32_1 = arith.constant 0 : i32
    return %c0_i32, %c0_i32_0 : i32, i32
  }
  func.func @transform_5(%arg0: i32) -> (i32, i32) {
    %c0_i32 = arith.constant 0 : i32
    %c0_i32_0 = arith.constant 0 : i32
    %c0_i32_1 = arith.constant 0 : i32
    return %c0_i32, %c0_i32_0 : i32, i32
  }
  func.func @transform_6(%arg0: i32) -> (i32, i32) {
    %c0_i32 = arith.constant 0 : i32
    %c0_i32_0 = arith.constant 0 : i32
    %c0_i32_1 = arith.constant 0 : i32
    return %c0_i32, %c0_i32_0 : i32, i32
  }
  func.func @transform_7(%arg0: i32) -> (i32, i32) {
    %c0_i32 = arith.constant 0 : i32
    %c0_i32_0 = arith.constant 0 : i32
    %c0_i32_1 = arith.constant 0 : i32
    return %c0_i32, %c0_i32_0 : i32, i32
  }
  func.func @transform_8(%arg0: i32) -> (i32, i32) {
    %c0_i32 = arith.constant 0 : i32
    %c0_i32_0 = arith.constant 0 : i32
    return %arg0, %c0_i32 : i32, i32
  }
}

</mosaic_0001>

<bundles_post_ra>
// kernel: simple_cnn_forward.1
= control target key start
LH: loop header
LB: loop body
LE: loop exit
PB: predicated region body
PF: predicated region fallthrough
CT: control target
= control target key end

     0   :  { %s3307_s27 = smov 0   ;;  %s6036_s0 = inlined_call_operand.vmem [shape: f32[896,90], index: 0, kind: input, shape index: {}]   ;;  %s6037_s1 = inlined_call_operand.vmem [shape: f32[90,1024], index: 1, kind: input, shape index: {}]   ;;  %s6038_s2 = inlined_call_operand.vmem [shape: f32[1,1024], index: 2, kind: input, shape index: {}]   ;;  %s6039_s3 = inlined_call_operand.vmem [shape: f32[512,140], index: 3, kind: input, shape index: {}]   ;;  %s6040_s4 = inlined_call_operand.vmem [shape: f32[1,10], index: 4, kind: input, shape index: {}]   ;;  %s6041_s5 = inlined_call_operand.vmem [shape: f32[112,140], index: 5, kind: input, shape index: {}]   ;;  %s6042_s6 = inlined_call_operand.vmem [shape: f32[140,10], index: 6, kind: input, shape index: {}]   ;;  %s6043_s7 = inlined_call_operand.vmem [shape: f32[8,112], index: 7, kind: input, shape index: {}]   ;;  %s6044_s8 = inlined_call_operand.vmem [shape: f32[32,10], index: 8, kind: output, shape index: {}]  }
   0x1 LB: > { %s3313_s28 = sadd.s32 4294967295, %s3256_s27   ;;  %p2729_p0 = scmp.ge.s32.totalorder %s3256_s27, 1  ;;  %s3256_s27 = sphi %s3307_s27, %s18_s27  }
   0x2   : > { %p263_p1 = scmp.lt.s32.totalorder %s3256_s27, 5 }
   0x4   : > { %p264_p2 = pnand %p2729_p0, %p263_p1 }
   0x6   : > { %267 = sbr.rel (%p264_p2) target bundleno = 1187 (0x4a3), region = 52 }
   0xd   : > { %v335_v0 = vld [vmem:[%s6037_s1 + $0x8] sm:$0xff]  ;;  %v334_v2 = vld [vmem:[%s6037_s1] sm:$0xff]  ;;  %v6045_v7 = vmov 0.0   ;;  %s296_s15 = smul.u32 28, %s3313_s28  ;;  %vm557_vm0 = vcmask 1041408   ;;  %vm3259_vm1 = vmmov 1  }
   0xe   : > { %v343_v1 = vld [vmem:[%s6037_s1 + $0x48] sm:$0xff]  ;;  %v342_v4 = vld [vmem:[%s6037_s1 + $0x40] sm:$0xff]  ;;  %646 = vmatprep.mubr.f32.mxu0 %v6045_v7  ;;  %772 = vmatprep.mubr.f32.mxu1 %v6045_v7  ;;  %vm3387_vm2 = vmpackc.low %vm557_vm0, %vm3259_vm1  ;;  %vm472_vm3 = vcmask 736256   ;;  %vm2449_vm4 = vcmask 1043456   ;;  %vm2406_vm6 = vcmask 97280   ;;  %vm3261_vm7 = vmmov 0  }
   0xf   : > { %v2917_v3 = vpack.c.bf16 %v343_v1, %v335_v0  ;;  %v351_v5 = vld [vmem:[%s6037_s1 + $0x88] sm:$0xff]  ;;  %v2919_v8 = vpack.c.bf16 %v342_v4, %v334_v2  ;;  %v350_v10 = vld [vmem:[%s6037_s1 + $0x80] sm:$0xff]  ;;  %p297_p3 = scmp.lt.s32.totalorder %s296_s15, 111  ;;  %v337_v37 = vld [vmem:[%s6037_s1 + $0x18] sm:$0xff]  ;;  %vm2596_vm8 = vcmask 916480   ;;  %p302_p4 = scmp.lt.s32.totalorder %s3313_s28, 3 }
  0x10   : > { %v359_v6 = vld [vmem:[%s6037_s1 + $0xc8] sm:$0xff]  ;;  %v358_v11 = vld [vmem:[%s6037_s1 + $0xc0] sm:$0xff]  ;;  %v345_v38 = vld [vmem:[%s6037_s1 + $0x58] sm:$0xff]  ;;  %vm2670_vm9 = vcmask 80896  }
  0x11   : > { %v2921_v9 = vpack.c.bf16 %v359_v6, %v351_v5  ;;  %v367_v12 = vld [vmem:[%s6037_s1 + $0x108] sm:$0xff]  ;;  %2918 = vmatprep.subr.bf16.mxu0 %v2917_v3  ;;  %3198 = vmatprep.subr.bf16.mxu1 %v2917_v3  ;;  %v2923_v14 = vpack.c.bf16 %v358_v11, %v350_v10  ;;  %v366_v16 = vld [vmem:[%s6037_s1 + $0x100] sm:$0xff]  ;;  %s6530_s15 = smov (!%p297_p3, %s296_s15), 111  ;;  %v2943_v42 = vpack.c.bf16 %v345_v38, %v337_v37  ;;  %v336_v44 = vld [vmem:[%s6037_s1 + $0x10] sm:$0xff]  ;;  %s6532_s28 = smov (!%p302_p4, %s3313_s28), 3 }
  0x12   : > { %v375_v13 = vld [vmem:[%s6037_s1 + $0x148] sm:$0xff]  ;;  %2920 = vmatpush1.bf16.msra.mxu0 %v2919_v8  ;;  %3204 = vmatpush1.bf16.msra.mxu1 %v2919_v8  ;;  %v374_v17 = vld [vmem:[%s6037_s1 + $0x140] sm:$0xff]  ;;  %s2730_s19 = sshll.u32 %s6530_s15, 3  ;;  %v344_v45 = vld [vmem:[%s6037_s1 + $0x50] sm:$0xff]  ;;  %s2731_s23 = sshll.u32 %s6532_s28, 3 }
  0x13   : > { %2922 = vmatprep.subr.bf16.mxu0 %v2921_v9  ;;  %3199 = vmatprep.subr.bf16.mxu1 %v2921_v9  ;;  %v2925_v15 = vpack.c.bf16 %v375_v13, %v367_v12  ;;  %v383_v18 = vld [vmem:[%s6037_s1 + $0x188] sm:$0xff]  ;;  %v2927_v20 = vpack.c.bf16 %v374_v17, %v366_v16  ;;  %v382_v22 = vld [vmem:[%s6037_s1 + $0x180] sm:$0xff]  ;;  %s3416_s29 = scalar_lea.vmem %s6036_s0, %s2730_s19  ;;  %v353_v48 = vld [vmem:[%s6037_s1 + $0x98] sm:$0xff]  ;;  %v2945_v54 = vpack.c.bf16 %v344_v45, %v336_v44  ;;  %s305_s30 = scalar_lea.vmem %s6044_s8, %s2731_s23 }
  0x14   : > { %v391_v19 = vld [vmem:[%s6037_s1 + $0x1c8] sm:$0xff]  ;;  %v390_v23 = vld [vmem:[%s6037_s1 + $0x1c0] sm:$0xff]  ;;  %v361_v49 = vld [vmem:[%s6037_s1 + $0xd8] sm:$0xff] }
  0x15   : > { %v2929_v21 = vpack.c.bf16 %v391_v19, %v383_v18  ;;  %v399_v24 = vld [vmem:[%s6037_s1 + $0x208] sm:$0xff]  ;;  %v2931_v26 = vpack.c.bf16 %v390_v23, %v382_v22  ;;  %v398_v28 = vld [vmem:[%s6037_s1 + $0x200] sm:$0xff]  ;;  %v352_v56 = vld [vmem:[%s6037_s1 + $0x90] sm:$0xff]  ;;  %v2947_v58 = vpack.c.bf16 %v361_v49, %v353_v48 }
  0x16   : > { %2924 = vmatpush1.bf16.msra.mxu0 %v2923_v14  ;;  %3205 = vmatpush1.bf16.msra.mxu1 %v2923_v14  ;;  %v407_v25 = vld [vmem:[%s6037_s1 + $0x248] sm:$0xff]  ;;  %v406_v29 = vld [vmem:[%s6037_s1 + $0x240] sm:$0xff]  ;;  %v360_v57 = vld [vmem:[%s6037_s1 + $0xd0] sm:$0xff] }
  0x17   : > { %2926 = vmatprep.subr.bf16.mxu0 %v2925_v15  ;;  %3200 = vmatprep.subr.bf16.mxu1 %v2925_v15  ;;  %v2933_v27 = vpack.c.bf16 %v407_v25, %v399_v24  ;;  %v415_v30 = vld [vmem:[%s6037_s1 + $0x288] sm:$0xff]  ;;  %v2935_v32 = vpack.c.bf16 %v406_v29, %v398_v28  ;;  %v414_v35 = vld [vmem:[%s6037_s1 + $0x280] sm:$0xff]  ;;  %v369_v59 = vld [vmem:[%s6037_s1 + $0x118] sm:$0xff]  ;;  %v2949_v4 = vpack.c.bf16 %v360_v57, %v352_v56 }
  0x18   : > { %v423_v31 = vld [vmem:[%s6037_s1 + $0x2c8] sm:$0x3]  ;;  %v422_v36 = vld [vmem:[%s6037_s1 + $0x2c0] sm:$0x3]  ;;  %v377_v63 = vld [vmem:[%s6037_s1 + $0x158] sm:$0xff] }
  0x19   : > { %v2937_v34 = vpack.c.bf16 %v423_v31, %v415_v30  ;;  %v339_v39 = vld [vmem:[%s6037_s1 + $0x28] sm:$0xff]  ;;  %v2940_v41 = vpack.c.bf16 %v422_v36, %v414_v35  ;;  %v338_v46 = vld [vmem:[%s6037_s1 + $0x20] sm:$0xff]  ;;  %v3486_v3 = vld [vmem:[%s3416_s29 + $0xb0] sm:$0xff]  ;;  %v2951_v9 = vpack.c.bf16 %v377_v63, %v369_v59 }
  0x1a   : > { %2928 = vmatpush1.bf16.msra.mxu0 %v2927_v20  ;;  %3206 = vmatpush1.bf16.msra.mxu1 %v2927_v20  ;;  %v347_v40 = vld [vmem:[%s6037_s1 + $0x68] sm:$0xff]  ;;  %v346_v47 = vld [vmem:[%s6037_s1 + $0x60] sm:$0xff]  ;;  %v368_v5 = vld [vmem:[%s6037_s1 + $0x110] sm:$0xff] }
  0x1b   : > { %2930 = vmatprep.subr.bf16.mxu0 %v2929_v21  ;;  %3201 = vmatprep.subr.bf16.mxu1 %v2929_v21  ;;  %v2969_v43 = vpack.c.bf16 %v347_v40, %v339_v39  ;;  %v355_v50 = vld [vmem:[%s6037_s1 + $0xa8] sm:$0xff]  ;;  %v3447_v52 = vld [vmem:[%s3416_s29] sm:$0xff]  ;;  %v2971_v55 = vpack.c.bf16 %v346_v47, %v338_v46  ;;  %v376_v6 = vld [vmem:[%s6037_s1 + $0x150] sm:$0xff] }
  0x1c   : > { %v363_v51 = vld [vmem:[%s6037_s1 + $0xe8] sm:$0xff]  ;;  %v354_v61 = vld [vmem:[%s6037_s1 + $0xa0] sm:$0xff]  ;;  %v385_v10 = vld [vmem:[%s6037_s1 + $0x198] sm:$0xff]  ;;  %v2953_v19 = vpack.c.bf16 %v376_v6, %v368_v5 }
  0x1d   : > { %v3450_v53 = vld [vmem:[%s3416_s29 + $0xa8] sm:$0xff]  ;;  %v2973_v60 = vpack.c.bf16 %v363_v51, %v355_v50  ;;  %v362_v62 = vld [vmem:[%s6037_s1 + $0xe0] sm:$0xff]  ;;  %v393_v14 = vld [vmem:[%s6037_s1 + $0x1d8] sm:$0xff] }
  0x1e   : > { %2932 = vmatpush1.bf16.msra.mxu0 %v2931_v26  ;;  %3207 = vmatpush1.bf16.msra.mxu1 %v2931_v26  ;;  %v371_v0 = vld [vmem:[%s6037_s1 + $0x128] sm:$0xff]  ;;  %v2975_v8 = vpack.c.bf16 %v362_v62, %v354_v61  ;;  %v370_v12 = vld [vmem:[%s6037_s1 + $0x120] sm:$0xff]  ;;  %v3519_v17 = vld [vmem:[%s3416_s29 + $0x10] sm:$0xff]  ;;  %v2955_v23 = vpack.c.bf16 %v393_v14, %v385_v10 }
  0x1f   : > { %2934 = vmatprep.subr.bf16.mxu0 %v2933_v27  ;;  %3202 = vmatprep.subr.bf16.mxu1 %v2933_v27  ;;  %v379_v1 = vld [vmem:[%s6037_s1 + $0x168] sm:$0xff]  ;;  %v378_v13 = vld [vmem:[%s6037_s1 + $0x160] sm:$0xff]  ;;  %v3522_v18 = vld [vmem:[%s3416_s29 + $0xb8] sm:$0xff] }
  0x20   : > { %v3483_v2 = vld [vmem:[%s3416_s29 + $0x8] sm:$0xff]  ;;  %v2977_v11 = vpack.c.bf16 %v379_v1, %v371_v0  ;;  %v384_v20 = vld [vmem:[%s6037_s1 + $0x190] sm:$0xff]  ;;  %v2979_v22 = vpack.c.bf16 %v378_v13, %v370_v12  ;;  %v401_v24 = vld [vmem:[%s6037_s1 + $0x218] sm:$0xff] }
  0x21   : > { %v387_v15 = vld [vmem:[%s6037_s1 + $0x1a8] sm:$0xff]  ;;  %v392_v21 = vld [vmem:[%s6037_s1 + $0x1d0] sm:$0xff]  ;;  %v386_v26 = vld [vmem:[%s6037_s1 + $0x1a0] sm:$0xff] }
  0x22   : > { %2936 = vmatpush1.bf16.msra.mxu0 %v2935_v32  ;;  %3208 = vmatpush1.bf16.msra.mxu1 %v2935_v32  ;;  %v395_v16 = vld [vmem:[%s6037_s1 + $0x1e8] sm:$0xff]  ;;  %v394_v27 = vld [vmem:[%s6037_s1 + $0x1e0] sm:$0xff]  ;;  %v409_v28 = vld [vmem:[%s6037_s1 + $0x258] sm:$0xff] }
  0x23   : > { %2939 = vmatprep.subr.msk.bf16.mxu0 %vm3387_vm2, %v2937_v34  ;;  %3203 = vmatprep.subr.msk.bf16.mxu1 %vm3387_vm2, %v2937_v34  ;;  %v2981_v25 = vpack.c.bf16 %v395_v16, %v387_v15  ;;  %v403_v29 = vld [vmem:[%s6037_s1 + $0x228] sm:$0xff]  ;;  %v3555_v31 = vld [vmem:[%s3416_s29 + $0x18] sm:$0xff]  ;;  %v3558_v32 = vld [vmem:[%s3416_s29 + $0xc0] sm:$0xff]  ;;  %v2957_v34 = vpack.c.bf16 %v392_v21, %v384_v20  ;;  %v2983_v37 = vpack.c.bf16 %v394_v27, %v386_v26 }
  0x24   : > { %v411_v30 = vld [vmem:[%s6037_s1 + $0x268] sm:$0xff]  ;;  %v400_v35 = vld [vmem:[%s6037_s1 + $0x210] sm:$0xff]  ;;  %v2959_v38 = vpack.c.bf16 %v409_v28, %v401_v24  ;;  %v417_v39 = vld [vmem:[%s6037_s1 + $0x298] sm:$0xff] }
  0x25   : > { %v408_v36 = vld [vmem:[%s6037_s1 + $0x250] sm:$0xff]  ;;  %v2985_v40 = vpack.c.bf16 %v411_v30, %v403_v29  ;;  %v419_v44 = vld [vmem:[%s6037_s1 + $0x2a8] sm:$0xff]  ;;  %v3591_v46 = vld [vmem:[%s3416_s29 + $0x20] sm:$0xff] }
  0x26   : > { %2942 = vmatpush1.bf16.msk.msra.mxu0 %vm3387_vm2, %v2940_v41  ;;  %3209 = vmatpush1.bf16.msk.msra.mxu1 %vm3387_vm2, %v2940_v41  ;;  %v402_v41 = vld [vmem:[%s6037_s1 + $0x220] sm:$0xff]  ;;  %v427_v45 = vld [vmem:[%s6037_s1 + $0x2e8] sm:$0x3]  ;;  %v2961_v48 = vpack.c.bf16 %v408_v36, %v400_v35  ;;  %v416_v49 = vld [vmem:[%s6037_s1 + $0x290] sm:$0xff] }
  0x27   : > { %2944 = vmatprep.subr.bf16.mxu1 %v2943_v42  ;;  %2970 = vmatprep.subr.bf16.mxu0 %v2969_v43  ;;  %v410_v42 = vld [vmem:[%s6037_s1 + $0x260] sm:$0xff]  ;;  %v425_v43 = vld [vmem:[%s6037_s1 + $0x2d8] sm:$0x3]  ;;  %v3594_v47 = vld [vmem:[%s3416_s29 + $0xc8] sm:$0xff] }
  0x28   : > { %v2987_v50 = vpack.c.bf16 %v410_v42, %v402_v41  ;;  %v2963_v51 = vpack.c.bf16 %v425_v43, %v417_v39  ;;  %v418_v56 = vld [vmem:[%s6037_s1 + $0x2a0] sm:$0xff]  ;;  %v349_v59 = vld [vmem:[%s6037_s1 + $0x78] sm:$0xff]  ;;  %v3624_v61 = vld [vmem:[%s3416_s29 + $0xd0] sm:$0xff] }
  0x29   : > { %2734 = vmatmul.mubr.msk.f32.vlgmr.msra.gmra.mrb[0].mxu0 %vm472_vm3, %v3447_v52  ;;  %2755 = vmatmul.mubr.msk.f32.vlgmr.msra.gmra.mrb[0].mxu1 %vm472_vm3, %v3450_v53  ;;  %v426_v57 = vld [vmem:[%s6037_s1 + $0x2e0] sm:$0x3]  ;;  %v3637_v1 = vld [vmem:[%s3416_s29 + $0x30] sm:$0xff]  ;;  %v3665_v10 = vld [vmem:[%s3416_s29 + $0x38] sm:$0xff] }
  0x2a   : > { %652 = vmatprep.mubr.f32.mxu0 %v6045_v7  ;;  %778 = vmatprep.mubr.f32.mxu1 %v6045_v7  ;;  %v2992_v63 = vpack.c.bf16 %v426_v57, %v418_v56  ;;  %v340_v5 = vld [vmem:[%s6037_s1 + $0x30] sm:$0xff]  ;;  %v373_v15 = vld [vmem:[%s6037_s1 + $0x138] sm:$0xff]  ;;  %v3707_v26 = vld [vmem:[%s3416_s29 + $0x48] sm:$0xff] }
  0x2b   : > { %2946 = vmatpush1.bf16.msra.mxu1 %v2945_v54  ;;  %2972 = vmatpush1.bf16.msra.mxu0 %v2971_v55  ;;  %v424_v54 = vld [vmem:[%s6037_s1 + $0x2d0] sm:$0x3]  ;;  %v2989_v55 = vpack.c.bf16 %v427_v45, %v419_v44  ;;  %v381_v16 = vld [vmem:[%s6037_s1 + $0x178] sm:$0xff]  ;;  %v3804_v56 = vld [vmem:[%s3416_s29 + $0x80] sm:$0xff] }
  0x2c   : > { %2948 = vmatprep.subr.bf16.mxu1 %v2947_v58  ;;  %2974 = vmatprep.subr.bf16.mxu0 %v2973_v60  ;;  %v341_v58 = vld [vmem:[%s6037_s1 + $0x38] sm:$0xff]  ;;  %v3621_v60 = vld [vmem:[%s3416_s29 + $0x28] sm:$0xff]  ;;  %v2966_v62 = vpack.c.bf16 %v424_v54, %v416_v49  ;;  %v348_v6 = vld [vmem:[%s6037_s1 + $0x70] sm:$0xff]  ;;  %v3003_v21 = vpack.c.bf16 %v381_v16, %v373_v15 }
  0x2d   : > { %2735 = vmatmul.mubr.msk.f32.gmra.mrb[2].mxu0 %vm472_vm3, %v3483_v2  ;;  %2756 = vmatmul.mubr.msk.f32.gmra.mrb[2].mxu1 %vm472_vm3, %v3486_v3  ;;  %v2995_v0 = vpack.c.bf16 %v349_v59, %v341_v58  ;;  %v356_v13 = vld [vmem:[%s6037_s1 + $0xb0] sm:$0xff]  ;;  %v389_v24 = vld [vmem:[%s6037_s1 + $0x1b8] sm:$0xff]  ;;  %v3775_v54 = vld [vmem:[%s3416_s29 + $0x68] sm:$0xff] }
  0x2e   : > { %658 = vmatprep.mubr.f32.mxu0 %v6045_v7  ;;  %784 = vmatprep.mubr.f32.mxu1 %v6045_v7  ;;  %v364_v14 = vld [vmem:[%s6037_s1 + $0xf0] sm:$0xff]  ;;  %v413_v35 = vld [vmem:[%s6037_s1 + $0x278] sm:$0xff]  ;;  %v3813_v57 = vld [vmem:[%s3416_s29 + $0x88] sm:$0xff] }
  0x2f   : > { %2950 = vmatpush1.bf16.msra.mxu1 %v2949_v4  ;;  %2976 = vmatpush1.bf16.msra.mxu0 %v2975_v8  ;;  %v3640_v4 = vld [vmem:[%s3416_s29 + $0xd8] sm:$0xff]  ;;  %v3001_v20 = vpack.c.bf16 %v364_v14, %v356_v13  ;;  %v388_v29 = vld [vmem:[%s6037_s1 + $0x1b0] sm:$0xff]  ;;  %v1910_v13 = vld [vmem:[%s6039_s3 + $0x20] sm:$0xff] }
  0x30   : > { %2952 = vmatprep.subr.bf16.mxu1 %v2951_v9  ;;  %2978 = vmatprep.subr.bf16.mxu0 %v2977_v11  ;;  %v357_v8 = vld [vmem:[%s6037_s1 + $0xb8] sm:$0xff]  ;;  %v2997_v11 = vpack.c.bf16 %v348_v6, %v340_v5  ;;  %v396_v30 = vld [vmem:[%s6037_s1 + $0x1f0] sm:$0xff]  ;;  %v1906_v6 = vld [vmem:[%s6039_s3] sm:$0xff] }
  0x31   : > { %2736 = vmatmul.mubr.msk.f32.gmra.mrb[4].mxu0 %vm472_vm3, %v3519_v17  ;;  %2757 = vmatmul.mubr.msk.f32.gmra.mrb[4].mxu1 %vm472_vm3, %v3522_v18  ;;  %v365_v9 = vld [vmem:[%s6037_s1 + $0xf8] sm:$0xff]  ;;  %v3728_v36 = vld [vmem:[%s3416_s29 + $0x50] sm:$0xff]  ;;  %vm5579_vm5 = vmpackc.low %vm2449_vm4, %vm3259_vm1 }
  0x32   : > { %664 = vmatprep.mubr.f32.mxu0 %v6045_v7  ;;  %790 = vmatprep.mubr.f32.mxu1 %v6045_v7  ;;  %v2999_v12 = vpack.c.bf16 %v365_v9, %v357_v8  ;;  %v404_v39 = vld [vmem:[%s6037_s1 + $0x230] sm:$0xff]  ;;  %v421_v41 = vld [vmem:[%s6037_s1 + $0x2b8] sm:$0xff] }
  0x33   : > { %2954 = vmatpush1.bf16.msra.mxu1 %v2953_v19  ;;  %2980 = vmatpush1.bf16.msra.mxu0 %v2979_v22  ;;  %v3686_v19 = vld [vmem:[%s3416_s29 + $0x40] sm:$0xff]  ;;  %v372_v22 = vld [vmem:[%s6037_s1 + $0x130] sm:$0xff]  ;;  %v429_v42 = vld [vmem:[%s6037_s1 + $0x2f8] sm:$0x3] }
  0x34   : > { %2956 = vmatprep.subr.bf16.mxu1 %v2955_v23  ;;  %2982 = vmatprep.subr.bf16.mxu0 %v2981_v25  ;;  %v380_v23 = vld [vmem:[%s6037_s1 + $0x170] sm:$0xff]  ;;  %v397_v25 = vld [vmem:[%s6037_s1 + $0x1f8] sm:$0xff]  ;;  %v3015_v45 = vpack.c.bf16 %v429_v42, %v421_v41 }
  0x35   : > { %2737 = vmatmul.mubr.msk.f32.gmra.mrb[6].mxu0 %vm472_vm3, %v3555_v31  ;;  %2758 = vmatmul.mubr.msk.f32.gmra.mrb[6].mxu1 %vm472_vm3, %v3558_v32  ;;  %v3005_v27 = vpack.c.bf16 %v380_v23, %v372_v22  ;;  %v3007_v28 = vpack.c.bf16 %v397_v25, %v389_v24  ;;  %v3749_v43 = vld [vmem:[%s3416_s29 + $0x58] sm:$0xff]  ;;  %v428_v49 = vld [vmem:[%s6037_s1 + $0x2f0] sm:$0x3]  ;;  %v1914_v22 = vld [vmem:[%s6039_s3 + $0x40] sm:$0xff] }
  0x36   : > { %670 = vmatprep.mubr.f32.mxu0 %v6045_v7  ;;  %796 = vmatprep.mubr.f32.mxu1 %v6045_v7  ;;  %v3795_v33 = vld [vmem:[%s3416_s29 + $0x78] sm:$0xff]  ;;  %v3822_v58 = vld [vmem:[%s3416_s29 + $0x90] sm:$0xff] }
  0x37   : > { %2958 = vmatpush1.bf16.msra.mxu1 %v2957_v34  ;;  %2984 = vmatpush1.bf16.msra.mxu0 %v2983_v37  ;;  %v405_v34 = vld [vmem:[%s6037_s1 + $0x238] sm:$0xff]  ;;  %v3009_v37 = vpack.c.bf16 %v396_v30, %v388_v29  ;;  %v1908_v8 = vld [vmem:[%s6039_s3 + $0x10] sm:$0xff]  ;;  %v1923_v30 = vld [vmem:[%s6039_s3 + $0x88] sm:$0xff] }
  0x38   : > { %2960 = vmatprep.subr.bf16.mxu1 %v2959_v38  ;;  %2986 = vmatprep.subr.bf16.mxu0 %v2985_v40  ;;  %v3011_v38 = vpack.c.bf16 %v413_v35, %v405_v34  ;;  %v412_v40 = vld [vmem:[%s6037_s1 + $0x270] sm:$0xff]  ;;  %v3831_v59 = vld [vmem:[%s3416_s29 + $0x98] sm:$0xff]  ;;  %v3023_v9 = vpack.c.bf16 %v1908_v8, %v1906_v6  ;;  %v1922_v35 = vld [vmem:[%s6039_s3 + $0x80] sm:$0xff] }
  0x39   : > { %2738 = vmatmul.mubr.msk.f32.gmra.mrb[8].mxu0 %vm472_vm3, %v3591_v46  ;;  %2759 = vmatmul.mubr.msk.f32.gmra.mrb[8].mxu1 %vm472_vm3, %v3594_v47  ;;  %v3013_v44 = vpack.c.bf16 %v412_v40, %v404_v39  ;;  %v1912_v15 = vld [vmem:[%s6039_s3 + $0x30] sm:$0xff]  ;;  %v1921_v25 = vld [vmem:[%s6039_s3 + $0x78] sm:$0xff]  ;;  %v1926_v40 = vld [vmem:[%s6039_s3 + $0xa0] sm:$0xff] }
  0x3a   : > { %676 = vmatprep.mubr.f32.mxu0 %v6045_v7  ;;  %802 = vmatprep.mubr.f32.mxu1 %v6045_v7  ;;  %v3027_v16 = vpack.c.bf16 %v1912_v15, %v1910_v13  ;;  %v1916_v23 = vld [vmem:[%s6039_s3 + $0x50] sm:$0xff]  ;;  %v1925_v34 = vld [vmem:[%s6039_s3 + $0x98] sm:$0xff]  ;;  %v1942_v13 = vld [vmem:[%s6039_s3 + $0x120] sm:$0xff] }
  0x3b   : > { %2962 = vmatpush1.bf16.msra.mxu1 %v2961_v48  ;;  %2988 = vmatpush1.bf16.msra.mxu0 %v2987_v50  ;;  %v420_v48 = vld [vmem:[%s6037_s1 + $0x2b0] sm:$0xff]  ;;  %v3764_v50 = vld [vmem:[%s3416_s29 + $0x60] sm:$0xff]  ;;  %v3031_v24 = vpack.c.bf16 %v1916_v23, %v1914_v22  ;;  %v1929_v39 = vld [vmem:[%s6039_s3 + $0xb8] sm:$0xff] }
  0x3c   : > { %2965 = vmatprep.subr.msk.bf16.mxu1 %vm3387_vm2, %v2963_v51  ;;  %2991 = vmatprep.subr.msk.bf16.mxu0 %vm3387_vm2, %v2989_v55  ;;  %v3018_v51 = vpack.c.bf16 %v428_v49, %v420_v48  ;;  %v3786_v55 = vld [vmem:[%s3416_s29 + $0x70] sm:$0xff]  ;;  %v1935_v49 = vld [vmem:[%s6039_s3 + $0xe8] sm:$0xff]  ;;  %v1941_v6 = vld [vmem:[%s6039_s3 + $0x118] sm:$0xff] }
  0x3d   : > { %2739 = vmatmul.mubr.msk.f32.gmra.mrb[10].mxu0 %vm472_vm3, %v3621_v60  ;;  %2760 = vmatmul.mubr.msk.f32.gmra.mrb[10].mxu1 %vm472_vm3, %v3624_v61  ;;  %v1928_v41 = vld [vmem:[%s6039_s3 + $0xb0] sm:$0xff]  ;;  %v1953_v23 = vld [vmem:[%s6039_s3 + $0x178] sm:$0xff] }
  0x3e   : > { %682 = vmatprep.mubr.f32.mxu0 %v6045_v7  ;;  %808 = vmatprep.mubr.f32.mxu1 %v6045_v7  ;;  %v3043_v42 = vpack.c.bf16 %v1928_v41, %v1926_v40  ;;  %v1944_v15 = vld [vmem:[%s6039_s3 + $0x130] sm:$0xff]  ;;  %v1959_v40 = vld [vmem:[%s6039_s3 + $0x1a8] sm:$0xff] }
  0x3f   : > { %2968 = vmatpush1.bf16.msk.msra.mxu1 %vm3387_vm2, %v2966_v62  ;;  %2994 = vmatpush1.bf16.msk.msra.mxu0 %vm3387_vm2, %v2992_v63  ;;  %v3840_v62 = vld [vmem:[%s3416_s29 + $0xa0] sm:$0xff]  ;;  %v1907_v63 = vld [vmem:[%s6039_s3 + $0x8] sm:$0xff]  ;;  %v1948_v22 = vld [vmem:[%s6039_s3 + $0x150] sm:$0xff] }
  0x40   : > { %2996 = vmatprep.subr.bf16.mxu1 %v2995_v0  ;;  %v1909_v0 = vld [vmem:[%s6039_s3 + $0x18] sm:$0xff] }
  0x41   : > { %2740 = vmatmul.mubr.msk.f32.gmra.mrb[12].mxu0 %vm472_vm3, %v3637_v1  ;;  %2761 = vmatmul.mubr.msk.f32.gmra.mrb[12].mxu1 %vm472_vm3, %v3640_v4  ;;  %v3021_v5 = vpack.c.bf16 %v1909_v0, %v1907_v63  ;;  %v1934_v63 = vld [vmem:[%s6039_s3 + $0xe0] sm:$0xff] }
  0x42   : > { %688 = vmatprep.mubr.f32.mxu0 %v6045_v7  ;;  %879 = vmatprep.mubr.f32.mxu1 %v6045_v7 }
  0x43   : > { %3022 = vmatprep.subr.bf16.mxu0 %v3021_v5  ;;  %v1939_v5 = vld [vmem:[%s6039_s3 + $0x108] sm:$0xff] }
  0x44   : > { %v3053_v8 = vpack.c.bf16 %v1941_v6, %v1939_v5 }
  0x45   : > { %2741 = vmatmul.mubr.msk.f32.gmra.mrb[14].mxu0 %vm472_vm3, %v3665_v10  ;;  %2764 = vmatmul.mubr.msk.f32.vlgmr.msra.gmra.mrb[14].mxu1 %vm472_vm3, %v3447_v52 }
  0x46   : > { %694 = vmatprep.mubr.f32.mxu0 %v6045_v7  ;;  %885 = vmatprep.mubr.f32.mxu1 %v6045_v7 }
  0x47   : > { %2998 = vmatpush1.bf16.msra.mxu1 %v2997_v11  ;;  %v1911_v11 = vld [vmem:[%s6039_s3 + $0x28] sm:$0xff] }
  0x48   : > { %3000 = vmatprep.subr.bf16.mxu1 %v2999_v12  ;;  %v1913_v12 = vld [vmem:[%s6039_s3 + $0x38] sm:$0xff] }
  0x49   : > { %2742 = vmatmul.mubr.msk.f32.gmra.mrb[16].mxu0 %vm472_vm3, %v3686_v19  ;;  %2765 = vmatmul.mubr.msk.f32.gmra.mrb[16].mxu1 %vm472_vm3, %v3483_v2  ;;  %v3025_v14 = vpack.c.bf16 %v1913_v12, %v1911_v11  ;;  %v1945_v12 = vld [vmem:[%s6039_s3 + $0x138] sm:$0xff] }
  0x4a   : > { %700 = vmatprep.mubr.f32.mxu0 %v6045_v7  ;;  %891 = vmatprep.mubr.f32.mxu1 %v6045_v7 }
  0x4b   : > { %3002 = vmatpush1.bf16.msra.mxu1 %v3001_v20  ;;  %v1915_v20 = vld [vmem:[%s6039_s3 + $0x48] sm:$0xff] }
  0x4c   : > { %3004 = vmatprep.subr.bf16.mxu1 %v3003_v21  ;;  %v1917_v21 = vld [vmem:[%s6039_s3 + $0x58] sm:$0xff] }
  0x4d   : > { %2743 = vmatmul.mubr.msk.f32.gmra.mrb[18].mxu0 %vm472_vm3, %v3707_v26  ;;  %2766 = vmatmul.mubr.msk.f32.gmra.mrb[18].mxu1 %vm472_vm3, %v3519_v17 }
  0x4e   : > { %706 = vmatprep.mubr.f32.mxu0 %v6045_v7  ;;  %897 = vmatprep.mubr.f32.mxu1 %v6045_v7 }
  0x4f   : > { %3006 = vmatpush1.bf16.msra.mxu1 %v3005_v27 }
  0x50   : > { %3008 = vmatprep.subr.bf16.mxu1 %v3007_v28  ;;  %v1918_v28 = vld [vmem:[%s6039_s3 + $0x60] sm:$0xff] }
  0x51   : > { %2744 = vmatmul.mubr.msk.f32.gmra.mrb[20].mxu0 %vm472_vm3, %v3728_v36  ;;  %2767 = vmatmul.mubr.msk.f32.gmra.mrb[20].mxu1 %vm472_vm3, %v3555_v31 }
  0x52   : > { %712 = vmatprep.mubr.f32.mxu0 %v6045_v7  ;;  %903 = vmatprep.mubr.f32.mxu1 %v6045_v7 }
  0x53   : > { %3010 = vmatpush1.bf16.msra.mxu1 %v3009_v37  ;;  %v1924_v37 = vld [vmem:[%s6039_s3 + $0x90] sm:$0xff] }
  0x54   : > { %3012 = vmatprep.subr.bf16.mxu1 %v3011_v38  ;;  %v3039_v38 = vpack.c.bf16 %v1924_v37, %v1922_v35  ;;  %v1956_v37 = vld [vmem:[%s6039_s3 + $0x190] sm:$0xff] }
  0x55   : > { %2745 = vmatmul.mubr.msk.f32.gmra.mrb[22].mxu0 %vm472_vm3, %v3749_v43  ;;  %2768 = vmatmul.mubr.msk.f32.gmra.mrb[22].mxu1 %vm472_vm3, %v3591_v46 }
  0x56   : > { %718 = vmatprep.mubr.f32.mxu0 %v6045_v7  ;;  %909 = vmatprep.mubr.f32.mxu1 %v6045_v7 }
  0x57   : > { %3014 = vmatpush1.bf16.msra.mxu1 %v3013_v44  ;;  %v1930_v44 = vld [vmem:[%s6039_s3 + $0xc0] sm:$0xff] }
  0x58   : > { %3017 = vmatprep.subr.msk.bf16.mxu1 %vm3387_vm2, %v3015_v45 }
  0x59   : > { %2746 = vmatmul.mubr.msk.f32.gmra.mrb[24].mxu0 %vm472_vm3, %v3764_v50  ;;  %2769 = vmatmul.mubr.msk.f32.gmra.mrb[24].mxu1 %vm472_vm3, %v3621_v60 }
  0x5a   : > { %724 = vmatprep.mubr.f32.mxu0 %v6045_v7  ;;  %915 = vmatprep.mubr.f32.mxu1 %v6045_v7 }
  0x5b   : > { %3020 = vmatpush1.bf16.msk.msra.mxu1 %vm3387_vm2, %v3018_v51 }
  0x5d   : > { %2747 = vmatmul.mubr.msk.f32.gmra.mrb[26].mxu0 %vm472_vm3, %v3775_v54  ;;  %2770 = vmatmul.mubr.msk.f32.gmra.mrb[26].mxu1 %vm472_vm3, %v3637_v1 }
  0x5e   : > { %730 = vmatprep.mubr.f32.mxu0 %v6045_v7  ;;  %921 = vmatprep.mubr.f32.mxu1 %v6045_v7 }
  0x61   : > { %2748 = vmatmul.mubr.msk.f32.gmra.mrb[28].mxu0 %vm472_vm3, %v3786_v55  ;;  %2771 = vmatmul.mubr.msk.f32.gmra.mrb[28].mxu1 %vm472_vm3, %v3665_v10 }
  0x62   : > { %736 = vmatprep.mubr.f32.mxu0 %v6045_v7  ;;  %927 = vmatprep.mubr.f32.mxu1 %v6045_v7 }
  0x65   : > { %2749 = vmatmul.mubr.msk.f32.gmra.mrb[30].mxu0 %vm472_vm3, %v3795_v33  ;;  %2772 = vmatmul.mubr.msk.f32.gmra.mrb[30].mxu1 %vm472_vm3, %v3686_v19 }
  0x66   : > { %742 = vmatprep.mubr.f32.mxu0 %v6045_v7  ;;  %933 = vmatprep.mubr.f32.mxu1 %v6045_v7 }
  0x69   : > { %2750 = vmatmul.mubr.msk.f32.gmra.mrb[32].mxu0 %vm472_vm3, %v3804_v56  ;;  %2773 = vmatmul.mubr.msk.f32.gmra.mrb[32].mxu1 %vm472_vm3, %v3707_v26 }
  0x6a   : > { %748 = vmatprep.mubr.f32.mxu0 %v6045_v7  ;;  %939 = vmatprep.mubr.f32.mxu1 %v6045_v7 }
  0x6d   : > { %2751 = vmatmul.mubr.msk.f32.gmra.mrb[34].mxu0 %vm472_vm3, %v3813_v57  ;;  %2774 = vmatmul.mubr.msk.f32.gmra.mrb[34].mxu1 %vm472_vm3, %v3728_v36 }
  0x6e   : > { %754 = vmatprep.mubr.f32.mxu0 %v6045_v7  ;;  %945 = vmatprep.mubr.f32.mxu1 %v6045_v7 }
  0x71   : > { %2752 = vmatmul.mubr.msk.f32.gmra.mrb[36].mxu0 %vm472_vm3, %v3822_v58  ;;  %2775 = vmatmul.mubr.msk.f32.gmra.mrb[36].mxu1 %vm472_vm3, %v3749_v43 }
  0x72   : > { %760 = vmatprep.mubr.f32.mxu0 %v6045_v7  ;;  %951 = vmatprep.mubr.f32.mxu1 %v6045_v7 }
  0x75   : > { %2753 = vmatmul.mubr.msk.f32.gmra.mrb[38].mxu0 %vm472_vm3, %v3831_v59  ;;  %2776 = vmatmul.mubr.msk.f32.gmra.mrb[38].mxu1 %vm472_vm3, %v3764_v50 }
  0x76   : > { %766 = vmatprep.mubr.f32.mxu0 %v6045_v7  ;;  %957 = vmatprep.mubr.f32.mxu1 %v6045_v7 }
  0x79   : > { %2754 = vmatmul.mubr.msk.f32.gmra.mrb[40].mxu0 %vm472_vm3, %v3840_v62  ;;  %2777 = vmatmul.mubr.msk.f32.gmra.mrb[40].mxu1 %vm472_vm3, %v3775_v54 }
  0x7a   : > { %963 = vmatprep.mubr.f32.mxu1 %v6045_v7  ;;  %1112 = vmatprep.mubr.f32.mxu0 %v6045_v7 }
  0x7d   : > { %2778 = vmatmul.mubr.msk.f32.gmra.mrb[42].mxu1 %vm472_vm3, %v3786_v55  ;;  %2794 = vmatmul.mubr.msk.f32.vlgmr.msra.gmra.mrb[42].mxu0 %vm472_vm3, %v3447_v52 }
  0x7e   : > { %969 = vmatprep.mubr.f32.mxu1 %v6045_v7  ;;  %1118 = vmatprep.mubr.f32.mxu0 %v6045_v7 }
  0x7f   : > { %3024 = vmatpush1.bf16.msra.mxu0 %v3023_v9  ;;  %v1940_v9 = vld [vmem:[%s6039_s3 + $0x110] sm:$0xff] }
  0x80   : > { %3026 = vmatprep.subr.bf16.mxu0 %v3025_v14 }
  0x81   : > { %2779 = vmatmul.mubr.msk.f32.gmra.mrb[44].mxu1 %vm472_vm3, %v3795_v33  ;;  %2795 = vmatmul.mubr.msk.f32.gmra.mrb[44].mxu0 %vm472_vm3, %v3483_v2 }
  0x82   : > { %975 = vmatprep.mubr.f32.mxu1 %v6045_v7  ;;  %1124 = vmatprep.mubr.f32.mxu0 %v6045_v7 }
  0x83   : > { %3028 = vmatpush1.bf16.msra.mxu0 %v3027_v16  ;;  %v1947_v16 = vld [vmem:[%s6039_s3 + $0x148] sm:$0xff] }
  0x85   : > { %2780 = vmatmul.mubr.msk.f32.gmra.mrb[46].mxu1 %vm472_vm3, %v3804_v56  ;;  %2796 = vmatmul.mubr.msk.f32.gmra.mrb[46].mxu0 %vm472_vm3, %v3519_v17 }
  0x86   : > { %981 = vmatprep.mubr.f32.mxu1 %v6045_v7  ;;  %1130 = vmatprep.mubr.f32.mxu0 %v6045_v7 }
  0x89   : > { %2781 = vmatmul.mubr.msk.f32.gmra.mrb[48].mxu1 %vm472_vm3, %v3813_v57  ;;  %2797 = vmatmul.mubr.msk.f32.gmra.mrb[48].mxu0 %vm472_vm3, %v3555_v31 }
  0x8a   : > { %987 = vmatprep.mubr.f32.mxu1 %v6045_v7  ;;  %1136 = vmatprep.mubr.f32.mxu0 %v6045_v7 }
  0x8d   : > { %2782 = vmatmul.mubr.msk.f32.gmra.mrb[50].mxu1 %vm472_vm3, %v3822_v58  ;;  %2798 = vmatmul.mubr.msk.f32.gmra.mrb[50].mxu0 %vm472_vm3, %v3591_v46 }
  0x8e   : > { %993 = vmatprep.mubr.f32.mxu1 %v6045_v7  ;;  %1142 = vmatprep.mubr.f32.mxu0 %v6045_v7 }
  0x91   : > { %2783 = vmatmul.mubr.msk.f32.gmra.mrb[52].mxu1 %vm472_vm3, %v3831_v59  ;;  %2799 = vmatmul.mubr.msk.f32.gmra.mrb[52].mxu0 %vm472_vm3, %v3621_v60 }
  0x92   : > { %999 = vmatprep.mubr.f32.mxu1 %v6045_v7  ;;  %1148 = vmatprep.mubr.f32.mxu0 %v6045_v7 }
  0x95   : > { %2784 = vmatmul.mubr.msk.f32.gmra.mrb[54].mxu1 %vm472_vm3, %v3840_v62  ;;  %2800 = vmatmul.mubr.msk.f32.gmra.mrb[54].mxu0 %vm472_vm3, %v3637_v1 }
  0x96   : > { %1005 = vmatprep.mubr.f32.mxu1 %v6045_v7  ;;  %1154 = vmatprep.mubr.f32.mxu0 %v6045_v7 }
  0x99   : > { %2785 = vmatmul.mubr.msk.f32.gmra.mrb[56].mxu1 %vm472_vm3, %v3450_v53  ;;  %2801 = vmatmul.mubr.msk.f32.gmra.mrb[56].mxu0 %vm472_vm3, %v3665_v10 }
  0x9a   : > { %1011 = vmatprep.mubr.f32.mxu1 %v6045_v7  ;;  %1160 = vmatprep.mubr.f32.mxu0 %v6045_v7 }
  0x9d   : > { %2786 = vmatmul.mubr.msk.f32.gmra.mrb[58].mxu1 %vm472_vm3, %v3486_v3  ;;  %2802 = vmatmul.mubr.msk.f32.gmra.mrb[58].mxu0 %vm472_vm3, %v3686_v19 }
  0x9e   : > { %1017 = vmatprep.mubr.f32.mxu1 %v6045_v7  ;;  %1166 = vmatprep.mubr.f32.mxu0 %v6045_v7 }
  0xa1   : > { %2787 = vmatmul.mubr.msk.f32.gmra.mrb[60].mxu1 %vm472_vm3, %v3522_v18  ;;  %2803 = vmatmul.mubr.msk.f32.gmra.mrb[60].mxu0 %vm472_vm3, %v3707_v26 }
  0xa2   : > { %1023 = vmatprep.mubr.f32.mxu1 %v6045_v7  ;;  %1172 = vmatprep.mubr.f32.mxu0 %v6045_v7 }
  0xa5   : > { %2788 = vmatmul.mubr.msk.f32.gmra.mrb[62].mxu1 %vm472_vm3, %v3558_v32  ;;  %2804 = vmatmul.mubr.msk.f32.gmra.mrb[62].mxu0 %vm472_vm3, %v3728_v36 }
  0xa6   : > { %1029 = vmatprep.mubr.f32.mxu1 %v6045_v7  ;;  %1178 = vmatprep.mubr.f32.mxu0 %v6045_v7 }
  0xa9   : > { %2789 = vmatmul.mubr.msk.f32.gmra.mrb[64].mxu1 %vm472_vm3, %v3594_v47  ;;  %2805 = vmatmul.mubr.msk.f32.gmra.mrb[64].mxu0 %vm472_vm3, %v3749_v43 }
  0xaa   : > { %1035 = vmatprep.mubr.f32.mxu1 %v6045_v7  ;;  %1184 = vmatprep.mubr.f32.mxu0 %v6045_v7 }
  0xad   : > { %2790 = vmatmul.mubr.msk.f32.gmra.mrb[66].mxu1 %vm472_vm3, %v3624_v61  ;;  %2806 = vmatmul.mubr.msk.f32.gmra.mrb[66].mxu0 %vm472_vm3, %v3764_v50 }
  0xae   : > { %1041 = vmatprep.mubr.f32.mxu1 %v6045_v7  ;;  %1190 = vmatprep.mubr.f32.mxu0 %v6045_v7 }
  0xb1   : > { %2791 = vmatmul.mubr.msk.f32.gmra.mrb[68].mxu1 %vm472_vm3, %v3640_v4  ;;  %2807 = vmatmul.mubr.msk.f32.gmra.mrb[68].mxu0 %vm472_vm3, %v3775_v54 }
  0xb2   : > { %1196 = vmatprep.mubr.f32.mxu0 %v6045_v7  ;;  %1345 = vmatprep.mubr.f32.mxu1 %v6045_v7 }
  0xb5   : > { %2808 = vmatmul.mubr.msk.f32.gmra.mrb[70].mxu0 %vm472_vm3, %v3786_v55  ;;  %2824 = vmatmul.mubr.msk.f32.vlgmr.msra.gmra.mrb[70].mxu1 %vm472_vm3, %v3447_v52  ;;  %v3029_v52 = vpack.c.bf16 %v1917_v21, %v1915_v20  ;;  %v1949_v20 = vld [vmem:[%s6039_s3 + $0x158] sm:$0xff] }
  0xb6   : > { %1202 = vmatprep.mubr.f32.mxu0 %v6045_v7  ;;  %1351 = vmatprep.mubr.f32.mxu1 %v6045_v7  ;;  %v3061_v21 = vpack.c.bf16 %v1949_v20, %v1947_v16  ;;  %v1973_v16 = vld [vmem:[%s6039_s3 + $0x218] sm:$0xff] }
  0xb7   : > { %3030 = vmatprep.subr.bf16.mxu0 %v3029_v52  ;;  %v1951_v52 = vld [vmem:[%s6039_s3 + $0x168] sm:$0xff] }
  0xb8   : > { %3032 = vmatpush1.bf16.msra.mxu0 %v3031_v24  ;;  %v3065_v24 = vpack.c.bf16 %v1953_v23, %v1951_v52 }
  0xb9   : > { %2809 = vmatmul.mubr.msk.f32.gmra.mrb[72].mxu0 %vm472_vm3, %v3795_v33  ;;  %2825 = vmatmul.mubr.msk.f32.gmra.mrb[72].mxu1 %vm472_vm3, %v3483_v2  ;;  %v1919_v2 = vld [vmem:[%s6039_s3 + $0x68] sm:$0xff] }
  0xba   : > { %1208 = vmatprep.mubr.f32.mxu0 %v6045_v7  ;;  %1357 = vmatprep.mubr.f32.mxu1 %v6045_v7  ;;  %v3033_v27 = vpack.c.bf16 %v1921_v25, %v1919_v2  ;;  %v1952_v2 = vld [vmem:[%s6039_s3 + $0x170] sm:$0xff] }
  0xbc   : > { %3034 = vmatprep.subr.bf16.mxu0 %v3033_v27 }
  0xbd   : > { %2810 = vmatmul.mubr.msk.f32.gmra.mrb[74].mxu0 %vm472_vm3, %v3804_v56  ;;  %2826 = vmatmul.mubr.msk.f32.gmra.mrb[74].mxu1 %vm472_vm3, %v3519_v17  ;;  %v1920_v17 = vld [vmem:[%s6039_s3 + $0x70] sm:$0xff] }
  0xbe   : > { %1214 = vmatprep.mubr.f32.mxu0 %v6045_v7  ;;  %1363 = vmatprep.mubr.f32.mxu1 %v6045_v7  ;;  %v3035_v29 = vpack.c.bf16 %v1920_v17, %v1918_v28 }
  0xc0   : > { %3036 = vmatpush1.bf16.msra.mxu0 %v3035_v29  ;;  %v1955_v29 = vld [vmem:[%s6039_s3 + $0x188] sm:$0xff] }
  0xc1   : > { %2811 = vmatmul.mubr.msk.f32.gmra.mrb[76].mxu0 %vm472_vm3, %v3813_v57  ;;  %2827 = vmatmul.mubr.msk.f32.gmra.mrb[76].mxu1 %vm472_vm3, %v3555_v31  ;;  %v3037_v31 = vpack.c.bf16 %v1925_v34, %v1923_v30  ;;  %v1957_v30 = vld [vmem:[%s6039_s3 + $0x198] sm:$0xff] }
  0xc2   : > { %1220 = vmatprep.mubr.f32.mxu0 %v6045_v7  ;;  %1369 = vmatprep.mubr.f32.mxu1 %v6045_v7  ;;  %v3069_v34 = vpack.c.bf16 %v1957_v30, %v1955_v29 }
  0xc3   : > { %3038 = vmatprep.subr.bf16.mxu0 %v3037_v31 }
  0xc4   : > { %3040 = vmatpush1.bf16.msra.mxu0 %v3039_v38 }
  0xc5   : > { %2812 = vmatmul.mubr.msk.f32.gmra.mrb[78].mxu0 %vm472_vm3, %v3822_v58  ;;  %2828 = vmatmul.mubr.msk.f32.gmra.mrb[78].mxu1 %vm472_vm3, %v3591_v46  ;;  %v1927_v46 = vld [vmem:[%s6039_s3 + $0xa8] sm:$0xff] }
  0xc6   : > { %1226 = vmatprep.mubr.f32.mxu0 %v6045_v7  ;;  %1375 = vmatprep.mubr.f32.mxu1 %v6045_v7 }
  0xc9   : > { %2813 = vmatmul.mubr.msk.f32.gmra.mrb[80].mxu0 %vm472_vm3, %v3831_v59  ;;  %2829 = vmatmul.mubr.msk.f32.gmra.mrb[80].mxu1 %vm472_vm3, %v3621_v60  ;;  %v3041_v60 = vpack.c.bf16 %v1929_v39, %v1927_v46 }
  0xca   : > { %1232 = vmatprep.mubr.f32.mxu0 %v6045_v7  ;;  %1381 = vmatprep.mubr.f32.mxu1 %v6045_v7 }
  0xcb   : > { %3042 = vmatprep.subr.bf16.mxu0 %v3041_v60  ;;  %v1961_v60 = vld [vmem:[%s6039_s3 + $0x1b8] sm:$0xff] }
  0xcc   : > { %3044 = vmatpush1.bf16.msra.mxu0 %v3043_v42 }
  0xcd   : > { %2814 = vmatmul.mubr.msk.f32.gmra.mrb[82].mxu0 %vm472_vm3, %v3840_v62  ;;  %2830 = vmatmul.mubr.msk.f32.gmra.mrb[82].mxu1 %vm472_vm3, %v3637_v1  ;;  %v1931_v1 = vld [vmem:[%s6039_s3 + $0xc8] sm:$0xff] }
  0xce   : > { %1238 = vmatprep.mubr.f32.mxu0 %v6045_v7  ;;  %1387 = vmatprep.mubr.f32.mxu1 %v6045_v7 }
  0xd1   : > { %2815 = vmatmul.mubr.msk.f32.gmra.mrb[84].mxu0 %vm472_vm3, %v3450_v53  ;;  %2831 = vmatmul.mubr.msk.f32.gmra.mrb[84].mxu1 %vm472_vm3, %v3665_v10  ;;  %v1933_v10 = vld [vmem:[%s6039_s3 + $0xd8] sm:$0xff] }
  0xd2   : > { %1244 = vmatprep.mubr.f32.mxu0 %v6045_v7  ;;  %1393 = vmatprep.mubr.f32.mxu1 %v6045_v7  ;;  %v3045_v45 = vpack.c.bf16 %v1933_v10, %v1931_v1  ;;  %v1958_v1 = vld [vmem:[%s6039_s3 + $0x1a0] sm:$0xff]  ;;  %v1960_v10 = vld [vmem:[%s6039_s3 + $0x1b0] sm:$0xff] }
  0xd4   : > { %3046 = vmatprep.subr.bf16.mxu0 %v3045_v45 }
  0xd5   : > { %2816 = vmatmul.mubr.msk.f32.gmra.mrb[86].mxu0 %vm472_vm3, %v3486_v3  ;;  %2832 = vmatmul.mubr.msk.f32.gmra.mrb[86].mxu1 %vm472_vm3, %v3686_v19  ;;  %v1932_v19 = vld [vmem:[%s6039_s3 + $0xd0] sm:$0xff] }
  0xd6   : > { %1250 = vmatprep.mubr.f32.mxu0 %v6045_v7  ;;  %1399 = vmatprep.mubr.f32.mxu1 %v6045_v7  ;;  %v3047_v48 = vpack.c.bf16 %v1932_v19, %v1930_v44  ;;  %v3075_v19 = vpack.c.bf16 %v1960_v10, %v1958_v1 }
  0xd8   : > { %3048 = vmatpush1.bf16.msra.mxu0 %v3047_v48  ;;  %v1963_v48 = vld [vmem:[%s6039_s3 + $0x1c8] sm:$0xff] }
  0xd9   : > { %2817 = vmatmul.mubr.msk.f32.gmra.mrb[88].mxu0 %vm472_vm3, %v3522_v18  ;;  %2833 = vmatmul.mubr.msk.f32.gmra.mrb[88].mxu1 %vm472_vm3, %v3707_v26  ;;  %v1937_v26 = vld [vmem:[%s6039_s3 + $0xf8] sm:$0xff] }
  0xda   : > { %1256 = vmatprep.mubr.f32.mxu0 %v6045_v7  ;;  %1405 = vmatprep.mubr.f32.mxu1 %v6045_v7  ;;  %v3049_v51 = vpack.c.bf16 %v1937_v26, %v1935_v49  ;;  %v1965_v49 = vld [vmem:[%s6039_s3 + $0x1d8] sm:$0xff] }
  0xdc   : > { %3050 = vmatprep.subr.bf16.mxu0 %v3049_v51 }
  0xdd   : > { %2818 = vmatmul.mubr.msk.f32.gmra.mrb[90].mxu0 %vm472_vm3, %v3558_v32  ;;  %2834 = vmatmul.mubr.msk.f32.gmra.mrb[90].mxu1 %vm472_vm3, %v3728_v36  ;;  %v1936_v36 = vld [vmem:[%s6039_s3 + $0xf0] sm:$0xff] }
  0xde   : > { %1262 = vmatprep.mubr.f32.mxu0 %v6045_v7  ;;  %1411 = vmatprep.mubr.f32.mxu1 %v6045_v7  ;;  %v3051_v0 = vpack.c.bf16 %v1936_v36, %v1934_v63  ;;  %v1962_v63 = vld [vmem:[%s6039_s3 + $0x1c0] sm:$0xff]  ;;  %v1964_v36 = vld [vmem:[%s6039_s3 + $0x1d0] sm:$0xff] }
  0xdf   : > { %v3079_v6 = vpack.c.bf16 %v1964_v36, %v1962_v63 }
  0xe0   : > { %3052 = vmatpush1.bf16.msra.mxu0 %v3051_v0 }
  0xe1   : > { %2819 = vmatmul.mubr.msk.f32.gmra.mrb[92].mxu0 %vm472_vm3, %v3594_v47  ;;  %2835 = vmatmul.mubr.msk.f32.gmra.mrb[92].mxu1 %vm472_vm3, %v3749_v43  ;;  %v1938_v43 = vld [vmem:[%s6039_s3 + $0x100] sm:$0xff] }
  0xe2   : > { %1268 = vmatprep.mubr.f32.mxu0 %v6045_v7  ;;  %1417 = vmatprep.mubr.f32.mxu1 %v6045_v7  ;;  %v3055_v11 = vpack.c.bf16 %v1940_v9, %v1938_v43  ;;  %v1969_v43 = vld [vmem:[%s6039_s3 + $0x1f8] sm:$0xff] }
  0xe3   : > { %3054 = vmatprep.subr.bf16.mxu0 %v3053_v8  ;;  %v1967_v8 = vld [vmem:[%s6039_s3 + $0x1e8] sm:$0xff] }
  0xe4   : > { %3056 = vmatpush1.bf16.msra.mxu0 %v3055_v11 }
  0xe5   : > { %2820 = vmatmul.mubr.msk.f32.gmra.mrb[94].mxu0 %vm472_vm3, %v3624_v61  ;;  %2836 = vmatmul.mubr.msk.f32.gmra.mrb[94].mxu1 %vm472_vm3, %v3764_v50  ;;  %v1943_v50 = vld [vmem:[%s6039_s3 + $0x128] sm:$0xff] }
  0xe6   : > { %1274 = vmatprep.mubr.f32.mxu0 %v6045_v7  ;;  %1423 = vmatprep.mubr.f32.mxu1 %v6045_v7  ;;  %v3057_v14 = vpack.c.bf16 %v1945_v12, %v1943_v50  ;;  %v1966_v50 = vld [vmem:[%s6039_s3 + $0x1e0] sm:$0xff]  ;;  %v1968_v12 = vld [vmem:[%s6039_s3 + $0x1f0] sm:$0xff] }
  0xe8   : > { %3058 = vmatprep.subr.bf16.mxu0 %v3057_v14 }
  0xe9   : > { %2821 = vmatmul.mubr.msk.f32.gmra.mrb[96].mxu0 %vm472_vm3, %v3640_v4  ;;  %2837 = vmatmul.mubr.msk.f32.gmra.mrb[96].mxu1 %vm472_vm3, %v3775_v54  ;;  %v3059_v54 = vpack.c.bf16 %v1944_v15, %v1942_v13  ;;  %v3083_v15 = vpack.c.bf16 %v1968_v12, %v1966_v50 }
  0xea   : > { %1429 = vmatprep.mubr.f32.mxu1 %v6045_v7 }
  0xeb   : > { %3060 = vmatpush1.bf16.msra.mxu0 %v3059_v54  ;;  %v1971_v54 = vld [vmem:[%s6039_s3 + $0x208] sm:$0xff] }
  0xec   : > { %3062 = vmatprep.subr.bf16.mxu0 %v3061_v21 }
  0xed   : > { %2838 = vmatmul.mubr.msk.f32.gmra.mrb[98].mxu1 %vm472_vm3, %v3786_v55  ;;  %v1946_v55 = vld [vmem:[%s6039_s3 + $0x140] sm:$0xff] }
  0xee   : > { %1435 = vmatprep.mubr.f32.mxu1 %v6045_v7 }
  0xf1   : > { %2839 = vmatmul.mubr.msk.f32.gmra.mrb[100].mxu1 %vm472_vm3, %v3795_v33  ;;  %v3063_v33 = vpack.c.bf16 %v1948_v22, %v1946_v55 }
  0xf2   : > { %1441 = vmatprep.mubr.f32.mxu1 %v6045_v7 }
  0xf3   : > { %3064 = vmatpush1.bf16.msra.mxu0 %v3063_v33 }
  0xf4   : > { %3066 = vmatprep.subr.bf16.mxu0 %v3065_v24 }
  0xf5   : > { %2840 = vmatmul.mubr.msk.f32.gmra.mrb[102].mxu1 %vm472_vm3, %v3804_v56  ;;  %v1950_v56 = vld [vmem:[%s6039_s3 + $0x160] sm:$0xff] }
  0xf6   : > { %1447 = vmatprep.mubr.f32.mxu1 %v6045_v7 }
  0xf9   : > { %2841 = vmatmul.mubr.msk.f32.gmra.mrb[104].mxu1 %vm472_vm3, %v3813_v57  ;;  %v3067_v57 = vpack.c.bf16 %v1952_v2, %v1950_v56 }
  0xfa   : > { %1453 = vmatprep.mubr.f32.mxu1 %v6045_v7 }
  0xfb   : > { %3068 = vmatpush1.bf16.msra.mxu0 %v3067_v57 }
  0xfc   : > { %v4171_v25 = vpop.f32.mrb[0].mxu0  ;;  %v4173_v27 = vpop.f32.mrb[0].mxu1  ;;  %3070 = vmatprep.subr.bf16.mxu0 %v3069_v34 }
  0xfd   : > { %v4175_v28 = vpop.f32.mrb[1].mxu0  ;;  %2842 = vmatmul.mubr.msk.f32.gmra.mrb[106].mxu1 %vm472_vm3, %v3822_v58  ;;  %v4179_v17 = vpop.f32.mrb[1].mxu1  ;;  %v1954_v58 = vld [vmem:[%s6039_s3 + $0x180] sm:$0xff] }
  0xfe   : > { %1459 = vmatprep.mubr.f32.mxu1 %v6045_v7  ;;  %v3071_v39 = vpack.c.bf16 %v1956_v37, %v1954_v58 }
 0x100   : > { %v4188_v31 = vpop.f32.mrb[2].mxu0  ;;  %v4190_v35 = vpop.f32.mrb[2].mxu1  ;;  %3072 = vmatpush1.bf16.msra.mxu0 %v3071_v39 }
 0x101   : > { %v4198_v38 = vpop.f32.mrb[3].mxu0  ;;  %2843 = vmatmul.mubr.msk.f32.gmra.mrb[108].mxu1 %vm472_vm3, %v3831_v59  ;;  %v4202_v46 = vpop.f32.mrb[3].mxu1  ;;  %v3073_v59 = vpack.c.bf16 %v1961_v60, %v1959_v40 }
 0x102   : > { %1465 = vmatprep.mubr.f32.mxu1 %v6045_v7 }
 0x103   : > { %3074 = vmatprep.subr.bf16.mxu0 %v3073_v59 }
 0x104   : > { %v4211_v41 = vpop.f32.mrb[4].mxu0  ;;  %v4213_v42 = vpop.f32.mrb[4].mxu1  ;;  %3076 = vmatpush1.bf16.msra.mxu0 %v3075_v19 }
 0x105   : > { %v4221_v44 = vpop.f32.mrb[5].mxu0  ;;  %2844 = vmatmul.mubr.msk.f32.gmra.mrb[110].mxu1 %vm472_vm3, %v3840_v62  ;;  %v4225_v45 = vpop.f32.mrb[5].mxu1  ;;  %v3077_v62 = vpack.c.bf16 %v1965_v49, %v1963_v48 }
 0x106   : > { %1471 = vmatprep.mubr.f32.mxu1 %v6045_v7 }
 0x107   : > { %3078 = vmatprep.subr.bf16.mxu0 %v3077_v62 }
 0x108   : > { %v4234_v26 = vpop.f32.mrb[6].mxu0  ;;  %v4236_v51 = vpop.f32.mrb[6].mxu1  ;;  %3080 = vmatpush1.bf16.msra.mxu0 %v3079_v6 }
 0x109   : > { %v4244_v0 = vpop.f32.mrb[7].mxu0  ;;  %2845 = vmatmul.mubr.msk.f32.gmra.mrb[112].mxu1 %vm472_vm3, %v3450_v53  ;;  %v4248_v5 = vpop.f32.mrb[7].mxu1  ;;  %v3081_v53 = vpack.c.bf16 %v1969_v43, %v1967_v8 }
 0x10a   : > { %1477 = vmatprep.mubr.f32.mxu1 %v6045_v7 }
 0x10b   : > { %3082 = vmatprep.subr.bf16.mxu0 %v3081_v53 }
 0x10c   : > { %v4257_v9 = vpop.f32.mrb[8].mxu0  ;;  %v4259_v11 = vpop.f32.mrb[8].mxu1  ;;  %3084 = vmatpush1.bf16.msra.mxu0 %v3083_v15 }
 0x10d   : > { %v4267_v13 = vpop.f32.mrb[9].mxu0  ;;  %2846 = vmatmul.mubr.msk.f32.gmra.mrb[114].mxu1 %vm472_vm3, %v3486_v3  ;;  %v4271_v14 = vpop.f32.mrb[9].mxu1  ;;  %v3085_v3 = vpack.c.bf16 %v1973_v16, %v1971_v54  ;;  %v432_v54 = vlaneseq }
 0x10e   : > { %1483 = vmatprep.mubr.f32.mxu1 %v6045_v7 }
 0x10f   : > { %3086 = vmatprep.subr.bf16.mxu0 %v3085_v3 }
 0x110   : > { %v4280_v20 = vpop.f32.mrb[10].mxu0  ;;  %v4282_v55 = vpop.f32.mrb[10].mxu1 }
 0x111   : > { %v4284_v21 = vpop.f32.mrb[11].mxu0  ;;  %2847 = vmatmul.mubr.msk.f32.gmra.mrb[116].mxu1 %vm472_vm3, %v3522_v18  ;;  %v4288_v22 = vpop.f32.mrb[11].mxu1 }
 0x112   : > { %1489 = vmatprep.mubr.f32.mxu1 %v6045_v7 }
 0x114   : > { %v4291_v33 = vpop.f32.mrb[12].mxu0  ;;  %v4293_v52 = vpop.f32.mrb[12].mxu1 }
 0x115   : > { %v4295_v23 = vpop.f32.mrb[13].mxu0  ;;  %2848 = vmatmul.mubr.msk.f32.gmra.mrb[118].mxu1 %vm472_vm3, %v3558_v32  ;;  %v4299_v24 = vpop.f32.mrb[13].mxu1 }
 0x116   : > { %1495 = vmatprep.mubr.f32.mxu1 %v6045_v7 }
 0x118   : > { %v4302_v56 = vpop.f32.mrb[14].mxu0  ;;  %v4304_v18 = vpop.f32.mrb[14].mxu1 }
 0x119   : > { %v4306_v2 = vpop.f32.mrb[15].mxu0  ;;  %2849 = vmatmul.mubr.msk.f32.gmra.mrb[120].mxu1 %vm472_vm3, %v3594_v47  ;;  %v4310_v57 = vpop.f32.mrb[15].mxu1 }
 0x11a   : > { %1501 = vmatprep.mubr.f32.mxu1 %v6045_v7 }
 0x11c   : > { %v4313_v29 = vpop.f32.mrb[16].mxu0  ;;  %v4315_v32 = vpop.f32.mrb[16].mxu1 }
 0x11d   : > { %v4317_v30 = vpop.f32.mrb[17].mxu0  ;;  %2850 = vmatmul.mubr.msk.f32.gmra.mrb[122].mxu1 %vm472_vm3, %v3624_v61  ;;  %v4321_v34 = vpop.f32.mrb[17].mxu1 }
 0x11e   : > { %1507 = vmatprep.mubr.f32.mxu1 %v6045_v7 }
 0x120   : > { %v4324_v58 = vpop.f32.mrb[18].mxu0  ;;  %v4326_v47 = vpop.f32.mrb[18].mxu1 }
 0x121   : > { %v4328_v37 = vpop.f32.mrb[19].mxu0  ;;  %2851 = vmatmul.mubr.msk.f32.gmra.mrb[124].mxu1 %vm472_vm3, %v3640_v4  ;;  %v4332_v39 = vpop.f32.mrb[19].mxu1 }
 0x124   : > { %v4334_v40 = vpop.f32.mrb[20].mxu0  ;;  %v4336_v60 = vpop.f32.mrb[20].mxu1 }
 0x125   : > { %v4338_v61 = vpop.f32.mrb[21].mxu0  ;;  %v4340_v59 = vpop.f32.mrb[21].mxu1 }
 0x128   : > { %v4342_v1 = vpop.f32.mrb[22].mxu0  ;;  %v4344_v10 = vpop.f32.mrb[22].mxu1 }
 0x129   : > { %6116 = vst [vmem:[#allocation2_spill] sm:$0xff] %v4344_v10  ;;  %v4346_v19 = vpop.f32.mrb[23].mxu0  ;;  %v4348_v48 = vpop.f32.mrb[23].mxu1 }
 0x12a   : > { %6117 = vst [vmem:[#allocation3_spill] sm:$0xff] %v4348_v48 }
 0x12c   : > { %v4350_v49 = vpop.f32.mrb[24].mxu0  ;;  %v4352_v4 = vpop.f32.mrb[24].mxu1 }
 0x12d   : > { %6118 = vst [vmem:[#allocation4_spill] sm:$0xff] %v4350_v49  ;;  %6119 = vst [vmem:[#allocation5_spill] sm:$0xff] %v4352_v4  ;;  %v4354_v62 = vpop.f32.mrb[25].mxu0  ;;  %v4356_v63 = vpop.f32.mrb[25].mxu1 }
 0x12e   : > { %6120 = vst [vmem:[#allocation6_spill] sm:$0xff] %v4354_v62  ;;  %6121 = vst [vmem:[#allocation7_spill] sm:$0xff] %v4356_v63 }
 0x130   : > { %v4358_v36 = vpop.f32.mrb[26].mxu0  ;;  %v4360_v6 = vpop.f32.mrb[26].mxu1 }
 0x131   : > { %6122 = vst [vmem:[#allocation8_spill] sm:$0xff] %v4358_v36  ;;  %6123 = vst [vmem:[#allocation9_spill] sm:$0xff] %v4360_v6  ;;  %v4362_v8 = vpop.f32.mrb[27].mxu0  ;;  %v4364_v43 = vpop.f32.mrb[27].mxu1 }
 0x132   : > { %6124 = vst [vmem:[#allocation10_spill] sm:$0xff] %v4362_v8  ;;  %6125 = vst [vmem:[#allocation11_spill] sm:$0xff] %v4364_v43  ;;  %v4382_v8 = vshrl.u32 %v432_v54, 7 }
 0x134   : > { %v4366_v53 = vpop.f32.mrb[28].mxu0  ;;  %v4368_v50 = vpop.f32.mrb[28].mxu1  ;;  %v446_v36 = vsub.s32 3, %v4382_v8 }
 0x135   : > { %6126 = vst [vmem:[#allocation12_spill] sm:$0xff] %v4366_v53  ;;  %6127 = vst [vmem:[#allocation13_spill] sm:$0xff] %v4368_v50  ;;  %v4370_v12 = vpop.f32.mrb[29].mxu0  ;;  %v4372_v15 = vpop.f32.mrb[29].mxu1 }
 0x136   : > { %6128 = vst [vmem:[#allocation14_spill] sm:$0xff] %v4370_v12  ;;  %6129 = vst [vmem:[#allocation15_spill] sm:$0xff] %v4372_v15  ;;  %v434_v15 = vsub.s32 0, %v4382_v8 }
 0x138   : > { %v4374_v16 = vpop.f32.mrb[30].mxu0  ;;  %v4376_v3 = vpop.f32.mrb[30].mxu1 }
 0x139   : > { %6130 = vst [vmem:[#allocation16_spill] sm:$0xff] %v4374_v16  ;;  %6131 = vst [vmem:[#allocation17_spill] sm:$0xff] %v4376_v3  ;;  %v4378_v7 = vpop.f32.mrb[31].mxu0  ;;  %v4380_v6 = vpop.f32.mrb[31].mxu1  ;;  %v4396_v3 = vld [vmem:[%s6038_s2] sm:$0xff]  ;;  %v442_v16 = vsub.s32 2, %v4382_v8 }
 0x13a   : > { %6132 = vst [vmem:[#allocation18_spill] sm:$0xff] %v4378_v7  ;;  %6133 = vst [vmem:[#allocation19_spill] sm:$0xff] %v4380_v6  ;;  %v438_v7 = vsub.s32 1, %v4382_v8 }
 0x13c   : > { %v4384_v43 = vpop.f32.mrb[32].mxu0  ;;  %v4386_v53 = vpop.f32.mrb[32].mxu1 }
 0x13d   : > { %6134 = vst [vmem:[#allocation20_spill] sm:$0xff] %v4384_v43  ;;  %6135 = vst [vmem:[#allocation21_spill] sm:$0xff] %v4386_v53  ;;  %v4388_v50 = vpop.f32.mrb[33].mxu0  ;;  %v4390_v12 = vpop.f32.mrb[33].mxu1 }
 0x13e   : > { %6136 = vst [vmem:[#allocation22_spill] sm:$0xff] %v4388_v50  ;;  %6137 = vst [vmem:[#allocation23_spill] sm:$0xff] %v4390_v12  ;;  %v4408_v50 = vrot.slane %v4396_v3, %v434_v15  ;;  %v4411_v12 = vrot.slane %v4396_v3, %v438_v7  ;;  %v454_v15 = vsub.s32 5, %v4382_v8 }
 0x140   : > { %v4399_v6 = vpop.f32.mrb[34].mxu0  ;;  %v4401_v54 = vpop.f32.mrb[34].mxu1  ;;  %v4427_v7 = vadd.f32 %v4171_v25, %v4408_v50  ;;  %v4447_v25 = vadd.f32 %v4190_v35, %v4408_v50 }
 0x141   : > { %6138 = vst [vmem:[#allocation24_spill] sm:$0xff] %v4399_v6  ;;  %6139 = vst [vmem:[#allocation25_spill] sm:$0xff] %v4401_v54  ;;  %v4403_v43 = vpop.f32.mrb[35].mxu0  ;;  %v4405_v53 = vpop.f32.mrb[35].mxu1 }
 0x142   : > { %6140 = vst [vmem:[#allocation26_spill] sm:$0xff] %v4403_v43  ;;  %6141 = vst [vmem:[#allocation27_spill] sm:$0xff] %v4405_v53  ;;  %v450_v53 = vsub.s32 4, %v4382_v8  ;;  %v4431_v43 = vadd.f32 %v4175_v28, %v4411_v12  ;;  %v4453_v28 = vrot.slane %v4396_v3, %v446_v36  ;;  %v4475_v36 = vrot.slane %v4396_v3, %v454_v15 }
 0x143   : > { %6148 = vst [vmem:[#allocation34_spill] sm:$0xff] %v4447_v25  ;;  %v4492_v15 = vadd.f32 %v4221_v44, %v4411_v12  ;;  %v4509_v44 = vadd.f32 %v4234_v26, %v4408_v50 }
 0x144   : > { %v4415_v63 = vpop.f32.mrb[36].mxu0  ;;  %v4417_v4 = vpop.f32.mrb[36].mxu1  ;;  %6149 = vst [vmem:[#allocation35_spill] sm:$0xff] %v4453_v28 }
 0x145   : > { %6142 = vst [vmem:[#allocation28_spill] sm:$0xff] %v4415_v63  ;;  %6143 = vst [vmem:[#allocation29_spill] sm:$0xff] %v4417_v4  ;;  %v4419_v6 = vpop.f32.mrb[37].mxu0  ;;  %v4421_v54 = vpop.f32.mrb[37].mxu1  ;;  %v4435_v63 = vadd.f32 %v4173_v27, %v4408_v50  ;;  %v4439_v4 = vadd.f32 %v4179_v17, %v4411_v12  ;;  %v4461_v17 = vadd.f32 %v4198_v38, %v4411_v12 }
 0x146   : > { %6144 = vst [vmem:[#allocation30_spill] sm:$0xff] %v4419_v6  ;;  %6145 = vst [vmem:[#allocation31_spill] sm:$0xff] %v4421_v54  ;;  %v4443_v54 = vadd.f32 %v4188_v31, %v4408_v50  ;;  %v4450_v6 = vrot.slane %v4396_v3, %v442_v16  ;;  %v4465_v31 = vadd.f32 %v4202_v46, %v4411_v12 }
 0x147   : > { %6146 = vst [vmem:[#allocation32_spill] sm:$0xff] %v4435_v63  ;;  %6147 = vst [vmem:[#allocation33_spill] sm:$0xff] %v4439_v4  ;;  %v4472_v16 = vrot.slane %v4396_v3, %v450_v53  ;;  %v4480_v38 = vadd.f32 %v4211_v41, %v4408_v50  ;;  %v4484_v46 = vadd.f32 %v4213_v42, %v4408_v50 }
 0x148   : > { %v4455_v27 = vpop.f32.mrb[38].mxu0  ;;  %v4457_v62 = vpop.f32.mrb[38].mxu1  ;;  %6152 = vst [vmem:[#allocation38_spill] sm:$0xff] %v4465_v31  ;;  %v4498_v42 = vadd.f32 %v4225_v45, %v4411_v12  ;;  %v4513_v41 = vadd.f32 %v4236_v51, %v4408_v50  ;;  %v4531_v51 = vadd.f32 %v4257_v9, %v4408_v50  ;;  %v4548_v53 = vadd.f32 %v4271_v14, %v4411_v12 }
 0x149   : > { %6150 = vst [vmem:[#allocation36_spill] sm:$0xff] %v4455_v27  ;;  %6151 = vst [vmem:[#allocation37_spill] sm:$0xff] %v4457_v62  ;;  %v4467_v35 = vpop.f32.mrb[39].mxu0  ;;  %v4469_v49 = vpop.f32.mrb[39].mxu1  ;;  %v1514_v62 = vmax.f32 %v4427_v7, 0.0 }
 0x14a   : > { %6153 = vst [vmem:[#allocation39_spill] sm:$0xff] %v4467_v35  ;;  %6154 = vst [vmem:[#allocation40_spill] sm:$0xff] %v4469_v49  ;;  %v458_v35 = vsub.s32 6, %v4382_v8  ;;  %v1515_v49 = vmax.f32 %v4431_v43, 0.0  ;;  %v462_v43 = vsub.s32 7, %v4382_v8  ;;  %v4522_v8 = vadd.f32 %v4244_v0, %v4411_v12 }
 0x14b   : > { %6155 = vst [vmem:[#allocation41_spill] sm:$0xff] %v4484_v46  ;;  %6156 = vst [vmem:[#allocation42_spill] sm:$0xff] %v4498_v42  ;;  %v4559_v0 = vadd.f32 %v4280_v20, %v4408_v50  ;;  %v4577_v20 = vld [vmem:[%s6039_s3 + $0x200] sm:$0xff]  ;;  %v4626_v46 = vld [vmem:[%s6039_s3 + $0x230] sm:$0xff] }
 0x14c   : > { %v4500_v48 = vpop.f32.mrb[40].mxu0  ;;  %v4502_v10 = vpop.f32.mrb[40].mxu1  ;;  %6158 = vst [vmem:[#allocation44_spill] sm:$0xff] %v4513_v41  ;;  %v4526_v27 = vrot.slane %v4396_v3, %v458_v35  ;;  %v4544_v35 = vadd.f32 %v4267_v13, %v4411_v12  ;;  %6162 = vst [vmem:[#allocation48_spill] sm:$0xff] %v4548_v53 }
 0x14d   : > { %6157 = vst [vmem:[#allocation43_spill] sm:$0xff] %v4502_v10  ;;  %v4515_v45 = vpop.f32.mrb[41].mxu0  ;;  %v4517_v7 = vpop.f32.mrb[41].mxu1  ;;  %v4539_v10 = vadd.f32 %v4259_v11, %v4408_v50  ;;  %6171 = vst [vmem:[#allocation57_spill] sm:$0xff] %v4626_v46  ;;  %v4725_v46 = vld [vmem:[%s6039_s3 + $0x278] sm:$0xff] }
 0x14e   : > { %6159 = vst [vmem:[#allocation45_spill] sm:$0xff] %v4517_v7  ;;  %v4535_v7 = vadd.f32 %v4248_v5, %v4411_v12  ;;  %v4553_v5 = vrot.slane %v4396_v3, %v462_v43  ;;  %v4571_v3 = vadd.f32 %v4282_v55, %v4408_v50  ;;  %6183 = vst [vmem:[#allocation66_spill] sm:$0xff] %v4725_v46  ;;  %v4841_v46 = vld [vmem:[%s6039_s3 + $0x2b8] sm:$0xff] }
 0x14f   : > { %6161 = vst [vmem:[#allocation47_spill] sm:$0xff] %v4539_v10  ;;  %6201 = vst [vmem:[#allocation80_spill] sm:$0xff] %v4841_v46 }
 0x150   : > { %6160 = vst [vmem:[#allocation46_spill] sm:$0xff] %v4535_v7  ;;  %v1114_v9 = vpop.f32.mrb[42].mxu0  ;;  %v4550_v26 = vpop.f32.mrb[42].mxu1  ;;  %6165 = vst [vmem:[#allocation51_spill] sm:$0xff] %v4571_v3 }
 0x151   : > { %6163 = vst [vmem:[#allocation49_spill] sm:$0xff] %v4550_v26  ;;  %v1115_v13 = vadd.f32 %v1114_v9, %v4472_v16  ;;  %v1116_v42 = vpop.f32.mrb[43].mxu0  ;;  %v4562_v31 = vpop.f32.mrb[43].mxu1  ;;  %v4567_v26 = vadd.f32 %v4284_v21, %v4411_v12  ;;  %v4582_v9 = vld [vmem:[%s6039_s3 + $0x210] sm:$0xff] }
 0x152   : > { %6164 = vst [vmem:[#allocation50_spill] sm:$0xff] %v4562_v31  ;;  %v1117_v43 = vadd.f32 %v1116_v42, %v4475_v36  ;;  %v4591_v31 = vadd.f32 %v4288_v22, %v4411_v12  ;;  %v4606_v22 = vld [vmem:[%s6039_s3 + $0x228] sm:$0xff]  ;;  %v4621_v42 = vld [vmem:[%s6039_s3 + $0x220] sm:$0xff] }
 0x153   : > { %v1518_v55 = vmax.f32 %v1115_v13, 0.0  ;;  %6169 = vst [vmem:[#allocation55_spill] sm:$0xff] %v4606_v22  ;;  %6170 = vst [vmem:[#allocation56_spill] sm:$0xff] %v4621_v42 }
 0x154   : > { %6166 = vst [vmem:[#allocation52_spill] sm:$0xff] %v4591_v31  ;;  %v1519_v41 = vmax.f32 %v1117_v43, 0.0  ;;  %v1120_v25 = vpop.f32.mrb[44].mxu0  ;;  %v4593_v4 = vpop.f32.mrb[44].mxu1  ;;  %v4611_v43 = vld [vmem:[%s6039_s3 + $0x238] sm:$0xff] }
 0x155   : > { %6167 = vst [vmem:[#allocation53_spill] sm:$0xff] %v4593_v4  ;;  %v4596_v11 = vmax.f32 %v1514_v62, %v1518_v55  ;;  %v1121_v21 = vadd.f32 %v1120_v25, %v4472_v16  ;;  %v1122_v14 = vpop.f32.mrb[45].mxu0  ;;  %v4599_v13 = vpop.f32.mrb[45].mxu1  ;;  %v4643_v62 = vadd.f32 %v4299_v24, %v4411_v12 }
 0x156   : > { %6168 = vst [vmem:[#allocation54_spill] sm:$0xff] %v4599_v13  ;;  %v4615_v55 = vmax.f32 %v1515_v49, %v1519_v41  ;;  %v1123_v63 = vadd.f32 %v1122_v14, %v4475_v36  ;;  %v4630_v13 = vadd.f32 %v4291_v33, %v4408_v50  ;;  %v4634_v49 = vadd.f32 %v4295_v23, %v4411_v12  ;;  %v4665_v33 = vld [vmem:[%s6039_s3 + $0x248] sm:$0xff] }
 0x157   : > { %v4638_v41 = vadd.f32 %v4293_v52, %v4408_v50  ;;  %v1526_v14 = vmax.f32 %v1121_v21, 0.0  ;;  %6173 = vst [vmem:[#allocation59_spill] sm:$0xff] %v4643_v62  ;;  %v4651_v23 = vadd.f32 %v4302_v56, %v4408_v50  ;;  %v6175_v52 = vmax.f32 %v4443_v54, 0.0  ;;  %v4670_v56 = vld [vmem:[%s6039_s3 + $0x258] sm:$0xff] }
 0x158   : > { %v1527_v4 = vmax.f32 %v1123_v63, 0.0  ;;  %v1126_v3 = vpop.f32.mrb[46].mxu0  ;;  %v4645_v53 = vpop.f32.mrb[46].mxu1  ;;  %v4674_v54 = vadd.f32 %v4306_v2, %v4411_v12  ;;  %v4693_v2 = vld [vmem:[%s6039_s3 + $0x250] sm:$0xff] }
 0x159   : > { %6172 = vst [vmem:[#allocation58_spill] sm:$0xff] %v4638_v41  ;;  %6174 = vst [vmem:[#allocation60_spill] sm:$0xff] %v4645_v53  ;;  %v4655_v21 = vmax.f32 %v6175_v52, %v1526_v14  ;;  %v1127_v25 = vadd.f32 %v1126_v3, %v4472_v16  ;;  %v1128_v31 = vpop.f32.mrb[47].mxu0  ;;  %v4658_v24 = vpop.f32.mrb[47].mxu1  ;;  %v4678_v3 = vadd.f32 %v4304_v18, %v4450_v6  ;;  %v6177_v14 = vmax.f32 %v4461_v17, 0.0  ;;  %v4737_v53 = vld [vmem:[%s6039_s3 + $0x260] sm:$0xff] }
 0x15a   : > { %6176 = vst [vmem:[#allocation61_spill] sm:$0xff] %v4658_v24  ;;  %v1129_v63 = vadd.f32 %v1128_v31, %v4475_v36  ;;  %v4688_v24 = vld [vmem:[%s6039_s3 + $0x240] sm:$0xff]  ;;  %v4701_v31 = vadd.f32 %v4310_v57, %v4453_v28  ;;  %v6180_v18 = vmax.f32 %v4480_v38, 0.0  ;;  %6185 = vst [vmem:[#allocation67_spill] sm:$0xff] %v4737_v53  ;;  %v4746_v38 = vadd.f32 %v4313_v29, %v4408_v50  ;;  %v4781_v29 = vld [vmem:[%s6039_s3 + $0x288] sm:$0xff] }
 0x15b   : > { %v4682_v52 = vmax.f32 %v6177_v14, %v1527_v4  ;;  %6178 = vst [vmem:[#allocation62_spill] sm:$0xff] %v4688_v24  ;;  %v1534_v4 = vmax.f32 %v1127_v25, 0.0  ;;  %6190 = vst [vmem:[#allocation71_spill] sm:$0xff] %v4781_v29 }
 0x15c   : > { %v1535_v10 = vmax.f32 %v1129_v63, 0.0  ;;  %v1132_v7 = vpop.f32.mrb[48].mxu0  ;;  %v4703_v42 = vpop.f32.mrb[48].mxu1  ;;  %v4720_v63 = vld [vmem:[%s6039_s3 + $0x268] sm:$0xff] }
 0x15d   : > { %6179 = vst [vmem:[#allocation63_spill] sm:$0xff] %v4703_v42  ;;  %v4710_v22 = vmax.f32 %v6180_v18, %v1534_v4  ;;  %v1133_v25 = vadd.f32 %v1132_v7, %v4472_v16  ;;  %v1134_v14 = vpop.f32.mrb[49].mxu0  ;;  %v4713_v17 = vpop.f32.mrb[49].mxu1  ;;  %6182 = vst [vmem:[#allocation65_spill] sm:$0xff] %v4720_v63  ;;  %v6184_v18 = vmax.f32 %v4492_v15, 0.0  ;;  %v4754_v15 = vadd.f32 %v4315_v32, %v4450_v6 }
 0x15e   : > { %6181 = vst [vmem:[#allocation64_spill] sm:$0xff] %v4713_v17  ;;  %v1135_v57 = vadd.f32 %v1134_v14, %v4475_v36  ;;  %v4742_v17 = vld [vmem:[%s6039_s3 + $0x270] sm:$0xff]  ;;  %v4759_v7 = vadd.f32 %v4321_v34, %v4453_v28  ;;  %v6188_v32 = vmax.f32 %v4509_v44, 0.0  ;;  %v4790_v44 = vadd.f32 %v4328_v37, %v4411_v12 }
 0x15f   : > { %v4731_v4 = vmax.f32 %v6184_v18, %v1535_v10  ;;  %6186 = vst [vmem:[#allocation68_spill] sm:$0xff] %v4742_v17  ;;  %v4750_v10 = vadd.f32 %v4317_v30, %v4411_v12  ;;  %v1542_v14 = vmax.f32 %v1133_v25, 0.0  ;;  %v4767_v30 = vadd.f32 %v4324_v58, %v4408_v50  ;;  %v4786_v58 = vld [vmem:[%s6039_s3 + $0x298] sm:$0xff]  ;;  %v4809_v37 = vld [vmem:[%s6039_s3 + $0x290] sm:$0xff] }
 0x160   : > { %v1543_v42 = vmax.f32 %v1135_v57, 0.0  ;;  %v1138_v62 = vpop.f32.mrb[50].mxu0  ;;  %v4761_v41 = vpop.f32.mrb[50].mxu1  ;;  %6191 = vst [vmem:[#allocation72_spill] sm:$0xff] %v4786_v58  ;;  %6195 = vst [vmem:[#allocation75_spill] sm:$0xff] %v4809_v37 }
 0x161   : > { %6187 = vst [vmem:[#allocation69_spill] sm:$0xff] %v4761_v41  ;;  %v4771_v25 = vmax.f32 %v6188_v32, %v1542_v14  ;;  %v1139_v18 = vadd.f32 %v1138_v62, %v4472_v16  ;;  %v1140_v24 = vpop.f32.mrb[51].mxu0  ;;  %v4774_v34 = vpop.f32.mrb[51].mxu1  ;;  %v4794_v62 = vadd.f32 %v4326_v47, %v4450_v6  ;;  %v6192_v14 = vmax.f32 %v4522_v8, 0.0  ;;  %v4853_v41 = vld [vmem:[%s6039_s3 + $0x2a0] sm:$0xff] }
 0x162   : > { %6189 = vst [vmem:[#allocation70_spill] sm:$0xff] %v4774_v34  ;;  %v1141_v57 = vadd.f32 %v1140_v24, %v4475_v36  ;;  %v4804_v34 = vld [vmem:[%s6039_s3 + $0x280] sm:$0xff]  ;;  %v4817_v24 = vadd.f32 %v4332_v39, %v4453_v28  ;;  %v6197_v47 = vmax.f32 %v4531_v51, 0.0  ;;  %6204 = vst [vmem:[#allocation82_spill] sm:$0xff] %v4853_v41  ;;  %v4862_v51 = vadd.f32 %v4334_v40, %v4408_v50  ;;  %v4897_v40 = vld [vmem:[%s6039_s3 + $0x2c8] sm:$0xff] }
 0x163   : > { %v4798_v32 = vmax.f32 %v6192_v14, %v1543_v42  ;;  %6194 = vst [vmem:[#allocation74_spill] sm:$0xff] %v4804_v34  ;;  %v1550_v42 = vmax.f32 %v1139_v18, 0.0  ;;  %6210 = vst [vmem:[#allocation87_spill] sm:$0xff] %v4897_v40  ;;  %v4969_v41 = vld [vmem:[%s6039_s3 + $0x2e0] sm:$0xff] }
 0x164   : > { %v1551_v53 = vmax.f32 %v1141_v57, 0.0  ;;  %v1144_v17 = vpop.f32.mrb[52].mxu0  ;;  %v4819_v63 = vpop.f32.mrb[52].mxu1  ;;  %v4836_v57 = vld [vmem:[%s6039_s3 + $0x2a8] sm:$0xff]  ;;  %6228 = vst [vmem:[#allocation98_spill] sm:$0xff] %v4969_v41  ;;  %v5036_v41 = vld [vmem:[%s6039_s3 + $0x300] sm:$0xff] }
 0x165   : > { %6193 = vst [vmem:[#allocation73_spill] sm:$0xff] %v4798_v32  ;;  %6196 = vst [vmem:[#allocation76_spill] sm:$0xff] %v4819_v63  ;;  %v4826_v32 = vmax.f32 %v6197_v47, %v1550_v42  ;;  %v1145_v18 = vadd.f32 %v1144_v17, %v4472_v16  ;;  %v1146_v14 = vpop.f32.mrb[53].mxu0  ;;  %v4829_v8 = vpop.f32.mrb[53].mxu1  ;;  %v6202_v47 = vmax.f32 %v4544_v35, 0.0  ;;  %v4870_v35 = vadd.f32 %v4336_v60, %v4450_v6 }
 0x166   : > { %6199 = vst [vmem:[#allocation78_spill] sm:$0xff] %v4829_v8  ;;  %6200 = vst [vmem:[#allocation79_spill] sm:$0xff] %v4836_v57  ;;  %v1147_v39 = vadd.f32 %v1146_v14, %v4475_v36  ;;  %v4858_v8 = vld [vmem:[%s6039_s3 + $0x2b0] sm:$0xff]  ;;  %v4875_v17 = vadd.f32 %v4340_v59, %v4453_v28  ;;  %v6207_v60 = vmax.f32 %v4559_v0, 0.0  ;;  %v4906_v0 = vadd.f32 %v4346_v19, %v4411_v12 }
 0x167   : > { %6198 = vst [vmem:[#allocation77_spill] sm:$0xff] %v4826_v32  ;;  %v4847_v42 = vmax.f32 %v6202_v47, %v1551_v53  ;;  %6205 = vst [vmem:[#allocation83_spill] sm:$0xff] %v4858_v8  ;;  %v4866_v53 = vadd.f32 %v4338_v61, %v4411_v12  ;;  %v1558_v14 = vmax.f32 %v1145_v18, 0.0  ;;  %v4883_v61 = vadd.f32 %v4342_v1, %v4408_v50  ;;  %v4902_v1 = vld [vmem:[%s6039_s3 + $0x2d8] sm:$0xff]  ;;  %v4925_v19 = vld [vmem:[%s6039_s3 + $0x2d0] sm:$0xff] }
 0x168   : > { %v1559_v63 = vmax.f32 %v1147_v39, 0.0  ;;  %v1150_v34 = vpop.f32.mrb[54].mxu0  ;;  %v4877_v37 = vpop.f32.mrb[54].mxu1  ;;  %6211 = vst [vmem:[#allocation88_spill] sm:$0xff] %v4902_v1  ;;  %6217 = vst [vmem:[#allocation91_spill] sm:$0xff] %v4925_v19  ;;  %v6234_v19 = vld [vmem:[#allocation7_spill] sm:$0xff] }
 0x169   : > { %6203 = vst [vmem:[#allocation81_spill] sm:$0xff] %v4847_v42  ;;  %6206 = vst [vmem:[#allocation84_spill] sm:$0xff] %v4877_v37  ;;  %v4887_v18 = vmax.f32 %v6207_v60, %v1558_v14  ;;  %v1151_v47 = vadd.f32 %v1150_v34, %v4472_v16  ;;  %v1152_v29 = vpop.f32.mrb[55].mxu0  ;;  %v4890_v59 = vpop.f32.mrb[55].mxu1  ;;  %v6212_v34 = vld [vmem:[#allocation2_spill] sm:$0xff]  ;;  %v6214_v60 = vmax.f32 %v4567_v26, 0.0  ;;  %v4991_v40 = vadd.f32 %v6234_v19, %v4453_v28 }
 0x16a   : > { %6209 = vst [vmem:[#allocation86_spill] sm:$0xff] %v4890_v59  ;;  %v4910_v14 = vadd.f32 %v6212_v34, %v4450_v6  ;;  %v1153_v59 = vadd.f32 %v1152_v29, %v4475_v36  ;;  %v4920_v37 = vld [vmem:[%s6039_s3 + $0x2c0] sm:$0xff]  ;;  %v6218_v29 = vld [vmem:[#allocation3_spill] sm:$0xff]  ;;  %v6221_v34 = vmax.f32 %v4630_v13, 0.0  ;;  %v6230_v13 = vld [vmem:[#allocation4_spill] sm:$0xff] }
 0x16b   : > { %6208 = vst [vmem:[#allocation85_spill] sm:$0xff] %v4887_v18  ;;  %v4914_v39 = vmax.f32 %v6214_v60, %v1559_v63  ;;  %6216 = vst [vmem:[#allocation90_spill] sm:$0xff] %v4920_v37  ;;  %v1566_v63 = vmax.f32 %v1151_v47, 0.0  ;;  %v4933_v8 = vadd.f32 %v6218_v29, %v4453_v28  ;;  %v4952_v29 = vld [vmem:[%s6039_s3 + $0x2e8] sm:$0xff]  ;;  %v4957_v18 = vld [vmem:[%s6039_s3 + $0x2f8] sm:$0xff] }
 0x16c   : > { %6213 = vst [vmem:[#allocation2_spill] sm:$0xff] %v4910_v14  ;;  %v1567_v57 = vmax.f32 %v1153_v59, 0.0  ;;  %v1156_v46 = vpop.f32.mrb[56].mxu0  ;;  %6224 = vst [vmem:[#allocation95_spill] sm:$0xff] %v4952_v29 }
 0x16d   : > { %6215 = vst [vmem:[#allocation89_spill] sm:$0xff] %v4914_v39  ;;  %6219 = vst [vmem:[#allocation3_spill] sm:$0xff] %v4933_v8  ;;  %v4935_v39 = vpop.f32.mrb[56].mxu1  ;;  %v4942_v58 = vmax.f32 %v6221_v34, %v1566_v63  ;;  %v1157_v47 = vadd.f32 %v1156_v46, %v4472_v16  ;;  %v1158_v60 = vpop.f32.mrb[57].mxu0  ;;  %v6226_v34 = vmax.f32 %v4634_v49, 0.0  ;;  %v6231_v49 = vld [vmem:[#allocation6_spill] sm:$0xff] }
 0x16e   : > { %6220 = vst [vmem:[#allocation92_spill] sm:$0xff] %v4935_v39  ;;  %v4945_v26 = vpop.f32.mrb[57].mxu1  ;;  %6225 = vst [vmem:[#allocation96_spill] sm:$0xff] %v4957_v18  ;;  %v1159_v59 = vadd.f32 %v1158_v60, %v4475_v36  ;;  %v4978_v39 = vadd.f32 %v6230_v13, %v4408_v50  ;;  %v6232_v60 = vld [vmem:[#allocation5_spill] sm:$0xff]  ;;  %v5013_v13 = vld [vmem:[%s6039_s3 + $0x308] sm:$0xff] }
 0x16f   : > { %6222 = vst [vmem:[#allocation93_spill] sm:$0xff] %v4942_v58  ;;  %6223 = vst [vmem:[#allocation94_spill] sm:$0xff] %v4945_v26  ;;  %v4963_v63 = vmax.f32 %v6226_v34, %v1567_v57  ;;  %v4974_v26 = vld [vmem:[%s6039_s3 + $0x2f0] sm:$0xff]  ;;  %v4982_v57 = vadd.f32 %v6231_v49, %v4411_v12  ;;  %v4986_v34 = vadd.f32 %v6232_v60, %v4450_v6  ;;  %v1574_v46 = vmax.f32 %v1157_v47, 0.0  ;;  %v5073_v8 = vld [vmem:[%s6039_s3 + $0x338] sm:$0xff] }
 0x170   : > { %6229 = vst [vmem:[#allocation99_spill] sm:$0xff] %v4974_v26  ;;  %6235 = vst [vmem:[#allocation6_spill] sm:$0xff] %v4991_v40  ;;  %v1575_v1 = vmax.f32 %v1159_v59, 0.0  ;;  %v4993_v58 = vpop.f32.mrb[58].mxu1  ;;  %v6237_v49 = vld [vmem:[#allocation8_spill] sm:$0xff]  ;;  %v6238_v60 = vmax.f32 %v4651_v23, 0.0 }
 0x171   : > { %6227 = vst [vmem:[#allocation97_spill] sm:$0xff] %v4963_v63  ;;  %6233 = vst [vmem:[#allocation4_spill] sm:$0xff] %v4986_v34  ;;  %v1162_v63 = vpop.f32.mrb[58].mxu0  ;;  %v4999_v42 = vadd.f32 %v6237_v49, %v4408_v50  ;;  %v5006_v19 = vpop.f32.mrb[59].mxu1  ;;  %v5018_v49 = vld [vmem:[%s6039_s3 + $0x318] sm:$0xff]  ;;  %v6243_v23 = vld [vmem:[#allocation10_spill] sm:$0xff] }
 0x172   : > { %6236 = vst [vmem:[#allocation5_spill] sm:$0xff] %v4993_v58  ;;  %v5003_v47 = vmax.f32 %v6238_v60, %v1574_v46  ;;  %v1163_v37 = vadd.f32 %v1162_v63, %v4472_v16  ;;  %v1164_v32 = vpop.f32.mrb[59].mxu0  ;;  %6240 = vst [vmem:[#allocation8_spill] sm:$0xff] %v5006_v19  ;;  %v5022_v46 = vadd.f32 %v6243_v23, %v4411_v12  ;;  %v6244_v63 = vld [vmem:[#allocation9_spill] sm:$0xff]  ;;  %v6246_v59 = vmax.f32 %v4674_v54, 0.0  ;;  %v5041_v23 = vld [vmem:[%s6039_s3 + $0x310] sm:$0xff] }
 0x173   : > { %6241 = vst [vmem:[#allocation100_spill] sm:$0xff] %v5013_v13  ;;  %6242 = vst [vmem:[#allocation101_spill] sm:$0xff] %v5018_v49  ;;  %v5026_v60 = vadd.f32 %v6244_v63, %v4450_v6  ;;  %v1165_v58 = vadd.f32 %v1164_v32, %v4475_v36  ;;  %v6250_v32 = vld [vmem:[#allocation11_spill] sm:$0xff]  ;;  %v6253_v63 = vmax.f32 %v4746_v38, 0.0  ;;  %v5085_v26 = vld [vmem:[%s6039_s3 + $0x320] sm:$0xff] }
 0x174   : > { %6239 = vst [vmem:[#allocation7_spill] sm:$0xff] %v5003_v47  ;;  %v5030_v19 = vmax.f32 %v6246_v59, %v1575_v1  ;;  %6248 = vst [vmem:[#allocation102_spill] sm:$0xff] %v5036_v41  ;;  %v1582_v1 = vmax.f32 %v1163_v37, 0.0  ;;  %v5049_v29 = vadd.f32 %v6250_v32, %v4453_v28  ;;  %v5051_v47 = vpop.f32.mrb[60].mxu1  ;;  %v5068_v32 = vld [vmem:[%s6039_s3 + $0x328] sm:$0xff]  ;;  %v6262_v38 = vld [vmem:[#allocation12_spill] sm:$0xff] }
 0x175   : > { %6245 = vst [vmem:[#allocation10_spill] sm:$0xff] %v5026_v60  ;;  %6249 = vst [vmem:[#allocation103_spill] sm:$0xff] %v5041_v23  ;;  %v1583_v18 = vmax.f32 %v1165_v58, 0.0  ;;  %v5061_v54 = vpop.f32.mrb[61].mxu1  ;;  %v6266_v23 = vld [vmem:[#allocation15_spill] sm:$0xff] }
 0x176   : > { %6247 = vst [vmem:[#allocation9_spill] sm:$0xff] %v5030_v19  ;;  %6251 = vst [vmem:[#allocation11_spill] sm:$0xff] %v5049_v29  ;;  %v1168_v19 = vpop.f32.mrb[60].mxu0  ;;  %v5058_v14 = vmax.f32 %v6253_v63, %v1582_v1  ;;  %v6258_v63 = vmax.f32 %v4750_v10, 0.0  ;;  %v6263_v10 = vld [vmem:[#allocation14_spill] sm:$0xff]  ;;  %v5107_v13 = vadd.f32 %v6266_v23, %v4453_v28 }
 0x177   : > { %6252 = vst [vmem:[#allocation104_spill] sm:$0xff] %v5051_v47  ;;  %v1169_v37 = vadd.f32 %v1168_v19, %v4472_v16  ;;  %v1170_v59 = vpop.f32.mrb[61].mxu0  ;;  %6255 = vst [vmem:[#allocation106_spill] sm:$0xff] %v5061_v54  ;;  %v5090_v54 = vld [vmem:[%s6039_s3 + $0x330] sm:$0xff]  ;;  %v5094_v47 = vadd.f32 %v6262_v38, %v4408_v50  ;;  %v6274_v38 = vld [vmem:[#allocation17_spill] sm:$0xff] }
 0x178   : > { %6254 = vst [vmem:[#allocation105_spill] sm:$0xff] %v5058_v14  ;;  %6256 = vst [vmem:[#allocation107_spill] sm:$0xff] %v5068_v32  ;;  %v5079_v1 = vmax.f32 %v6258_v63, %v1583_v18  ;;  %v1171_v58 = vadd.f32 %v1170_v59, %v4475_v36  ;;  %v5098_v18 = vadd.f32 %v6263_v10, %v4411_v12  ;;  %v6264_v59 = vld [vmem:[#allocation13_spill] sm:$0xff]  ;;  %v5109_v14 = vpop.f32.mrb[62].mxu1  ;;  %v6269_v10 = vld [vmem:[#allocation16_spill] sm:$0xff] }
 0x179   : > { %6257 = vst [vmem:[#allocation108_spill] sm:$0xff] %v5073_v8  ;;  %6260 = vst [vmem:[#allocation110_spill] sm:$0xff] %v5085_v26  ;;  %v5102_v63 = vadd.f32 %v6264_v59, %v4450_v6  ;;  %v1590_v19 = vmax.f32 %v1169_v37, 0.0  ;;  %v5115_v60 = vadd.f32 %v6269_v10, %v4408_v50  ;;  %v6270_v59 = vmax.f32 %v4767_v30, 0.0  ;;  %v5122_v23 = vpop.f32.mrb[63].mxu1 }
 0x17a   : > { %6259 = vst [vmem:[#allocation109_spill] sm:$0xff] %v5079_v1  ;;  %6261 = vst [vmem:[#allocation111_spill] sm:$0xff] %v5090_v54  ;;  %v1591_v49 = vmax.f32 %v1171_v58, 0.0  ;;  %v1174_v1 = vpop.f32.mrb[62].mxu0  ;;  %v5132_v10 = vadd.f32 %v6274_v38, %v4450_v6  ;;  %v6276_v30 = vmax.f32 %v4790_v44, 0.0  ;;  %v6278_v54 = vld [vmem:[#allocation20_spill] sm:$0xff] }
 0x17b   : > { %6265 = vst [vmem:[#allocation12_spill] sm:$0xff] %v5102_v63  ;;  %6267 = vst [vmem:[#allocation14_spill] sm:$0xff] %v5107_v13  ;;  %v5119_v37 = vmax.f32 %v6270_v59, %v1590_v19  ;;  %v1175_v41 = vadd.f32 %v1174_v1, %v4472_v16  ;;  %v1176_v29 = vpop.f32.mrb[63].mxu0  ;;  %v5145_v32 = vadd.f32 %v6278_v54, %v4408_v50  ;;  %v6279_v38 = vld [vmem:[#allocation19_spill] sm:$0xff] }
 0x17c   : > { %6268 = vst [vmem:[#allocation13_spill] sm:$0xff] %v5109_v14  ;;  %6272 = vst [vmem:[#allocation16_spill] sm:$0xff] %v5122_v23  ;;  %v6273_v14 = vld [vmem:[#allocation18_spill] sm:$0xff]  ;;  %v5136_v19 = vmax.f32 %v6276_v30, %v1591_v49  ;;  %v1177_v1 = vadd.f32 %v1176_v29, %v4475_v36  ;;  %v5149_v44 = vadd.f32 %v6279_v38, %v4453_v28  ;;  %v1180_v30 = vpop.f32.mrb[64].mxu0  ;;  %v5151_v29 = vpop.f32.mrb[64].mxu1  ;;  %v6282_v23 = vld [vmem:[#allocation21_spill] sm:$0xff] }
 0x17d   : > { %6271 = vst [vmem:[#allocation15_spill] sm:$0xff] %v5119_v37  ;;  %v5128_v40 = vadd.f32 %v6273_v14, %v4411_v12  ;;  %6275 = vst [vmem:[#allocation18_spill] sm:$0xff] %v5132_v10  ;;  %v1598_v26 = vmax.f32 %v1175_v41, 0.0  ;;  %v5156_v58 = vadd.f32 %v6282_v23, %v4450_v6  ;;  %v6284_v41 = vmax.f32 %v4862_v51, 0.0  ;;  %v1182_v8 = vpop.f32.mrb[65].mxu0  ;;  %v6289_v37 = vld [vmem:[#allocation22_spill] sm:$0xff] }
 0x17e   : > { %6277 = vst [vmem:[#allocation17_spill] sm:$0xff] %v5136_v19  ;;  %6280 = vst [vmem:[#allocation20_spill] sm:$0xff] %v5149_v44  ;;  %v1599_v49 = vmax.f32 %v1177_v1, 0.0  ;;  %v1181_v54 = vadd.f32 %v1180_v30, %v4472_v16  ;;  %v5163_v19 = vpop.f32.mrb[65].mxu1  ;;  %v1183_v23 = vadd.f32 %v1182_v8, %v4475_v36  ;;  %v5174_v51 = vadd.f32 %v6289_v37, %v4411_v12 }
 0x17f   : > { %6281 = vst [vmem:[#allocation19_spill] sm:$0xff] %v5151_v29  ;;  %6283 = vst [vmem:[#allocation21_spill] sm:$0xff] %v5156_v58  ;;  %v5160_v14 = vmax.f32 %v6284_v41, %v1598_v26  ;;  %v6287_v29 = vmax.f32 %v4866_v53, 0.0  ;;  %v6290_v26 = vld [vmem:[#allocation24_spill] sm:$0xff]  ;;  %v6291_v41 = vld [vmem:[#allocation23_spill] sm:$0xff] }
 0x180   : > { %6286 = vst [vmem:[#allocation113_spill] sm:$0xff] %v5163_v19  ;;  %v5178_v30 = vadd.f32 %v6290_v26, %v4408_v50  ;;  %v5182_v19 = vadd.f32 %v6291_v41, %v4453_v28  ;;  %v1606_v1 = vmax.f32 %v1181_v54, 0.0  ;;  %v1186_v37 = vpop.f32.mrb[66].mxu0  ;;  %v6296_v26 = vld [vmem:[#allocation26_spill] sm:$0xff]  ;;  %v6297_v54 = vmax.f32 %v4883_v61, 0.0  ;;  %v6306_v58 = vld [vmem:[#allocation36_spill] sm:$0xff] }
 0x181   : > { %6285 = vst [vmem:[#allocation112_spill] sm:$0xff] %v5160_v14  ;;  %v5169_v59 = vmax.f32 %v6287_v29, %v1599_v49  ;;  %v6293_v49 = vld [vmem:[#allocation25_spill] sm:$0xff]  ;;  %v1607_v29 = vmax.f32 %v1183_v23, 0.0  ;;  %v5194_v14 = vadd.f32 %v6296_v26, %v4411_v12  ;;  %v1187_v53 = vadd.f32 %v1186_v37, %v4472_v16  ;;  %v1188_v38 = vpop.f32.mrb[67].mxu0  ;;  %v6300_v23 = vld [vmem:[#allocation28_spill] sm:$0xff]  ;;  %v6309_v37 = vld [vmem:[#allocation39_spill] sm:$0xff] }
 0x182   : > { %6292 = vst [vmem:[#allocation22_spill] sm:$0xff] %v5182_v19  ;;  %v5188_v8 = vadd.f32 %v6293_v49, %v4450_v6  ;;  %v5199_v10 = vmax.f32 %v6297_v54, %v1606_v1  ;;  %v5206_v49 = vadd.f32 %v6300_v23, %v4408_v50  ;;  %v6303_v26 = vmax.f32 %v4906_v0, 0.0  ;;  %v6305_v23 = vld [vmem:[#allocation30_spill] sm:$0xff] }
 0x183   : > { %6288 = vst [vmem:[#allocation114_spill] sm:$0xff] %v5169_v59  ;;  %v5190_v59 = vpop.f32.mrb[66].mxu1  ;;  %v1189_v61 = vadd.f32 %v1188_v38, %v4475_v36  ;;  %v5227_v0 = vadd.f32 %v6306_v58, %v4408_v50  ;;  %v5234_v54 = vadd.f32 %v6309_v37, %v4411_v12  ;;  %v2391_v58 = vld [vmem:[%s6042_s6 + $0x18] sm:$0xff] }
 0x184   : > { %6294 = vst [vmem:[#allocation24_spill] sm:$0xff] %v5188_v8  ;;  %6295 = vst [vmem:[#allocation23_spill] sm:$0xff] %v5190_v59  ;;  %v5202_v44 = vpop.f32.mrb[67].mxu1  ;;  %v6301_v59 = vld [vmem:[#allocation27_spill] sm:$0xff]  ;;  %v5214_v41 = vmax.f32 %v6303_v26, %v1607_v29  ;;  %v1192_v26 = vpop.f32.mrb[68].mxu0 }
 0x185   : > { %6298 = vst [vmem:[#allocation25_spill] sm:$0xff] %v5199_v10  ;;  %6299 = vst [vmem:[#allocation26_spill] sm:$0xff] %v5202_v44  ;;  %v5210_v13 = vadd.f32 %v6301_v59, %v4453_v28  ;;  %v1614_v44 = vmax.f32 %v1187_v53, 0.0  ;;  %v5222_v10 = vadd.f32 %v6305_v23, %v4411_v12  ;;  %v1615_v29 = vmax.f32 %v1189_v61, 0.0  ;;  %v5229_v38 = vpop.f32.mrb[68].mxu1 }
 0x186   : > { %6304 = vst [vmem:[#allocation27_spill] sm:$0xff] %v5214_v41  ;;  %6307 = vst [vmem:[#allocation30_spill] sm:$0xff] %v5227_v0  ;;  %v6311_v53 = vmax.f32 %v4978_v39, 0.0  ;;  %v1193_v59 = vadd.f32 %v1192_v26, %v4472_v16  ;;  %v1194_v41 = vpop.f32.mrb[69].mxu0  ;;  %v5241_v8 = vpop.f32.mrb[69].mxu1  ;;  %v5252_v39 = vadd.f32 %v4500_v48, %v4408_v50  ;;  %v2390_v48 = vld [vmem:[%s6042_s6 + $0x10] sm:$0xff] }
 0x187   : > { %6302 = vst [vmem:[#allocation28_spill] sm:$0xff] %v5210_v13  ;;  %6308 = vst [vmem:[#allocation36_spill] sm:$0xff] %v5229_v38  ;;  %v6314_v38 = vmax.f32 %v4982_v57, 0.0  ;;  %v1195_v37 = vadd.f32 %v1194_v41, %v4475_v36  ;;  %v2388_v57 = vld [vmem:[%s6042_s6] sm:$0xff]  ;;  %v2389_v41 = vld [vmem:[%s6042_s6 + $0x8] sm:$0xff]  ;;  %v6321_v28 = vmov 0.0|0.0  }
 0x188   : > { %6310 = vst [vmem:[#allocation39_spill] sm:$0xff] %v5234_v54  ;;  %v5238_v23 = vmax.f32 %v6311_v53, %v1614_v44  ;;  %6313 = vst [vmem:[#allocation116_spill] sm:$0xff] %v5241_v8  ;;  %v5256_v44 = vadd.f32 %v4515_v45, %v4411_v12  ;;  %v1622_v26 = vmax.f32 %v1193_v59, 0.0  ;;  %v5261_v53 = vld [vmem:[%s6039_s3 + $0x348] sm:$0xff]  ;;  %v1198_v59 = vpop.f32.mrb[70].mxu0  ;;  %v3150_v61 = vpack.c.bf16 %v2389_v41, %v2388_v57  ;;  %v5288_v57 = vld [vmem:[%s6039_s3 + $0x358] sm:$0xff] }
 0x189   : > { %v5247_v1 = vmax.f32 %v6314_v38, %v1615_v29  ;;  %v1623_v45 = vmax.f32 %v1195_v37, 0.0  ;;  %v1347_v29 = vpop.f32.mrb[70].mxu1  ;;  %v6103_v38 = vmov 0.0|0.0   ;;  %v1199_v50 = vadd.f32 %v1198_v59, %v4472_v16  ;;  %v1200_v12 = vpop.f32.mrb[71].mxu0  ;;  %v5293_v41 = vld [vmem:[%s6039_s3 + $0x340] sm:$0xff] }
 0x18a   : > { %6312 = vst [vmem:[#allocation115_spill] sm:$0xff] %v5238_v23  ;;  %3149 = vmatprep.subr.bf16.mxu1 %v6103_v38  ;;  %v1348_v37 = vadd.f32 %v1347_v29, %v4526_v27  ;;  %v1349_v13 = vpop.f32.mrb[71].mxu1  ;;  %6318 = vst [vmem:[#allocation119_spill] sm:$0xff] %v5293_v41  ;;  %v1201_v59 = vadd.f32 %v1200_v12, %v4475_v36  ;;  %v3153_v8 = vpack.c.bf16 %v2391_v58, %v2390_v48  ;;  %v2392_v58 = vld [vmem:[%s6042_s6 + $0x20] sm:$0xff] }
 0x18b   : > { %6315 = vst [vmem:[#allocation117_spill] sm:$0xff] %v5247_v1  ;;  %v6316_v1 = vmax.f32 %v4999_v42, 0.0  ;;  %v5298_v42 = vld [vmem:[%s6039_s3 + $0x350] sm:$0xff]  ;;  %v1350_v29 = vadd.f32 %v1349_v13, %v4553_v5  ;;  %3151 = vmatpush1.bf16.msra.mxu1 %v3150_v61  ;;  %v1630_v19 = vmax.f32 %v1199_v50, 0.0  ;;  %v2393_v61 = vld [vmem:[%s6042_s6 + $0x28] sm:$0xff]  ;;  %v6322_v48 = vmax.f32 %v5094_v47, 0.0 }
 0x18c   : > { %v1520_v63 = vmax.f32 %v1348_v37, 0.0  ;;  %3152 = vmatprep.subr.bf16.mxu1 %v6321_v28  ;;  %v1631_v54 = vmax.f32 %v1201_v59, 0.0  ;;  %v1204_v0 = vpop.f32.mrb[72].mxu0  ;;  %v6323_v12 = vmax.f32 %v4678_v3, 0.0  ;;  %v5335_v47 = vld [vmem:[%s6039_s3 + $0x378] sm:$0xff]  ;;  %v6325_v3 = vmax.f32 %v5098_v18, 0.0 }
 0x18d   : > { %v5281_v23 = vmax.f32 %v6316_v1, %v1622_v26  ;;  %v6319_v1 = vmax.f32 %v5022_v46, 0.0  ;;  %v1521_v34 = vmax.f32 %v1350_v29, 0.0  ;;  %v1353_v46 = vpop.f32.mrb[72].mxu1  ;;  %v1794_v50 = vmax.f32 %v6322_v48, %v1630_v19  ;;  %v1206_v29 = vpop.f32.mrb[73].mxu0 }
 0x18e   : > { %v5323_v37 = vmax.f32 %v6323_v12, %v1520_v63  ;;  %v1354_v59 = vadd.f32 %v1353_v46, %v4526_v27  ;;  %v1355_v13 = vpop.f32.mrb[73].mxu1  ;;  %v1795_v63 = vmax.f32 %v6325_v3, %v1631_v54  ;;  %v6326_v19 = vmax.f32 %v4701_v31, 0.0  ;;  %v5367_v3 = vld [vmem:[%s6039_s3 + $0x360] sm:$0xff] }
 0x18f   : > { %6317 = vst [vmem:[#allocation118_spill] sm:$0xff] %v5281_v23  ;;  %v5302_v26 = vmax.f32 %v6319_v1, %v1623_v45  ;;  %v1205_v1 = vadd.f32 %v1204_v0, %v4472_v16  ;;  %v5330_v45 = vld [vmem:[%s6039_s3 + $0x368] sm:$0xff]  ;;  %v1207_v46 = vadd.f32 %v1206_v29, %v4475_v36  ;;  %v1356_v48 = vadd.f32 %v1355_v13, %v4553_v5 }
 0x190   : > { %6324 = vst [vmem:[#allocation121_spill] sm:$0xff] %v5323_v37  ;;  %v5341_v0 = vmax.f32 %v6326_v19, %v1521_v34  ;;  %3154 = vmatpush1.bf16.msra.mxu1 %v3153_v8  ;;  %v1850_v12 = vmax.f32 %v4596_v11, %v1794_v50  ;;  %v1528_v38 = vmax.f32 %v1354_v59, 0.0  ;;  %v3156_v37 = vpack.c.bf16 %v2393_v61, %v2392_v58  ;;  %v1210_v18 = vpop.f32.mrb[74].mxu0  ;;  %v1359_v54 = vpop.f32.mrb[74].mxu1  ;;  %v2394_v8 = vld [vmem:[%s6042_s6 + $0x30] sm:$0xff]  ;;  %v2395_v11 = vld [vmem:[%s6042_s6 + $0x38] sm:$0xff] }
 0x191   : > { %6320 = vst [vmem:[#allocation120_spill] sm:$0xff] %v5302_v26  ;;  %v1638_v23 = vmax.f32 %v1205_v1, 0.0  ;;  %3155 = vmatprep.subr.bf16.mxu1 %v6321_v28  ;;  %v1639_v26 = vmax.f32 %v1207_v46, 0.0  ;;  %v1529_v41 = vmax.f32 %v1356_v48, 0.0  ;;  %v1851_v31 = vmax.f32 %v4615_v55, %v1795_v63  ;;  %v1212_v59 = vpop.f32.mrb[75].mxu0  ;;  %v1361_v29 = vpop.f32.mrb[75].mxu1 }
 0x192   : > { %v6327_v13 = vmax.f32 %v5115_v60, 0.0  ;;  %v6328_v61 = vmax.f32 %v4754_v15, 0.0  ;;  %v1211_v55 = vadd.f32 %v1210_v18, %v4472_v16  ;;  %v1360_v1 = vadd.f32 %v1359_v54, %v4526_v27  ;;  %v5372_v60 = vld [vmem:[%s6039_s3 + $0x370] sm:$0xff] }
 0x193   : > { %v6329_v15 = vmax.f32 %v5128_v40, 0.0  ;;  %v1213_v19 = vadd.f32 %v1212_v59, %v4475_v36  ;;  %v1362_v46 = vadd.f32 %v1361_v29, %v4553_v5  ;;  %2098 = vmatprep.mubr.f32.mxu0 %v1851_v31  ;;  %v6331_v40 = vpack.c.bf16 %v4582_v9, %v4577_v20  ;;  %v5410_v29 = vld [vmem:[%s6039_s3 + $0x388] sm:$0xff] }
 0x194   : > { %v1798_v58 = vmax.f32 %v6327_v13, %v1638_v23  ;;  %v5360_v50 = vmax.f32 %v6328_v61, %v1528_v38  ;;  %v6330_v38 = vmax.f32 %v4759_v7, 0.0  ;;  %v1646_v48 = vmax.f32 %v1211_v55, 0.0  ;;  %2099 = vmatmul.mubr.f32.vlgmr.msra.gmra.mrb[98].mxu0 %v1850_v12  ;;  %3157 = vmatpush1.bf16.msra.mxu1 %v3156_v37  ;;  %v1216_v7 = vpop.f32.mrb[76].mxu0  ;;  %v2397_v37 = vld [vmem:[%s6042_s6 + $0x48] sm:$0xff] }
 0x195   : > { %v1799_v23 = vmax.f32 %v6329_v15, %v1639_v26  ;;  %v1536_v18 = vmax.f32 %v1360_v1, 0.0  ;;  %v3159_v13 = vpack.c.bf16 %v2395_v11, %v2394_v8  ;;  %v1647_v61 = vmax.f32 %v1213_v19, 0.0  ;;  %3088 = vmatpush1.bf16.msra.mxu0 %v6331_v40  ;;  %3158 = vmatprep.subr.bf16.mxu1 %v6321_v28  ;;  %v6334_v1 = vld [vmem:[#allocation55_spill] sm:$0xff] }
 0x196   : > { %v5378_v63 = vmax.f32 %v6330_v38, %v1529_v41  ;;  %v1854_v54 = vmax.f32 %v4655_v21, %v1798_v58  ;;  %v1537_v34 = vmax.f32 %v1362_v46, 0.0  ;;  %v1365_v41 = vpop.f32.mrb[76].mxu1  ;;  %v2396_v21 = vld [vmem:[%s6042_s6 + $0x40] sm:$0xff]  ;;  %v6332_v20 = vmax.f32 %v5145_v32, 0.0  ;;  %v1218_v58 = vpop.f32.mrb[77].mxu0 }
 0x197   : > { %v1855_v26 = vmax.f32 %v4682_v52, %v1799_v23  ;;  %v6333_v12 = vmax.f32 %v4794_v62, 0.0  ;;  %v1217_v52 = vadd.f32 %v1216_v7, %v4472_v16  ;;  %v1366_v11 = vadd.f32 %v1365_v41, %v4526_v27  ;;  %v1367_v55 = vpop.f32.mrb[77].mxu1  ;;  %v5415_v62 = vld [vmem:[%s6039_s3 + $0x398] sm:$0xff] }
 0x198   : > { %v1802_v9 = vmax.f32 %v6332_v20, %v1646_v48  ;;  %v6335_v59 = vpack.c.bf16 %v4611_v43, %v6334_v1  ;;  %v6336_v32 = vmax.f32 %v5174_v51, 0.0  ;;  %v6337_v23 = vmax.f32 %v4817_v24, 0.0  ;;  %3160 = vmatpush1.bf16.msra.mxu1 %v3159_v13  ;;  %v6338_v51 = vld [vmem:[#allocation57_spill] sm:$0xff]  ;;  %v1222_v24 = vpop.f32.mrb[78].mxu0  ;;  %v5453_v1 = vld [vmem:[%s6039_s3 + $0x380] sm:$0xff] }
 0x199   : > { %v5400_v8 = vmax.f32 %v6333_v12, %v1536_v18  ;;  %v1219_v43 = vadd.f32 %v1218_v58, %v4475_v36  ;;  %v1368_v19 = vadd.f32 %v1367_v55, %v4553_v5  ;;  %2104 = vmatprep.mubr.f32.mxu0 %v1855_v26  ;;  %v1654_v46 = vmax.f32 %v1217_v52, 0.0  ;;  %3161 = vmatprep.subr.bf16.mxu1 %v6321_v28  ;;  %v6432_v26 = vld [vmem:[#allocation41_spill] sm:$0xff] }
 0x19a   : > { %3090 = vmatprep.subr.bf16.mxu0 %v6335_v59  ;;  %v1803_v15 = vmax.f32 %v6336_v32, %v1647_v61  ;;  %v5421_v38 = vmax.f32 %v6337_v23, %v1537_v34  ;;  %v1544_v48 = vmax.f32 %v1366_v11, 0.0  ;;  %2105 = vmatmul.mubr.f32.gmra.mrb[100].mxu0 %v1854_v54  ;;  %v1858_v18 = vmax.f32 %v4710_v22, %v1802_v9  ;;  %v6339_v61 = vld [vmem:[#allocation56_spill] sm:$0xff]  ;;  %v1371_v34 = vpop.f32.mrb[78].mxu1  ;;  %v2399_v54 = vld [vmem:[%s6042_s6 + $0x58] sm:$0xff]  ;;  %v1224_v11 = vpop.f32.mrb[79].mxu0 }
 0x19b   : > { %v3162_v40 = vpack.c.bf16 %v2397_v37, %v2396_v21  ;;  %v1655_v7 = vmax.f32 %v1219_v43, 0.0  ;;  %v1545_v41 = vmax.f32 %v1368_v19, 0.0  ;;  %v6340_v20 = vpack.c.bf16 %v6338_v51, %v6339_v61  ;;  %v2398_v22 = vld [vmem:[%s6042_s6 + $0x50] sm:$0xff]  ;;  %v1373_v58 = vpop.f32.mrb[79].mxu1  ;;  %v6348_v61 = vld [vmem:[#allocation73_spill] sm:$0xff] }
 0x19c   : > { %v1859_v12 = vmax.f32 %v4731_v4, %v1803_v15  ;;  %v6341_v13 = vmax.f32 %v5178_v30, 0.0  ;;  %v6342_v37 = vmax.f32 %v4870_v35, 0.0  ;;  %v1223_v4 = vadd.f32 %v1222_v24, %v4472_v16  ;;  %v5458_v35 = vld [vmem:[%s6039_s3 + $0x390] sm:$0xff] }
 0x19d   : > { %3092 = vmatpush1.bf16.msra.mxu0 %v6340_v20  ;;  %v1372_v52 = vadd.f32 %v1371_v34, %v4526_v27  ;;  %v6343_v55 = vpack.c.bf16 %v4670_v56, %v4665_v33  ;;  %v6344_v30 = vmax.f32 %v5194_v14, 0.0  ;;  %v6345_v32 = vmax.f32 %v4875_v17, 0.0  ;;  %3163 = vmatpush1.bf16.msra.mxu1 %v3162_v40  ;;  %v6346_v14 = vld [vmem:[#allocation62_spill] sm:$0xff]  ;;  %v1228_v17 = vpop.f32.mrb[80].mxu0  ;;  %v6423_v24 = vld [vmem:[#allocation20_spill] sm:$0xff] }
 0x19e   : > { %v1806_v21 = vmax.f32 %v6341_v13, %v1654_v46  ;;  %v5443_v9 = vmax.f32 %v6342_v37, %v1544_v48  ;;  %v1225_v33 = vadd.f32 %v1224_v11, %v4475_v36  ;;  %v1374_v56 = vadd.f32 %v1373_v58, %v4553_v5  ;;  %2110 = vmatprep.mubr.f32.mxu0 %v1859_v12  ;;  %v6350_v34 = vld [vmem:[#allocation2_spill] sm:$0xff] }
 0x19f   : > { %3094 = vmatprep.subr.bf16.mxu0 %v6343_v55  ;;  %v1807_v59 = vmax.f32 %v6344_v30, %v1655_v7  ;;  %v5464_v15 = vmax.f32 %v6345_v32, %v1545_v41  ;;  %v1662_v23 = vmax.f32 %v1223_v4, 0.0  ;;  %v1552_v43 = vmax.f32 %v1372_v52, 0.0  ;;  %2111 = vmatmul.mubr.f32.gmra.mrb[102].mxu0 %v1858_v18  ;;  %v1377_v41 = vpop.f32.mrb[80].mxu1  ;;  %v2401_v18 = vld [vmem:[%s6042_s6 + $0x68] sm:$0xff]  ;;  %v6352_v4 = vld [vmem:[#allocation66_spill] sm:$0xff]  ;;  %v6353_v52 = vld [vmem:[#allocation65_spill] sm:$0xff] }
 0x1a0   : > { %v1862_v19 = vmax.f32 %v4771_v25, %v1806_v21  ;;  %v3165_v46 = vpack.c.bf16 %v2399_v54, %v2398_v22  ;;  %v1663_v48 = vmax.f32 %v1225_v33, 0.0  ;;  %v1553_v51 = vmax.f32 %v1374_v56, 0.0  ;;  %3164 = vmatprep.subr.bf16.mxu1 %v6321_v28  ;;  %v2400_v25 = vld [vmem:[%s6042_s6 + $0x60] sm:$0xff]  ;;  %v1230_v21 = vpop.f32.mrb[81].mxu0  ;;  %v1379_v37 = vpop.f32.mrb[81].mxu1  ;;  %v6356_v30 = vld [vmem:[#allocation3_spill] sm:$0xff] }
 0x1a1   : > { %v6347_v7 = vpack.c.bf16 %v4693_v2, %v6346_v14  ;;  %v1863_v20 = vmax.f32 %v6348_v61, %v1807_v59  ;;  %v6349_v2 = vmax.f32 %v5206_v49, 0.0  ;;  %v6351_v12 = vmax.f32 %v6350_v34, 0.0  ;;  %v6361_v61 = vld [vmem:[#allocation67_spill] sm:$0xff]  ;;  %v1234_v34 = vpop.f32.mrb[82].mxu0 }
 0x1a2   : > { %v1229_v54 = vadd.f32 %v1228_v17, %v4472_v16  ;;  %v1378_v13 = vadd.f32 %v1377_v41, %v4526_v27  ;;  %v6354_v11 = vpack.c.bf16 %v6352_v4, %v6353_v52  ;;  %v6355_v58 = vmax.f32 %v5222_v10, 0.0  ;;  %3166 = vmatpush1.bf16.msra.mxu1 %v3165_v46  ;;  %v6359_v17 = vld [vmem:[#allocation29_spill] sm:$0xff] }
 0x1a3   : > { %3096 = vmatpush1.bf16.msra.mxu0 %v6347_v7  ;;  %v1810_v40 = vmax.f32 %v6349_v2, %v1662_v23  ;;  %v5486_v22 = vmax.f32 %v6351_v12, %v1552_v43  ;;  %v6357_v49 = vmax.f32 %v6356_v30, 0.0  ;;  %v1231_v32 = vadd.f32 %v1230_v21, %v4475_v36  ;;  %2116 = vmatprep.mubr.f32.mxu0 %v1863_v20  ;;  %v6358_v43 = vld [vmem:[#allocation77_spill] sm:$0xff]  ;;  %v1383_v12 = vpop.f32.mrb[82].mxu1  ;;  %v6369_v30 = vld [vmem:[#allocation71_spill] sm:$0xff] }
 0x1a4   : > { %3098 = vmatprep.subr.bf16.mxu0 %v6354_v11  ;;  %v1811_v55 = vmax.f32 %v6355_v58, %v1663_v48  ;;  %v1380_v33 = vadd.f32 %v1379_v37, %v4553_v5  ;;  %v1670_v56 = vmax.f32 %v1229_v54, 0.0  ;;  %v1560_v23 = vmax.f32 %v1378_v13, 0.0  ;;  %2117 = vmatmul.mubr.f32.gmra.mrb[104].mxu0 %v1862_v19  ;;  %v6363_v20 = vld [vmem:[#allocation81_spill] sm:$0xff]  ;;  %v2402_v19 = vld [vmem:[%s6042_s6 + $0x70] sm:$0xff]  ;;  %v1236_v11 = vpop.f32.mrb[83].mxu0  ;;  %v1385_v58 = vpop.f32.mrb[83].mxu1 }
 0x1a5   : > { %v5497_v59 = vmax.f32 %v6357_v49, %v1553_v51  ;;  %v1866_v14 = vmax.f32 %v6358_v43, %v1810_v40  ;;  %v3168_v7 = vpack.c.bf16 %v2401_v18, %v2400_v25  ;;  %v5504_v10 = vadd.f32 %v6359_v17, %v4450_v6  ;;  %v6360_v51 = vld [vmem:[#allocation68_spill] sm:$0xff]  ;;  %3167 = vmatprep.subr.bf16.mxu1 %v6321_v28  ;;  %v2403_v46 = vld [vmem:[%s6042_s6 + $0x78] sm:$0xff]  ;;  %v6364_v25 = vld [vmem:[#allocation30_spill] sm:$0xff] }
 0x1a6   : > { %v1671_v48 = vmax.f32 %v1231_v32, 0.0  ;;  %v1561_v41 = vmax.f32 %v1380_v33, 0.0  ;;  %v6362_v2 = vpack.c.bf16 %v6360_v51, %v6361_v61  ;;  %v1867_v54 = vmax.f32 %v6363_v20, %v1811_v55  ;;  %v6366_v13 = vld [vmem:[#allocation4_spill] sm:$0xff]  ;;  %v6371_v32 = vld [vmem:[#allocation39_spill] sm:$0xff]  ;;  %v6373_v17 = vld [vmem:[#allocation6_spill] sm:$0xff] }
 0x1a7   : > { %v6365_v18 = vmax.f32 %v6364_v25, 0.0  ;;  %v6367_v21 = vmax.f32 %v6366_v13, 0.0  ;;  %v1235_v4 = vadd.f32 %v1234_v34, %v4472_v16  ;;  %v1384_v52 = vadd.f32 %v1383_v12, %v4526_v27  ;;  %v6368_v55 = vld [vmem:[#allocation72_spill] sm:$0xff]  ;;  %v6375_v12 = vld [vmem:[#allocation85_spill] sm:$0xff]  ;;  %3169 = vmatpush1.bf16.msra.mxu1 %v3168_v7 }
 0x1a8   : > { %3100 = vmatpush1.bf16.msra.mxu0 %v6362_v2  ;;  %v6370_v49 = vpack.c.bf16 %v6368_v55, %v6369_v30  ;;  %v6372_v33 = vmax.f32 %v6371_v32, 0.0  ;;  %v6374_v51 = vmax.f32 %v6373_v17, 0.0  ;;  %v1386_v61 = vadd.f32 %v1385_v58, %v4553_v5  ;;  %2122 = vmatprep.mubr.f32.mxu0 %v1867_v54  ;;  %v1389_v58 = vpop.f32.mrb[84].mxu1  ;;  %v6379_v54 = vld [vmem:[#allocation89_spill] sm:$0xff]  ;;  %v6384_v17 = vld [vmem:[#allocation79_spill] sm:$0xff] }
 0x1a9   : > { %v1814_v40 = vmax.f32 %v6365_v18, %v1670_v56  ;;  %v5521_v37 = vmax.f32 %v6367_v21, %v1560_v23  ;;  %v1237_v23 = vadd.f32 %v1236_v11, %v4475_v36  ;;  %v1678_v2 = vmax.f32 %v1235_v4, 0.0  ;;  %2123 = vmatmul.mubr.f32.gmra.mrb[106].mxu0 %v1866_v14  ;;  %v6377_v21 = vld [vmem:[#allocation74_spill] sm:$0xff]  ;;  %v1240_v11 = vpop.f32.mrb[84].mxu0  ;;  %3170 = vmatprep.subr.bf16.mxu1 %v6321_v28 }
 0x1aa   : > { %3102 = vmatprep.subr.bf16.mxu0 %v6370_v49  ;;  %v1815_v43 = vmax.f32 %v6372_v33, %v1671_v48  ;;  %v5532_v56 = vmax.f32 %v6374_v51, %v1561_v41  ;;  %v1568_v34 = vmax.f32 %v1384_v52, 0.0  ;;  %v3171_v25 = vpack.c.bf16 %v2403_v46, %v2402_v19  ;;  %v2405_v48 = vld [vmem:[%s6042_s6 + $0x88] sm:$0xf]  ;;  %v2404_v14 = vld [vmem:[%s6042_s6 + $0x80] sm:$0xff]  ;;  %v1242_v32 = vpop.f32.mrb[85].mxu0  ;;  %v1391_v33 = vpop.f32.mrb[85].mxu1 }
 0x1ab   : > { %v1870_v20 = vmax.f32 %v6375_v12, %v1814_v40  ;;  %v1679_v18 = vmax.f32 %v1237_v23, 0.0  ;;  %v1569_v13 = vmax.f32 %v1386_v61, 0.0  ;;  %v6376_v41 = vld [vmem:[#allocation75_spill] sm:$0xff]  ;;  %v6380_v7 = vmax.f32 %v5252_v39, 0.0  ;;  %v6381_v46 = vld [vmem:[#allocation10_spill] sm:$0xff] }
 0x1ac   : > { %v6378_v55 = vpack.c.bf16 %v6376_v41, %v6377_v21  ;;  %v1871_v4 = vmax.f32 %v6379_v54, %v1815_v43  ;;  %v6382_v40 = vmax.f32 %v6381_v46, 0.0  ;;  %v1241_v30 = vadd.f32 %v1240_v11, %v4472_v16  ;;  %v6383_v43 = vld [vmem:[#allocation80_spill] sm:$0xff]  ;;  %v6387_v12 = vld [vmem:[#allocation11_spill] sm:$0xff]  ;;  %v6389_v11 = vld [vmem:[#allocation93_spill] sm:$0xff]  ;;  %3172 = vmatpush1.bf16.msra.mxu1 %v3171_v25 }
 0x1ad   : > { %v1818_v19 = vmax.f32 %v6380_v7, %v1678_v2  ;;  %v1390_v49 = vadd.f32 %v1389_v58, %v4526_v27  ;;  %v6385_v51 = vpack.c.bf16 %v6383_v43, %v6384_v17  ;;  %v6386_v23 = vmax.f32 %v5256_v44, 0.0  ;;  %v6390_v7 = vld [vmem:[#allocation35_spill] sm:$0xff]  ;;  %v6393_v43 = vld [vmem:[#allocation82_spill] sm:$0xff]  ;;  %3173 = vmatprep.subr.bf16.mxu1 %v6321_v28  ;;  %v6398_v25 = vld [vmem:[#allocation32_spill] sm:$0xff] }
 0x1ae   : > { %3104 = vmatpush1.bf16.msra.mxu0 %v6378_v55  ;;  %v5552_v52 = vmax.f32 %v6382_v40, %v1568_v34  ;;  %v6388_v39 = vmax.f32 %v6387_v12, 0.0  ;;  %v1243_v34 = vadd.f32 %v1242_v32, %v4475_v36  ;;  %v1392_v41 = vadd.f32 %v1391_v33, %v4553_v5  ;;  %2128 = vmatprep.mubr.f32.mxu0 %v1871_v4  ;;  %v6391_v46 = vld [vmem:[#allocation31_spill] sm:$0xff]  ;;  %v1246_v32 = vpop.f32.mrb[86].mxu0  ;;  %v1395_v33 = vpop.f32.mrb[86].mxu1  ;;  %v6395_v4 = vld [vmem:[#allocation97_spill] sm:$0xff] }
 0x1af   : > { %3106 = vmatprep.subr.bf16.mxu0 %v6385_v51  ;;  %v1819_v61 = vmax.f32 %v6386_v23, %v1679_v18  ;;  %v1686_v21 = vmax.f32 %v1241_v30, 0.0  ;;  %v1576_v55 = vmax.f32 %v1390_v49, 0.0  ;;  %2129 = vmatmul.mubr.f32.gmra.mrb[108].mxu0 %v1870_v20  ;;  %v1874_v58 = vmax.f32 %v6389_v11, %v1818_v19  ;;  %v6400_v19 = vld [vmem:[#allocation12_spill] sm:$0xff] }
 0x1b0   : > { %v5563_v2 = vmax.f32 %v6388_v39, %v1569_v13  ;;  %v3174_v54 = vpack.c.bf16 %v2405_v48, %v2404_v14  ;;  %v5570_v44 = vadd.f32 %v6391_v46, %v6390_v7  ;;  %v1687_v18 = vmax.f32 %v1243_v34, 0.0  ;;  %v6392_v13 = vld [vmem:[#allocation83_spill] sm:$0xff]  ;;  %v1397_v39 = vpop.f32.mrb[87].mxu1  ;;  %v6402_v34 = vld [vmem:[#allocation88_spill] sm:$0xff]  ;;  %v6405_v46 = vld [vmem:[#allocation33_spill] sm:$0xff] }
 0x1b1   : > { %v1577_v40 = vmax.f32 %v1392_v41, 0.0  ;;  %v6394_v17 = vpack.c.bf16 %v6392_v13, %v6393_v43  ;;  %v1875_v30 = vmax.f32 %v6395_v4, %v1819_v61  ;;  %v6399_v48 = vmax.f32 %v6398_v25, 0.0  ;;  %v1248_v61 = vpop.f32.mrb[87].mxu0  ;;  %v6403_v41 = vld [vmem:[#allocation87_spill] sm:$0xff] }
 0x1b2   : > { %v6401_v49 = vmax.f32 %v6400_v19, 0.0  ;;  %v1247_v23 = vadd.f32 %v1246_v32, %v4472_v16  ;;  %v1396_v12 = vadd.f32 %v1395_v33, %v4526_v27  ;;  %v6404_v11 = vpack.c.bf16 %v6402_v34, %v6403_v41  ;;  %v6409_v19 = vld [vmem:[#allocation7_spill] sm:$0xff]  ;;  %3176 = vmatpush1.bf16.msk.msra.mxu1 %vm5579_vm5, %v3174_v54 }
 0x1b3   : > { %3108 = vmatpush1.bf16.msra.mxu0 %v6394_v17  ;;  %v1822_v14 = vmax.f32 %v6399_v48, %v1686_v21  ;;  %v6406_v13 = vmax.f32 %v6405_v46, 0.0  ;;  %v6407_v17 = vld [vmem:[#allocation14_spill] sm:$0xff]  ;;  %v1398_v25 = vadd.f32 %v1397_v39, %v4553_v5  ;;  %2134 = vmatprep.mubr.f32.mxu0 %v1875_v30  ;;  %v6410_v41 = vld [vmem:[#allocation91_spill] sm:$0xff]  ;;  %v1252_v39 = vpop.f32.mrb[88].mxu0  ;;  %v1401_v30 = vpop.f32.mrb[88].mxu1  ;;  %v6413_v46 = vld [vmem:[#allocation9_spill] sm:$0xff] }
 0x1b4   : > { %v5587_v51 = vmax.f32 %v6401_v49, %v1576_v55  ;;  %3110 = vmatprep.subr.bf16.mxu0 %v6404_v11  ;;  %v6408_v4 = vmax.f32 %v6407_v17, 0.0  ;;  %v1249_v55 = vadd.f32 %v1248_v61, %v4475_v36  ;;  %v1694_v33 = vmax.f32 %v1247_v23, 0.0  ;;  %2135 = vmatmul.mubr.f32.gmra.mrb[110].mxu0 %v1874_v58  ;;  %v6411_v11 = vld [vmem:[#allocation90_spill] sm:$0xff] }
 0x1b5   : > { %v1823_v43 = vmax.f32 %v6406_v13, %v1687_v18  ;;  %v1584_v48 = vmax.f32 %v1396_v12, 0.0  ;;  %v1878_v49 = vmax.f32 %v6409_v19, %v1822_v14  ;;  %v6412_v61 = vpack.c.bf16 %v6410_v41, %v6411_v11  ;;  %3177 = vmatprep.subr.bf16.mxu1 %v6321_v28  ;;  %v6414_v58 = vld [vmem:[#allocation34_spill] sm:$0xff]  ;;  %v6418_v19 = vld [vmem:[#allocation96_spill] sm:$0xff]  ;;  %v6419_v41 = vld [vmem:[#allocation95_spill] sm:$0xff] }
 0x1b6   : > { %v5598_v21 = vmax.f32 %v6408_v4, %v1577_v40  ;;  %v1695_v34 = vmax.f32 %v1249_v55, 0.0  ;;  %v1585_v40 = vmax.f32 %v1398_v25, 0.0  ;;  %v6415_v23 = vmax.f32 %v6414_v58, 0.0  ;;  %v6416_v12 = vld [vmem:[#allocation18_spill] sm:$0xff]  ;;  %v1254_v55 = vpop.f32.mrb[89].mxu0  ;;  %v1403_v25 = vpop.f32.mrb[89].mxu1 }
 0x1b7   : > { %3112 = vmatpush1.bf16.msra.mxu0 %v6412_v61  ;;  %v1879_v13 = vmax.f32 %v6413_v46, %v1823_v43  ;;  %v6417_v20 = vmax.f32 %v6416_v12, 0.0  ;;  %v1253_v17 = vadd.f32 %v1252_v39, %v4472_v16  ;;  %v1402_v4 = vadd.f32 %v1401_v30, %v4526_v27  ;;  %v6421_v43 = vld [vmem:[#allocation38_spill] sm:$0xff]  ;;  %v6425_v39 = vld [vmem:[#allocation37_spill] sm:$0xff] }
 0x1b8   : > { %v1826_v14 = vmax.f32 %v6415_v23, %v1694_v33  ;;  %v6420_v11 = vpack.c.bf16 %v6418_v19, %v6419_v41  ;;  %v6422_v61 = vmax.f32 %v6421_v43, 0.0  ;;  %v6424_v58 = vmax.f32 %v6423_v24, 0.0  ;;  %v6426_v19 = vld [vmem:[#allocation105_spill] sm:$0xff]  ;;  %v6428_v43 = vld [vmem:[#allocation99_spill] sm:$0xff] }
 0x1b9   : > { %v5616_v54 = vmax.f32 %v6417_v20, %v1584_v48  ;;  %v1255_v48 = vadd.f32 %v1254_v55, %v4475_v36  ;;  %v1404_v23 = vadd.f32 %v1403_v25, %v4553_v5  ;;  %2140 = vmatprep.mubr.f32.mxu0 %v1879_v13  ;;  %v5633_v30 = vadd.f32 %v6425_v39, %v4450_v6  ;;  %v6429_v55 = vld [vmem:[#allocation98_spill] sm:$0xff]  ;;  %v1258_v13 = vpop.f32.mrb[90].mxu0  ;;  %v1407_v25 = vpop.f32.mrb[90].mxu1  ;;  %v6436_v18 = vld [vmem:[#allocation101_spill] sm:$0xff] }
 0x1ba   : > { %3114 = vmatprep.subr.bf16.mxu0 %v6420_v11  ;;  %v1827_v46 = vmax.f32 %v6422_v61, %v1695_v34  ;;  %v5627_v33 = vmax.f32 %v6424_v58, %v1585_v40  ;;  %v1702_v12 = vmax.f32 %v1253_v17, 0.0  ;;  %v1592_v20 = vmax.f32 %v1402_v4, 0.0  ;;  %2141 = vmatmul.mubr.f32.gmra.mrb[112].mxu0 %v1878_v49  ;;  %v6427_v34 = vld [vmem:[#allocation40_spill] sm:$0xff]  ;;  %v6431_v58 = vld [vmem:[#allocation109_spill] sm:$0xff] }
 0x1bb   : > { %v1882_v41 = vmax.f32 %v6426_v19, %v1826_v14  ;;  %v5638_v11 = vadd.f32 %v6427_v34, %v6390_v7  ;;  %v1703_v24 = vmax.f32 %v1255_v48, 0.0  ;;  %v1593_v40 = vmax.f32 %v1404_v23, 0.0  ;;  %v6434_v49 = vld [vmem:[#allocation21_spill] sm:$0xff]  ;;  %v1260_v23 = vpop.f32.mrb[91].mxu0  ;;  %v1409_v34 = vpop.f32.mrb[91].mxu1 }
 0x1bc   : > { %v6430_v61 = vpack.c.bf16 %v6428_v43, %v6429_v55  ;;  %v1883_v39 = vmax.f32 %v6431_v58, %v1827_v46  ;;  %v6433_v17 = vmax.f32 %v6432_v26, 0.0  ;;  %v6435_v31 = vmax.f32 %v6434_v49, 0.0  ;;  %v6437_v43 = vld [vmem:[#allocation100_spill] sm:$0xff]  ;;  %v6441_v58 = vld [vmem:[#allocation22_spill] sm:$0xff]  ;;  %v6444_v49 = vld [vmem:[#allocation15_spill] sm:$0xff] }
 0x1bd   : > { %v1259_v19 = vadd.f32 %v1258_v13, %v4472_v16  ;;  %v1408_v48 = vadd.f32 %v1407_v25, %v4526_v27  ;;  %v6438_v55 = vpack.c.bf16 %v6436_v18, %v6437_v43  ;;  %v6442_v26 = vmax.f32 %v6441_v58, 0.0  ;;  %v1264_v58 = vpop.f32.mrb[92].mxu0  ;;  %v6453_v43 = vld [vmem:[#allocation108_spill] sm:$0xff] }
 0x1be   : > { %3116 = vmatpush1.bf16.msra.mxu0 %v6430_v61  ;;  %v1830_v4 = vmax.f32 %v6433_v17, %v1702_v12  ;;  %v5648_v14 = vmax.f32 %v6435_v31, %v1592_v20  ;;  %v6439_v61 = vld [vmem:[#allocation42_spill] sm:$0xff]  ;;  %v1261_v31 = vadd.f32 %v1260_v23, %v4475_v36  ;;  %v1410_v20 = vadd.f32 %v1409_v34, %v4553_v5  ;;  %v1413_v23 = vpop.f32.mrb[92].mxu1 }
 0x1bf   : > { %3118 = vmatprep.subr.bf16.mxu0 %v6438_v55  ;;  %v6440_v32 = vmax.f32 %v6439_v61, 0.0  ;;  %v5659_v12 = vmax.f32 %v6442_v26, %v1593_v40  ;;  %2146 = vmatprep.mubr.f32.mxu0 %v1883_v39  ;;  %v1612_v13 = vmax.f32 %v5633_v30, 0.0  ;;  %v1710_v25 = vmax.f32 %v1259_v19, 0.0  ;;  %v6446_v61 = vld [vmem:[#allocation102_spill] sm:$0xff]  ;;  %v6448_v26 = vld [vmem:[#allocation17_spill] sm:$0xff]  ;;  %v6449_v39 = vld [vmem:[#allocation44_spill] sm:$0xff] }
 0x1c0   : > { %v1600_v17 = vmax.f32 %v1408_v48, 0.0  ;;  %2147 = vmatmul.mubr.f32.gmra.mrb[114].mxu0 %v1882_v41  ;;  %v1886_v18 = vmax.f32 %v6444_v49, %v1830_v4  ;;  %v1711_v55 = vmax.f32 %v1261_v31, 0.0  ;;  %v6450_v28 = vmax.f32 %v6449_v39, 0.0  ;;  %v6451_v19 = vld [vmem:[#allocation24_spill] sm:$0xff]  ;;  %v1415_v49 = vpop.f32.mrb[93].mxu1 }
 0x1c1   : > { %v1831_v46 = vmax.f32 %v6440_v32, %v1703_v24  ;;  %6443 = vst [vmem:[#allocation55_spill] sm:$0xff] %v5659_v12  ;;  %v1601_v32 = vmax.f32 %v1410_v20, 0.0  ;;  %v6445_v24 = vld [vmem:[#allocation103_spill] sm:$0xff]  ;;  %v6452_v48 = vmax.f32 %v6451_v19, 0.0  ;;  %v1265_v4 = vadd.f32 %v1264_v58, %v4472_v16  ;;  %v1266_v20 = vpop.f32.mrb[93].mxu0 }
 0x1c2   : > { %v6447_v40 = vpack.c.bf16 %v6445_v24, %v6446_v61  ;;  %v1834_v30 = vmax.f32 %v6450_v28, %v1710_v25  ;;  %v1414_v31 = vadd.f32 %v1413_v23, %v4526_v27  ;;  %v6454_v24 = vld [vmem:[#allocation107_spill] sm:$0xff]  ;;  %v1267_v25 = vadd.f32 %v1266_v20, %v4475_v36  ;;  %v6465_v20 = vld [vmem:[#allocation110_spill] sm:$0xff] }
 0x1c3   : > { %v1887_v34 = vmax.f32 %v6448_v26, %v1831_v46  ;;  %v5674_v41 = vmax.f32 %v6452_v48, %v1600_v17  ;;  %v6455_v61 = vpack.c.bf16 %v6453_v43, %v6454_v24  ;;  %v6458_v26 = vld [vmem:[#allocation28_spill] sm:$0xff]  ;;  %v1416_v17 = vadd.f32 %v1415_v49, %v4553_v5  ;;  %v6461_v58 = vld [vmem:[#allocation43_spill] sm:$0xff]  ;;  %v1419_v49 = vpop.f32.mrb[94].mxu1 }
 0x1c4   : > { %3120 = vmatpush1.bf16.msra.mxu0 %v6447_v40  ;;  %v6456_v40 = vld [vmem:[#allocation46_spill] sm:$0xff]  ;;  %v6459_v39 = vmax.f32 %v6458_v26, 0.0  ;;  %v5691_v23 = vadd.f32 %v6461_v58, %v4450_v6  ;;  %v1718_v19 = vmax.f32 %v1265_v4, 0.0  ;;  %v1608_v48 = vmax.f32 %v1414_v31, 0.0  ;;  %v6462_v43 = vld [vmem:[#allocation112_spill] sm:$0xff] }
 0x1c5   : > { %3122 = vmatprep.subr.bf16.mxu0 %v6455_v61  ;;  %v6457_v12 = vmax.f32 %v6456_v40, 0.0  ;;  %2152 = vmatprep.mubr.f32.mxu0 %v1887_v34  ;;  %v1890_v24 = vmax.f32 %v6462_v43, %v1834_v30  ;;  %v1609_v61 = vmax.f32 %v1416_v17, 0.0  ;;  %v6464_v40 = vld [vmem:[#allocation111_spill] sm:$0xff]  ;;  %v1270_v34 = vpop.f32.mrb[94].mxu0 }
 0x1c6   : > { %v5685_v28 = vmax.f32 %v6459_v39, %v1601_v32  ;;  %2153 = vmatmul.mubr.f32.gmra.mrb[116].mxu0 %v1886_v18  ;;  %v1719_v32 = vmax.f32 %v1267_v25, 0.0  ;;  %v6466_v26 = vpack.c.bf16 %v6464_v40, %v6465_v20  ;;  %v6467_v39 = vld [vmem:[#allocation114_spill] sm:$0xff]  ;;  %v6470_v18 = vmax.f32 %v5504_v10, 0.0  ;;  %v1272_v17 = vpop.f32.mrb[95].mxu0  ;;  %v6472_v20 = vld [vmem:[#allocation48_spill] sm:$0xff] }
 0x1c7   : > { %v1835_v46 = vmax.f32 %v6457_v12, %v1711_v55  ;;  %v6463_v12 = vld [vmem:[#allocation45_spill] sm:$0xff]  ;;  %v1271_v43 = vadd.f32 %v1270_v34, %v4472_v16  ;;  %v1420_v25 = vadd.f32 %v1419_v49, %v4526_v27  ;;  %v6471_v40 = vpack.c.bf16 %v5288_v57, %v5261_v53 }
 0x1c8   : > { %6460 = vst [vmem:[#allocation57_spill] sm:$0xff] %v5685_v28  ;;  %v5696_v55 = vadd.f32 %v6463_v12, %v6390_v7  ;;  %3124 = vmatpush1.bf16.msra.mxu0 %v6466_v26  ;;  %v6468_v28 = vld [vmem:[#allocation47_spill] sm:$0xff]  ;;  %v5706_v30 = vmax.f32 %v6470_v18, %v1608_v48  ;;  %v1421_v12 = vpop.f32.mrb[95].mxu1  ;;  %v6473_v26 = vmax.f32 %v6472_v20, 0.0  ;;  %v1273_v10 = vadd.f32 %v1272_v17, %v4475_v36 }
 0x1c9   : > { %v1891_v58 = vmax.f32 %v6467_v39, %v1835_v46  ;;  %v6469_v4 = vmax.f32 %v6468_v28, 0.0  ;;  %3126 = vmatprep.subr.bf16.mxu0 %v6471_v40  ;;  %v6474_v28 = vmax.f32 %v5570_v44, 0.0  ;;  %v1422_v48 = vadd.f32 %v1421_v12, %v4553_v5  ;;  %v6476_v44 = vld [vmem:[#allocation119_spill] sm:$0xff]  ;;  %v1276_v40 = vpop.f32.mrb[96].mxu0  ;;  %v1425_v17 = vpop.f32.mrb[96].mxu1 }
 0x1ca   : > { %v1839_v46 = vmax.f32 %v6473_v26, %v1719_v32  ;;  %v1620_v34 = vmax.f32 %v5691_v23, 0.0  ;;  %v1726_v49 = vmax.f32 %v1271_v43, 0.0  ;;  %v1616_v39 = vmax.f32 %v1420_v25, 0.0  ;;  %v6478_v20 = vld [vmem:[#allocation27_spill] sm:$0xff]  ;;  %v1427_v25 = vpop.f32.mrb[97].mxu1 }
 0x1cb   : > { %v1838_v31 = vmax.f32 %v6469_v4, %v1718_v19  ;;  %v5717_v19 = vmax.f32 %v6474_v28, %v1609_v61  ;;  %2158 = vmatprep.mubr.f32.mxu0 %v1891_v58  ;;  %v6475_v4 = vld [vmem:[#allocation25_spill] sm:$0xff]  ;;  %v1621_v57 = vmax.f32 %v5696_v55, 0.0  ;;  %v1727_v18 = vmax.f32 %v1273_v10, 0.0  ;;  %v6479_v58 = vld [vmem:[#allocation51_spill] sm:$0xff]  ;;  %v1278_v55 = vpop.f32.mrb[97].mxu0 }
 0x1cc   : > { %2159 = vmatmul.mubr.f32.gmra.mrb[118].mxu0 %v1890_v24  ;;  %v1617_v32 = vmax.f32 %v1422_v48, 0.0  ;;  %v6477_v61 = vpack.c.bf16 %v5298_v42, %v6476_v44  ;;  %v1895_v12 = vmax.f32 %v6478_v20, %v1839_v46  ;;  %v6480_v26 = vmax.f32 %v6479_v58, 0.0  ;;  %v6482_v42 = vld [vmem:[#allocation52_spill] sm:$0xff] }
 0x1cd   : > { %v1894_v53 = vmax.f32 %v6475_v4, %v1838_v31  ;;  %v5730_v43 = vmax.f32 %v1612_v13, %v1616_v39  ;;  %v1277_v24 = vadd.f32 %v1276_v40, %v4472_v16  ;;  %v1426_v31 = vadd.f32 %v1425_v17, %v4526_v27  ;;  %v2023_v16 = vld [vmem:[%s6039_s3 + $0x3a8] sm:$0xff]  ;;  %v6487_v40 = vld [vmem:[#allocation50_spill] sm:$0xff] }
 0x1ce   : > { %3128 = vmatpush1.bf16.msra.mxu0 %v6477_v61  ;;  %v1842_v23 = vmax.f32 %v6480_v26, %v1726_v49  ;;  %v6481_v28 = vpack.c.bf16 %v5335_v47, %v5330_v45  ;;  %v6483_v10 = vmax.f32 %v6482_v42, 0.0  ;;  %v6484_v46 = vmax.f32 %v5638_v11, 0.0  ;;  %2164 = vmatprep.mubr.f32.mxu0 %v1895_v12  ;;  %v2025_v45 = vld [vmem:[%s6039_s3 + $0x3b8] sm:$0xff]  ;;  %v2024_v61 = vld [vmem:[%s6039_s3 + $0x3b0] sm:$0xff] }
 0x1cf   : > { %v1279_v13 = vadd.f32 %v1278_v55, %v4475_v36  ;;  %v1428_v49 = vadd.f32 %v1427_v25, %v4553_v5  ;;  %v6485_v47 = vld [vmem:[#allocation49_spill] sm:$0xff]  ;;  %v1624_v11 = vmax.f32 %v1426_v31, 0.0  ;;  %v2022_v36 = vld [vmem:[%s6039_s3 + $0x3a0] sm:$0xff]  ;;  %v968_v17 = vadd.f32 %v6487_v40, %v6390_v7 }
 0x1d0   : > { %3130 = vmatprep.subr.bf16.mxu0 %v6481_v28  ;;  %v1843_v48 = vmax.f32 %v6483_v10, %v1727_v18  ;;  %v5741_v4 = vmax.f32 %v6484_v46, %v1617_v32  ;;  %v966_v39 = vadd.f32 %v6485_v47, %v4450_v6  ;;  %v1734_v18 = vmax.f32 %v1277_v24, 0.0  ;;  %2165 = vmatmul.mubr.f32.gmra.mrb[120].mxu0 %v1894_v53  ;;  %v6486_v32 = vld [vmem:[#allocation115_spill] sm:$0xff]  ;;  %v1431_v53 = vpop.f32.mrb[98].mxu1  ;;  %v6489_v26 = vld [vmem:[#allocation117_spill] sm:$0xff]  ;;  %v6490_v24 = vld [vmem:[#allocation58_spill] sm:$0xff] }
 0x1d1   : > { %v1898_v44 = vmax.f32 %v6486_v32, %v1842_v23  ;;  %v1735_v20 = vmax.f32 %v1279_v13, 0.0  ;;  %v1625_v12 = vmax.f32 %v1428_v49, 0.0  ;;  %v6488_v58 = vpack.c.bf16 %v5372_v60, %v5367_v3  ;;  %v1433_v42 = vpop.f32.mrb[99].mxu1  ;;  %v6493_v13 = vld [vmem:[#allocation59_spill] sm:$0xff]  ;;  %v2026_v32 = vld [vmem:[%s6039_s3 + $0x3c0] sm:$0xff] }
 0x1d2   : > { %v1899_v23 = vmax.f32 %v6489_v26, %v1843_v48  ;;  %v6491_v31 = vmax.f32 %v6490_v24, 0.0  ;;  %v5768_v25 = vmax.f32 %v1620_v34, %v1624_v11  ;;  %v1432_v28 = vadd.f32 %v1431_v53, %v4526_v27  ;;  %v2027_v34 = vld [vmem:[%s6039_s3 + $0x3c8] sm:$0xff]  ;;  %v6497_v40 = vld [vmem:[#allocation54_spill] sm:$0xff] }
 0x1d3   : > { %3132 = vmatpush1.bf16.msra.mxu0 %v6488_v58  ;;  %v6492_v10 = vpack.c.bf16 %v5415_v62, %v5410_v29  ;;  %v3137_v46 = vpack.c.bf16 %v2025_v45, %v2023_v16  ;;  %v6494_v49 = vmax.f32 %v6493_v13, 0.0  ;;  %v5776_v60 = vmax.f32 %v1621_v57, %v1625_v12  ;;  %v6495_v62 = vld [vmem:[#allocation53_spill] sm:$0xff]  ;;  %v6496_v57 = vld [vmem:[#allocation118_spill] sm:$0xff]  ;;  %v6499_v58 = vld [vmem:[#allocation120_spill] sm:$0xff] }
 0x1d4   : > { %v1846_v55 = vmax.f32 %v6491_v31, %v1734_v18  ;;  %v1434_v48 = vadd.f32 %v1433_v42, %v4553_v5  ;;  %2170 = vmatprep.mubr.f32.mxu0 %v1899_v23  ;;  %v3139_v47 = vpack.c.bf16 %v2024_v61, %v2022_v36  ;;  %v2029_v18 = vld [vmem:[%s6039_s3 + $0x3d8] sm:$0xff]  ;;  %v1628_v29 = vmax.f32 %v966_v39, 0.0  ;;  %v2028_v36 = vld [vmem:[%s6039_s3 + $0x3d0] sm:$0xff] }
 0x1d5   : > { %3134 = vmatprep.subr.bf16.mxu0 %v6492_v10  ;;  %v1847_v3 = vmax.f32 %v6494_v49, %v1735_v20  ;;  %v972_v16 = vadd.f32 %v6495_v62, %v4450_v6  ;;  %v1632_v45 = vmax.f32 %v1432_v28, 0.0  ;;  %2171 = vmatmul.mubr.f32.gmra.mrb[122].mxu0 %v1898_v44  ;;  %v1629_v61 = vmax.f32 %v968_v17, 0.0  ;;  %v1437_v44 = vpop.f32.mrb[100].mxu1  ;;  %v6500_v10 = vld [vmem:[#allocation60_spill] sm:$0xff] }
 0x1d6   : > { %v1902_v11 = vmax.f32 %v6496_v57, %v1846_v55  ;;  %v974_v20 = vadd.f32 %v6497_v40, %v6390_v7  ;;  %v1633_v39 = vmax.f32 %v1434_v48, 0.0  ;;  %v6498_v12 = vpack.c.bf16 %v5458_v35, %v5453_v1  ;;  %v1439_v24 = vpop.f32.mrb[101].mxu1  ;;  %v2031_v1 = vld [vmem:[%s6039_s3 + $0x3e8] sm:$0xff]  ;;  %v2033_v35 = vld [vmem:[%s6039_s3 + $0x3f8] sm:$0xff]  ;;  %v2030_v48 = vld [vmem:[%s6039_s3 + $0x3e0] sm:$0xff] }
 0x1d7   : > { %v1903_v53 = vmax.f32 %v6499_v58, %v1847_v3  ;;  %v5800_v26 = vmax.f32 %v1628_v29, %v1632_v45  ;;  %v1438_v23 = vadd.f32 %v1437_v44, %v4526_v27  ;;  %v3141_v31 = vpack.c.bf16 %v2029_v18, %v2027_v34  ;;  %v2032_v34 = vld [vmem:[%s6039_s3 + $0x3f0] sm:$0xff]  ;;  %v6502_v29 = vld [vmem:[#allocation61_spill] sm:$0xff]  ;;  %v1443_v45 = vpop.f32.mrb[102].mxu1  ;;  %v6503_v44 = vld [vmem:[#allocation63_spill] sm:$0xff] }
 0x1d8   : > { %3136 = vmatpush1.bf16.msra.mxu0 %v6498_v12  ;;  %v1797_v55 = vmax.f32 %v1629_v61, %v1633_v39  ;;  %v1440_v17 = vadd.f32 %v1439_v24, %v4553_v5  ;;  %v3143_v28 = vpack.c.bf16 %v2028_v36, %v2026_v32  ;;  %v1636_v42 = vmax.f32 %v972_v16, 0.0  ;;  %v1445_v36 = vpop.f32.mrb[103].mxu1 }
 0x1d9   : > { %3138 = vmatprep.subr.bf16.mxu0 %v3137_v46  ;;  %2176 = vmatprep.mubr.f32.mxu0 %v1903_v53  ;;  %v978_v13 = vadd.f32 %v6500_v10, %v4450_v6  ;;  %v6501_v46 = vld [vmem:[#allocation121_spill] sm:$0xff]  ;;  %v1640_v3 = vmax.f32 %v1438_v23, 0.0  ;;  %v1637_v18 = vmax.f32 %v974_v20, 0.0  ;;  %v980_v62 = vadd.f32 %v6502_v29, %v6390_v7 }
 0x1da   : > { %v1852_v49 = vmax.f32 %v6501_v46, %v5800_v26  ;;  %2177 = vmatmul.mubr.f32.gmra.mrb[124].mxu0 %v1902_v11  ;;  %v1641_v16 = vmax.f32 %v1440_v17, 0.0  ;;  %v1853_v57 = vmax.f32 %v5341_v0, %v1797_v55  ;;  %v1444_v11 = vadd.f32 %v1443_v45, %v4526_v27  ;;  %v6504_v0 = vld [vmem:[#allocation64_spill] sm:$0xff] }
 0x1db   : > { %v1800_v32 = vmax.f32 %v1636_v42, %v1640_v3  ;;  %v3145_v61 = vpack.c.bf16 %v2033_v35, %v2031_v1  ;;  %v1446_v39 = vadd.f32 %v1445_v36, %v4553_v5  ;;  %v3147_v12 = vpack.c.bf16 %v2032_v34, %v2030_v48 }
 0x1dc   : > { %3140 = vmatpush1.bf16.msra.mxu0 %v3139_v47  ;;  %v1801_v40 = vmax.f32 %v1637_v18, %v1641_v16  ;;  %2247 = vmatprep.mubr.f32.mxu0 %v1853_v57  ;;  %v1644_v20 = vmax.f32 %v978_v13, 0.0  ;;  %v984_v58 = vadd.f32 %v6503_v44, %v4450_v6  ;;  %v1648_v53 = vmax.f32 %v1444_v11, 0.0 }
 0x1dd   : > { %3142 = vmatprep.subr.bf16.mxu0 %v3141_v31  ;;  %v1856_v47 = vmax.f32 %v5360_v50, %v1800_v32  ;;  %v1645_v26 = vmax.f32 %v980_v62, 0.0  ;;  %v986_v23 = vadd.f32 %v6504_v0, %v6390_v7  ;;  %v1649_v24 = vmax.f32 %v1446_v39, 0.0  ;;  %v1449_v31 = vpop.f32.mrb[104].mxu1  ;;  %v6505_v50 = vld [vmem:[#allocation69_spill] sm:$0xff] }
 0x1de   : > { %v1857_v55 = vmax.f32 %v5378_v63, %v1801_v40  ;;  %v1804_v17 = vmax.f32 %v1644_v20, %v1648_v53  ;;  %v1450_v1 = vadd.f32 %v1449_v31, %v4526_v27  ;;  %v1451_v35 = vpop.f32.mrb[105].mxu1  ;;  %v1652_v13 = vmax.f32 %v984_v58, 0.0 }
 0x1df   : > { %v1805_v42 = vmax.f32 %v1645_v26, %v1649_v24  ;;  %v1452_v10 = vadd.f32 %v1451_v35, %v4553_v5  ;;  %v990_v46 = vadd.f32 %v6505_v50, %v4450_v6  ;;  %v1653_v34 = vmax.f32 %v986_v23, 0.0  ;;  %v1455_v29 = vpop.f32.mrb[106].mxu1 }
 0x1e0   : > { %3144 = vmatpush1.bf16.msra.mxu0 %v3143_v28  ;;  %v1656_v3 = vmax.f32 %v1450_v1, 0.0  ;;  %v1860_v48 = vmax.f32 %v5400_v8, %v1804_v17  ;;  %v6506_v28 = vld [vmem:[#allocation70_spill] sm:$0xff]  ;;  %v1456_v45 = vadd.f32 %v1455_v29, %v4526_v27  ;;  %v1457_v57 = vpop.f32.mrb[107].mxu1 }
 0x1e1   : > { %3146 = vmatprep.subr.bf16.mxu0 %v3145_v61  ;;  %v992_v18 = vadd.f32 %v6506_v28, %v6390_v7  ;;  %v1657_v63 = vmax.f32 %v1452_v10, 0.0  ;;  %v1861_v62 = vmax.f32 %v5421_v38, %v1805_v42  ;;  %v1458_v11 = vadd.f32 %v1457_v57, %v4553_v5  ;;  %v6507_v61 = vld [vmem:[#allocation76_spill] sm:$0xff]  ;;  %v1461_v58 = vpop.f32.mrb[108].mxu1 }
 0x1e2   : > { %v1808_v16 = vmax.f32 %v1652_v13, %v1656_v3  ;;  %v1660_v36 = vmax.f32 %v990_v46, 0.0  ;;  %v996_v8 = vadd.f32 %v6507_v61, %v4450_v6  ;;  %v1664_v40 = vmax.f32 %v1456_v45, 0.0  ;;  %v1463_v23 = vpop.f32.mrb[109].mxu1 }
 0x1e3   : > { %v1809_v32 = vmax.f32 %v1653_v34, %v1657_v63  ;;  %v1661_v20 = vmax.f32 %v992_v18, 0.0  ;;  %v1665_v38 = vmax.f32 %v1458_v11, 0.0  ;;  %v1462_v0 = vadd.f32 %v1461_v58, %v4526_v27  ;;  %v1467_v13 = vpop.f32.mrb[110].mxu1 }
 0x1e4   : > { %3148 = vmatpush1.bf16.msra.mxu0 %v3147_v12  ;;  %v1864_v39 = vmax.f32 %v5443_v9, %v1808_v16  ;;  %v6508_v12 = vld [vmem:[#allocation78_spill] sm:$0xff]  ;;  %v1812_v26 = vmax.f32 %v1660_v36, %v1664_v40  ;;  %v1464_v31 = vadd.f32 %v1463_v23, %v4553_v5  ;;  %v1668_v17 = vmax.f32 %v996_v8, 0.0  ;;  %v1469_v34 = vpop.f32.mrb[111].mxu1 }
 0x1e5   : > { %v998_v44 = vadd.f32 %v6508_v12, %v6390_v7  ;;  %v1865_v53 = vmax.f32 %v5464_v15, %v1809_v32  ;;  %v1813_v24 = vmax.f32 %v1661_v20, %v1665_v38  ;;  %v1672_v1 = vmax.f32 %v1462_v0, 0.0  ;;  %v1473_v32 = vpop.f32.mrb[112].mxu1 }
 0x1e6   : > { %v1868_v35 = vmax.f32 %v5486_v22, %v1812_v26  ;;  %v1673_v15 = vmax.f32 %v1464_v31, 0.0  ;;  %v1468_v3 = vadd.f32 %v1467_v13, %v4526_v27  ;;  %v1470_v18 = vadd.f32 %v1469_v34, %v4553_v5  ;;  %v1475_v8 = vpop.f32.mrb[113].mxu1 }
 0x1e7   : > { %2248 = vmatmul.mubr.f32.vlgmr.msra.gmra.mrb[98].mxu0 %v1852_v49  ;;  %v6509_v49 = vld [vmem:[#allocation84_spill] sm:$0xff]  ;;  %v1669_v42 = vmax.f32 %v998_v44, 0.0  ;;  %v1869_v50 = vmax.f32 %v5497_v59, %v1813_v24  ;;  %v1816_v46 = vmax.f32 %v1668_v17, %v1672_v1  ;;  %v1474_v61 = vadd.f32 %v1473_v32, %v4526_v27  ;;  %v1479_v0 = vpop.f32.mrb[114].mxu1 }
 0x1e8   : > { %2253 = vmatprep.mubr.f32.mxu0 %v1857_v55  ;;  %v1002_v9 = vadd.f32 %v6509_v49, %v4450_v6  ;;  %v6510_v55 = vld [vmem:[#allocation86_spill] sm:$0xff]  ;;  %v1680_v29 = vmax.f32 %v1468_v3, 0.0  ;;  %v1681_v59 = vmax.f32 %v1470_v18, 0.0  ;;  %v1476_v20 = vadd.f32 %v1475_v8, %v4553_v5  ;;  %v1481_v17 = vpop.f32.mrb[115].mxu1 }
 0x1e9   : > { %v1004_v10 = vadd.f32 %v6510_v55, %v6390_v7  ;;  %v1817_v28 = vmax.f32 %v1669_v42, %v1673_v15  ;;  %v1872_v16 = vmax.f32 %v5521_v37, %v1816_v46  ;;  %v1688_v44 = vmax.f32 %v1474_v61, 0.0  ;;  %v6516_v15 = vld [vmem:[#allocation106_spill] sm:$0xff] }
 0x1ea   : > { %v1676_v63 = vmax.f32 %v1002_v9, 0.0  ;;  %v1480_v31 = vadd.f32 %v1479_v0, %v4526_v27  ;;  %v1482_v9 = vadd.f32 %v1481_v17, %v4553_v5  ;;  %v1022_v13 = vadd.f32 %v6516_v15, %v6390_v7 }
 0x1eb   : > { %2254 = vmatmul.mubr.f32.gmra.mrb[100].mxu0 %v1856_v47  ;;  %v6511_v47 = vld [vmem:[#allocation92_spill] sm:$0xff]  ;;  %v1677_v45 = vmax.f32 %v1004_v10, 0.0  ;;  %v1873_v11 = vmax.f32 %v5532_v56, %v1817_v28  ;;  %v1689_v56 = vmax.f32 %v1476_v20, 0.0 }
 0x1ec   : > { %2259 = vmatprep.mubr.f32.mxu0 %v1861_v62  ;;  %v1008_v22 = vadd.f32 %v6511_v47, %v4450_v6  ;;  %v6512_v62 = vld [vmem:[#allocation94_spill] sm:$0xff]  ;;  %v1820_v36 = vmax.f32 %v1676_v63, %v1680_v29  ;;  %v1696_v42 = vmax.f32 %v1480_v31, 0.0 }
 0x1ed   : > { %v1010_v57 = vadd.f32 %v6512_v62, %v6390_v7  ;;  %v1821_v40 = vmax.f32 %v1677_v45, %v1681_v59  ;;  %v1701_v45 = vmax.f32 %v1022_v13, 0.0  ;;  %v6518_v62 = vld [vmem:[#allocation16_spill] sm:$0xff]  ;;  %v6524_v13 = vld [vmem:[#allocation57_spill] sm:$0xff] }
 0x1ee   : > { %v1684_v12 = vmax.f32 %v1008_v22, 0.0  ;;  %v1876_v38 = vmax.f32 %v5552_v52, %v1820_v36 }
 0x1ef   : > { %2260 = vmatmul.mubr.f32.gmra.mrb[102].mxu0 %v1860_v48  ;;  %v6513_v48 = vld [vmem:[#allocation5_spill] sm:$0xff]  ;;  %v1685_v58 = vmax.f32 %v1010_v57, 0.0  ;;  %v1877_v23 = vmax.f32 %v5563_v2, %v1821_v40  ;;  %v1697_v2 = vmax.f32 %v1482_v9, 0.0  ;;  %v1028_v57 = vadd.f32 %v6518_v62, %v6390_v7 }
 0x1f0   : > { %2265 = vmatprep.mubr.f32.mxu0 %v1865_v53  ;;  %v1014_v37 = vadd.f32 %v6513_v48, %v4450_v6  ;;  %v6514_v53 = vld [vmem:[#allocation8_spill] sm:$0xff]  ;;  %v1824_v24 = vmax.f32 %v1684_v12, %v1688_v44  ;;  %v6520_v44 = vld [vmem:[#allocation113_spill] sm:$0xff] }
 0x1f1   : > { %v1016_v26 = vadd.f32 %v6514_v53, %v6390_v7  ;;  %v1825_v49 = vmax.f32 %v1685_v58, %v1689_v56  ;;  %v1034_v58 = vadd.f32 %v6520_v44, %v6390_v7 }
 0x1f2   : > { %v1692_v1 = vmax.f32 %v1014_v37, 0.0  ;;  %v1880_v55 = vmax.f32 %v5587_v51, %v1824_v24  ;;  %v1709_v37 = vmax.f32 %v1028_v57, 0.0 }
 0x1f3   : > { %2266 = vmatmul.mubr.f32.gmra.mrb[104].mxu0 %v1864_v39  ;;  %v6515_v39 = vld [vmem:[#allocation104_spill] sm:$0xff]  ;;  %v1693_v10 = vmax.f32 %v1016_v26, 0.0  ;;  %v1881_v46 = vmax.f32 %v5598_v21, %v1825_v49  ;;  %v6521_v26 = vld [vmem:[#allocation55_spill] sm:$0xff] }
 0x1f4   : > { %2271 = vmatprep.mubr.f32.mxu0 %v1869_v50  ;;  %v1020_v52 = vadd.f32 %v6515_v39, %v4450_v6  ;;  %v1485_v50 = vpop.f32.mrb[116].mxu1  ;;  %v1828_v3 = vmax.f32 %v1692_v1, %v1696_v42  ;;  %v1717_v39 = vmax.f32 %v1034_v58, 0.0 }
 0x1f5   : > { %v1486_v34 = vadd.f32 %v1485_v50, %v4526_v27  ;;  %v1487_v28 = vpop.f32.mrb[117].mxu1  ;;  %v1829_v18 = vmax.f32 %v1693_v10, %v1697_v2 }
 0x1f6   : > { %v1488_v63 = vadd.f32 %v1487_v28, %v4553_v5  ;;  %v1700_v47 = vmax.f32 %v1020_v52, 0.0  ;;  %v1884_v29 = vmax.f32 %v5616_v54, %v1828_v3  ;;  %v1491_v59 = vpop.f32.mrb[118].mxu1  ;;  %v6523_v52 = vld [vmem:[#allocation26_spill] sm:$0xff] }
 0x1f7   : > { %2272 = vmatmul.mubr.f32.gmra.mrb[106].mxu0 %v1868_v35  ;;  %v6517_v35 = vld [vmem:[#allocation13_spill] sm:$0xff]  ;;  %v1704_v22 = vmax.f32 %v1486_v34, 0.0  ;;  %v1885_v32 = vmax.f32 %v5627_v33, %v1829_v18  ;;  %v1492_v36 = vadd.f32 %v1491_v59, %v4526_v27  ;;  %v1493_v61 = vpop.f32.mrb[119].mxu1  ;;  %v1040_v42 = vadd.f32 %v6523_v52, %v6390_v7 }
 0x1f8   : > { %2277 = vmatprep.mubr.f32.mxu0 %v1873_v11  ;;  %v1026_v51 = vadd.f32 %v6517_v35, %v4450_v6  ;;  %v1705_v21 = vmax.f32 %v1488_v63, 0.0  ;;  %v1494_v40 = vadd.f32 %v1493_v61, %v4553_v5  ;;  %v1497_v53 = vpop.f32.mrb[120].mxu1 }
 0x1f9   : > { %v1832_v11 = vmax.f32 %v1700_v47, %v1704_v22  ;;  %v1712_v12 = vmax.f32 %v1492_v36, 0.0  ;;  %v1499_v24 = vpop.f32.mrb[121].mxu1  ;;  %v1725_v35 = vmax.f32 %v1040_v42, 0.0 }
 0x1fa   : > { %v1833_v8 = vmax.f32 %v1701_v45, %v1705_v21  ;;  %v1708_v20 = vmax.f32 %v1026_v51, 0.0  ;;  %v1713_v33 = vmax.f32 %v1494_v40, 0.0  ;;  %v1500_v17 = vadd.f32 %v1499_v24, %v4553_v5  ;;  %v1503_v15 = vpop.f32.mrb[122].mxu1  ;;  %v6526_v51 = vld [vmem:[#allocation116_spill] sm:$0xff]  ;;  %v2339_v24 = vld [vmem:[%s6041_s5 + $0x38] sm:$0xff] }
 0x1fb   : > { %2278 = vmatmul.mubr.f32.gmra.mrb[108].mxu0 %v1872_v16  ;;  %v6519_v16 = vld [vmem:[#allocation19_spill] sm:$0xff]  ;;  %v1888_v48 = vmax.f32 %v5648_v14, %v1832_v11  ;;  %v1505_v3 = vpop.f32.mrb[123].mxu1  ;;  %v1046_v22 = vadd.f32 %v6526_v51, %v6390_v7  ;;  %v2346_v51 = vld [vmem:[%s6041_s5 + $0x70] sm:$0xff] }
 0x1fc   : > { %2283 = vmatprep.mubr.f32.mxu0 %v1877_v23  ;;  %v1032_v54 = vadd.f32 %v6519_v16, %v4450_v6  ;;  %v1889_v56 = vmax.f32 %v6521_v26, %v1833_v8  ;;  %v1836_v0 = vmax.f32 %v1708_v20, %v1712_v12  ;;  %v1498_v23 = vadd.f32 %v1497_v53, %v4526_v27  ;;  %v1509_v62 = vpop.f32.mrb[124].mxu1  ;;  %v2336_v26 = vld [vmem:[%s6041_s5 + $0x20] sm:$0xff] }
 0x1fd   : > { %v1837_v31 = vmax.f32 %v1709_v37, %v1713_v33  ;;  %v1721_v10 = vmax.f32 %v1500_v17, 0.0  ;;  %v1506_v28 = vadd.f32 %v1505_v3, %v4553_v5  ;;  %v1510_v59 = vadd.f32 %v1509_v62, %v4526_v27  ;;  %v2337_v33 = vld [vmem:[%s6041_s5 + $0x28] sm:$0xff]  ;;  %v2338_v17 = vld [vmem:[%s6041_s5 + $0x30] sm:$0xff] }
 0x1fe   : > { %v1716_v49 = vmax.f32 %v1032_v54, 0.0  ;;  %v1720_v9 = vmax.f32 %v1498_v23, 0.0  ;;  %v1892_v1 = vmax.f32 %v5674_v41, %v1836_v0  ;;  %v1733_v61 = vmax.f32 %v1046_v22, 0.0 }
 0x1ff   : > { %2284 = vmatmul.mubr.f32.gmra.mrb[110].mxu0 %v1876_v38  ;;  %v6522_v38 = vld [vmem:[#allocation23_spill] sm:$0xff]  ;;  %v1893_v2 = vmax.f32 %v6524_v13, %v1837_v31  ;;  %v1841_v34 = vmax.f32 %v1717_v39, %v1721_v10  ;;  %v1729_v45 = vmax.f32 %v1506_v28, 0.0  ;;  %v2340_v39 = vld [vmem:[%s6041_s5 + $0x40] sm:$0xff] }
 0x200   : > { %2289 = vmatprep.mubr.f32.mxu0 %v1881_v46  ;;  %v1038_v14 = vadd.f32 %v6522_v38, %v4450_v6  ;;  %v1840_v50 = vmax.f32 %v1716_v49, %v1720_v9  ;;  %v1504_v46 = vadd.f32 %v1503_v15, %v4526_v27  ;;  %v2341_v9 = vld [vmem:[%s6041_s5 + $0x48] sm:$0xff]  ;;  %v2343_v15 = vld [vmem:[%s6041_s5 + $0x58] sm:$0xff] }
 0x201   : > { %v1897_v57 = vmax.f32 %v5717_v19, %v1841_v34  ;;  %v1845_v11 = vmax.f32 %v1725_v35, %v1729_v45  ;;  %v2345_v34 = vld [vmem:[%s6041_s5 + $0x68] sm:$0xff] }
 0x202   : > { %v1724_v18 = vmax.f32 %v1038_v14, 0.0  ;;  %v1728_v63 = vmax.f32 %v1504_v46, 0.0  ;;  %v1896_v47 = vmax.f32 %v5706_v30, %v1840_v50 }
 0x203   : > { %2290 = vmatmul.mubr.f32.gmra.mrb[112].mxu0 %v1880_v55  ;;  %v6525_v55 = vld [vmem:[#allocation36_spill] sm:$0xff]  ;;  %v1901_v7 = vmax.f32 %v5741_v4, %v1845_v11  ;;  %v2332_v4 = vld [vmem:[%s6041_s5] sm:$0xff] }
 0x204   : > { %2295 = vmatprep.mubr.f32.mxu0 %v1885_v32  ;;  %v1044_v41 = vadd.f32 %v6525_v55, %v4450_v6  ;;  %v1844_v21 = vmax.f32 %v1724_v18, %v1728_v63  ;;  %v1511_v32 = vpop.f32.mrb[125].mxu1  ;;  %v2344_v18 = vld [vmem:[%s6041_s5 + $0x60] sm:$0xff] }
 0x205   : > { %v1512_v6 = vadd.f32 %v1511_v32, %v4553_v5  ;;  %v2333_v5 = vld [vmem:[%s6041_s5 + $0x8] sm:$0xff] }
 0x206   : > { %v1732_v36 = vmax.f32 %v1044_v41, 0.0  ;;  %v1900_v30 = vmax.f32 %v5730_v43, %v1844_v21 }
 0x207   : > { %2296 = vmatmul.mubr.f32.gmra.mrb[114].mxu0 %v1884_v29  ;;  %v1736_v29 = vmax.f32 %v1510_v59, 0.0  ;;  %v1737_v8 = vmax.f32 %v1512_v6, 0.0  ;;  %v2348_v59 = vld [vmem:[%s6041_s5 + $0x80] sm:$0xff] }
 0x208   : > { %2301 = vmatprep.mubr.f32.mxu0 %v1889_v56 }
 0x209   : > { %v1848_v40 = vmax.f32 %v1732_v36, %v1736_v29  ;;  %v1849_v20 = vmax.f32 %v1733_v61, %v1737_v8  ;;  %v2351_v36 = vld [vmem:[%s6041_s5 + $0x98] sm:$0xff] }
 0x20b   : > { %2302 = vmatmul.mubr.f32.gmra.mrb[116].mxu0 %v1888_v48  ;;  %v1904_v19 = vmax.f32 %v5768_v25, %v1848_v40  ;;  %v1905_v27 = vmax.f32 %v5776_v60, %v1849_v20  ;;  %v2335_v60 = vld [vmem:[%s6041_s5 + $0x18] sm:$0xff]  ;;  %v2334_v48 = vld [vmem:[%s6041_s5 + $0x10] sm:$0xff]  ;;  %v2353_v40 = vld [vmem:[%s6041_s5 + $0xa8] sm:$0xff] }
 0x20c   : > { %2307 = vmatprep.mubr.f32.mxu0 %v1893_v2  ;;  %v2342_v2 = vld [vmem:[%s6041_s5 + $0x50] sm:$0xff] }
 0x20f   : > { %2308 = vmatmul.mubr.f32.gmra.mrb[118].mxu0 %v1892_v1 }
 0x210   : > { %2313 = vmatprep.mubr.f32.mxu0 %v1897_v57  ;;  %v2349_v57 = vld [vmem:[%s6041_s5 + $0x88] sm:$0xff] }
 0x213   : > { %2314 = vmatmul.mubr.f32.gmra.mrb[120].mxu0 %v1896_v47  ;;  %v2347_v47 = vld [vmem:[%s6041_s5 + $0x78] sm:$0xff] }
 0x214   : > { %2319 = vmatprep.mubr.f32.mxu0 %v1901_v7 }
 0x217   : > { %2320 = vmatmul.mubr.f32.gmra.mrb[122].mxu0 %v1900_v30  ;;  %v2350_v30 = vld [vmem:[%s6041_s5 + $0x90] sm:$0xff] }
 0x218   : > { %2325 = vmatprep.mubr.f32.mxu0 %v1905_v27 }
 0x21b   : > { %2326 = vmatmul.mubr.f32.gmra.mrb[124].mxu0 %v1904_v19  ;;  %v2352_v19 = vld [vmem:[%s6041_s5 + $0xa0] sm:$0xff] }
 0x2ba   : > { %v2249_v43 = vpop.f32.mrb[98].mxu0 }
 0x2bb   : > { %v2251_v16 = vpop.f32.mrb[99].mxu0  ;;  %v2360_v54 = vmul.f32 %v2332_v4, %v2249_v43  ;;  %v2355_v4 = vld [vmem:[%s6041_s5 + $0xb8] sm:$0xff] }
 0x2bc   : > { %v2361_v25 = vmul.f32 %v2333_v5, %v2251_v16 }
 0x2be   : > { %v2255_v12 = vpop.f32.mrb[100].mxu0  ;;  %2853 = vmatprep.mubr.msk.f32.mxu1 %vm2406_vm6, %v2361_v25  ;;  %v2354_v25 = vld [vmem:[%s6041_s5 + $0xb0] sm:$0xff] }
 0x2bf   : > { %v2257_v37 = vpop.f32.mrb[101].mxu0  ;;  %2518 = vmatmul.mubr.f32.vlgmr.msra.gmra.mrb[126].mxu1 %v2360_v54  ;;  %v2362_v58 = vmul.f32 %v2334_v48, %v2255_v12  ;;  %v2357_v48 = vld [vmem:[%s6041_s5 + $0xc8] sm:$0xff] }
 0x2c0   : > { %v2363_v44 = vmul.f32 %v2335_v60, %v2257_v37 }
 0x2c2   : > { %v2261_v53 = vpop.f32.mrb[102].mxu0  ;;  %2854 = vmatprep.mubr.msk.f32.mxu1 %vm2406_vm6, %v2363_v44  ;;  %v2356_v44 = vld [vmem:[%s6041_s5 + $0xc0] sm:$0xff] }
 0x2c3   : > { %v2263_v56 = vpop.f32.mrb[103].mxu0  ;;  %2523 = vmatmul.mubr.f32.gmra.mrb[128].mxu1 %v2362_v58  ;;  %v2364_v23 = vmul.f32 %v2336_v26, %v2261_v53  ;;  %v2359_v26 = vld [vmem:[%s6041_s5 + $0xd8] sm:$0xff] }
 0x2c4   : > { %v2365_v0 = vmul.f32 %v2337_v33, %v2263_v56 }
 0x2c6   : > { %v2267_v31 = vpop.f32.mrb[104].mxu0  ;;  %2855 = vmatprep.mubr.msk.f32.mxu1 %vm2406_vm6, %v2365_v0  ;;  %v2358_v0 = vld [vmem:[%s6041_s5 + $0xd0] sm:$0xff] }
 0x2c7   : > { %v2269_v49 = vpop.f32.mrb[105].mxu0  ;;  %2528 = vmatmul.mubr.f32.gmra.mrb[130].mxu1 %v2364_v23  ;;  %v2366_v14 = vmul.f32 %v2338_v17, %v2267_v31  ;;  %v6527_v17 = vmov 0.0  }
 0x2c8   : > { %v2367_v38 = vmul.f32 %v2339_v24, %v2269_v49 }
 0x2ca   : > { %v2273_v1 = vpop.f32.mrb[106].mxu0  ;;  %2856 = vmatprep.mubr.msk.f32.mxu1 %vm2406_vm6, %v2367_v38 }
 0x2cb   : > { %v2275_v52 = vpop.f32.mrb[107].mxu0  ;;  %2533 = vmatmul.mubr.f32.gmra.mrb[132].mxu1 %v2366_v14  ;;  %v2368_v10 = vmul.f32 %v2340_v39, %v2273_v1 }
 0x2cc   : > { %v2369_v42 = vmul.f32 %v2341_v9, %v2275_v52  ;;  %v6528_v52 = vmov 0.0|0.0  }
 0x2ce   : > { %v2279_v13 = vpop.f32.mrb[108].mxu0  ;;  %2857 = vmatprep.mubr.msk.f32.mxu1 %vm2406_vm6, %v2369_v42 }
 0x2cf   : > { %v2281_v50 = vpop.f32.mrb[109].mxu0  ;;  %2538 = vmatmul.mubr.f32.gmra.mrb[134].mxu1 %v2368_v10  ;;  %v2370_v3 = vmul.f32 %v2342_v2, %v2279_v13 }
 0x2d0   : > { %v2371_v46 = vmul.f32 %v2343_v15, %v2281_v50 }
 0x2d2   : > { %v2285_v28 = vpop.f32.mrb[110].mxu0  ;;  %2858 = vmatprep.mubr.msk.f32.mxu1 %vm2406_vm6, %v2371_v46 }
 0x2d3   : > { %v2287_v55 = vpop.f32.mrb[111].mxu0  ;;  %2543 = vmatmul.mubr.f32.gmra.mrb[136].mxu1 %v2370_v3  ;;  %v2372_v63 = vmul.f32 %v2344_v18, %v2285_v28 }
 0x2d4   : > { %v2373_v41 = vmul.f32 %v2345_v34, %v2287_v55 }
 0x2d6   : > { %v2291_v35 = vpop.f32.mrb[112].mxu0  ;;  %2859 = vmatprep.mubr.msk.f32.mxu1 %vm2406_vm6, %v2373_v41 }
 0x2d7   : > { %v2293_v22 = vpop.f32.mrb[113].mxu0  ;;  %2548 = vmatmul.mubr.f32.gmra.mrb[138].mxu1 %v2372_v63  ;;  %v2374_v62 = vmul.f32 %v2346_v51, %v2291_v35 }
 0x2d8   : > { %v2375_v45 = vmul.f32 %v2347_v47, %v2293_v22 }
 0x2da   : > { %v2297_v21 = vpop.f32.mrb[114].mxu0  ;;  %2860 = vmatprep.mubr.msk.f32.mxu1 %vm2406_vm6, %v2375_v45 }
 0x2db   : > { %v2299_v32 = vpop.f32.mrb[115].mxu0  ;;  %2553 = vmatmul.mubr.f32.gmra.mrb[140].mxu1 %v2374_v62  ;;  %v2376_v6 = vmul.f32 %v2348_v59, %v2297_v21 }
 0x2dc   : > { %v2377_v11 = vmul.f32 %v2349_v57, %v2299_v32 }
 0x2de   : > { %v2303_v29 = vpop.f32.mrb[116].mxu0  ;;  %2861 = vmatprep.mubr.msk.f32.mxu1 %vm2406_vm6, %v2377_v11 }
 0x2df   : > { %v2305_v61 = vpop.f32.mrb[117].mxu0  ;;  %2558 = vmatmul.mubr.f32.gmra.mrb[142].mxu1 %v2376_v6  ;;  %v2378_v7 = vmul.f32 %v2350_v30, %v2303_v29 }
 0x2e0   : > { %v2379_v8 = vmul.f32 %v2351_v36, %v2305_v61  ;;  %v2588_v61 = vld [vmem:[%s6043_s7] sm:$0xff] }
 0x2e2   : > { %v2309_v20 = vpop.f32.mrb[118].mxu0  ;;  %2862 = vmatprep.mubr.msk.f32.mxu1 %vm2406_vm6, %v2379_v8  ;;  %v2867_v8 = vld [vmem:[%s6040_s4] ss:$0 sm:$0xff] }
 0x2e3   : > { %v2311_v27 = vpop.f32.mrb[119].mxu0  ;;  %2563 = vmatmul.mubr.f32.gmra.mrb[144].mxu1 %v2378_v7  ;;  %v2380_v43 = vmul.f32 %v2352_v19, %v2309_v20 }
 0x2e4   : > { %v2381_v5 = vmul.f32 %v2353_v40, %v2311_v27 }
 0x2e6   : > { %v2315_v16 = vpop.f32.mrb[120].mxu0  ;;  %2863 = vmatprep.mubr.msk.f32.mxu1 %vm2406_vm6, %v2381_v5 }
 0x2e7   : > { %v2317_v54 = vpop.f32.mrb[121].mxu0  ;;  %2568 = vmatmul.mubr.f32.gmra.mrb[146].mxu1 %v2380_v43  ;;  %v2382_v12 = vmul.f32 %v2354_v25, %v2315_v16 }
 0x2e8   : > { %v2383_v60 = vmul.f32 %v2355_v4, %v2317_v54 }
 0x2ea   : > { %v2321_v37 = vpop.f32.mrb[122].mxu0  ;;  %2864 = vmatprep.mubr.msk.f32.mxu1 %vm2406_vm6, %v2383_v60 }
 0x2eb   : > { %v2323_v58 = vpop.f32.mrb[123].mxu0  ;;  %2573 = vmatmul.mubr.f32.gmra.mrb[148].mxu1 %v2382_v12  ;;  %v2384_v53 = vmul.f32 %v2356_v44, %v2321_v37 }
 0x2ec   : > { %v2385_v33 = vmul.f32 %v2357_v48, %v2323_v58 }
 0x2ee   : > { %v2327_v56 = vpop.f32.mrb[124].mxu0  ;;  %2865 = vmatprep.mubr.msk.f32.mxu1 %vm2406_vm6, %v2385_v33 }
 0x2ef   : > { %v2329_v23 = vpop.f32.mrb[125].mxu0  ;;  %2578 = vmatmul.mubr.f32.gmra.mrb[150].mxu1 %v2384_v53  ;;  %v2386_v31 = vmul.f32 %v2358_v0, %v2327_v56 }
 0x2f0   : > { %v2387_v24 = vmul.f32 %v2359_v26, %v2329_v23 }
 0x2f2   : > { %2866 = vmatprep.mubr.msk.f32.mxu1 %vm2406_vm6, %v2387_v24 }
 0x2f3   : > { %2583 = vmatmul.mubr.f32.gmra.mrb[152].mxu1 %v2386_v31 }
 0x2f4   : > { %2914 = vmatprep.mubr.msk.f32.mxu1 %vm3261_vm7, %v6527_v17 }
 0x392   : > { %v2519_v49 = vpop.f32.mrb[126].mxu1 }
 0x393   : > { %v2521_v38 = vpop.f32.mrb[127].mxu1 }
 0x396   : > { %v2524_v14 = vpop.f32.mrb[128].mxu1 }
 0x397   : > { %v3178_v9 = vpack.c.bf16 %v2524_v14, %v2519_v49  ;;  %v2526_v1 = vpop.f32.mrb[129].mxu1 }
 0x399   : > { %3179 = vmatpush3.bf16.msra.mxu1 %v3178_v9 }
 0x39a   : > { %v2529_v39 = vpop.f32.mrb[130].mxu1  ;;  %3180 = vmatprep.subr.bf16.mxu1 %v6528_v52 }
 0x39b   : > { %v2531_v42 = vpop.f32.mrb[131].mxu1 }
 0x39e   : > { %v2534_v10 = vpop.f32.mrb[132].mxu1 }
 0x39f   : > { %v3181_v15 = vpack.c.bf16 %v2534_v10, %v2529_v39  ;;  %v2536_v13 = vpop.f32.mrb[133].mxu1 }
 0x3a1   : > { %3182 = vmatpush3.bf16.msra.mxu1 %v3181_v15 }
 0x3a2   : > { %v2539_v2 = vpop.f32.mrb[134].mxu1  ;;  %3183 = vmatprep.subr.bf16.mxu1 %v6528_v52 }
 0x3a3   : > { %v2541_v50 = vpop.f32.mrb[135].mxu1 }
 0x3a6   : > { %v2544_v46 = vpop.f32.mrb[136].mxu1 }
 0x3a7   : > { %v3184_v3 = vpack.c.bf16 %v2544_v46, %v2539_v2  ;;  %v2546_v34 = vpop.f32.mrb[137].mxu1 }
 0x3a9   : > { %3185 = vmatpush3.bf16.msra.mxu1 %v3184_v3 }
 0x3aa   : > { %v2549_v28 = vpop.f32.mrb[138].mxu1  ;;  %3186 = vmatprep.subr.bf16.mxu1 %v6528_v52 }
 0x3ab   : > { %v2551_v18 = vpop.f32.mrb[139].mxu1 }
 0x3ae   : > { %v2554_v55 = vpop.f32.mrb[140].mxu1 }
 0x3af   : > { %v3187_v41 = vpack.c.bf16 %v2554_v55, %v2549_v28  ;;  %v2556_v63 = vpop.f32.mrb[141].mxu1 }
 0x3b1   : > { %3188 = vmatpush3.bf16.msra.mxu1 %v3187_v41 }
 0x3b2   : > { %v2559_v47 = vpop.f32.mrb[142].mxu1  ;;  %3189 = vmatprep.subr.bf16.mxu1 %v6528_v52 }
 0x3b3   : > { %v2561_v35 = vpop.f32.mrb[143].mxu1 }
 0x3b6   : > { %v2564_v51 = vpop.f32.mrb[144].mxu1 }
 0x3b7   : > { %v3190_v22 = vpack.c.bf16 %v2564_v51, %v2559_v47  ;;  %v2566_v45 = vpop.f32.mrb[145].mxu1 }
 0x3b9   : > { %3191 = vmatpush3.bf16.msra.mxu1 %v3190_v22 }
 0x3ba   : > { %v2569_v62 = vpop.f32.mrb[146].mxu1  ;;  %3192 = vmatprep.subr.bf16.mxu1 %v6528_v52 }
 0x3bb   : > { %v2571_v57 = vpop.f32.mrb[147].mxu1 }
 0x3be   : > { %v2574_v21 = vpop.f32.mrb[148].mxu1 }
 0x3bf   : > { %v3193_v59 = vpack.c.bf16 %v2574_v21, %v2569_v62  ;;  %v2576_v32 = vpop.f32.mrb[149].mxu1 }
 0x3c1   : > { %3194 = vmatpush3.bf16.msra.mxu1 %v3193_v59 }
 0x3c2   : > { %v2579_v11 = vpop.f32.mrb[150].mxu1  ;;  %3195 = vmatprep.subr.bf16.mxu1 %v6528_v52 }
 0x3c3   : > { %v2581_v6 = vpop.f32.mrb[151].mxu1 }
 0x3c6   : > { %v2584_v36 = vpop.f32.mrb[152].mxu1 }
 0x3c7   : > { %v3196_v29 = vpack.c.bf16 %v2584_v36, %v2579_v11  ;;  %v2586_v30 = vpop.f32.mrb[153].mxu1 }
 0x3c9   : > { %3197 = vmatpush3.bf16.msra.mxu1 %v3196_v29 }
 0x3cc   : > { %2915 = vmatmul.mubr.msk.f32.vlgmr.msra.gmra.mrb[154].mxu1 %vm2596_vm8, %v2588_v61 }
 0x49f   : > { %v2666_v7 = vpop.f32.mrb[154].mxu1 }
 0x4a0   : > { %v2667_v40 = vadd.f32 %v2867_v8, %v2666_v7  ;;  %v2916_v20 = vpop.f32.mrb[155].mxu1 }
 0x4a2   : > { %2671 = vst.msk [vmem:[%s305_s30] sm:$0xff] %vm2670_vm9, %v2667_v40 }
 0x4a3 PF: > { %s18_s27 = sadd.s32 1, %s3256_s27  }
 0x4a4   : > { %p15_p5 = scmp.ge.s32.totalorder %s18_s27, 6  }
 0x4a6   :  { %17 = sbr.rel (!%p15_p5) target bundleno = 1 (0x1), region = 82 }

</bundles_post_ra>
